<compile_context>
chip_gen: v7x
topology: tpu7x:2x2x1
jax: 0.10.0
libtpu: 0.0.40
codegen_flags: <defaults>
</compile_context>

<pallas_src>
import functools

import jax
import jax.numpy as jnp
from jax.experimental import pallas as pl
from jax.experimental.pallas import tpu as pltpu

_LANE = 128                      # lane-width target (fills a v5e MXU tile; fine on v6e/v7x)
_MAX_ROW_TILE = 2048             # upper cap on folded rows per grid step
_VMEM_BUDGET = 20 * 1024 * 1024  # conservative per-kernel VMEM budget (v7x default scoped)


# ---------------------------------------------------------------------------
# Pallas kernels
# ---------------------------------------------------------------------------
def _pw_kernel(x_ref, w_ref, b_ref, o_ref):
    """out = x @ w + b  on lane-dense, pixel-folded slabs."""
    x = x_ref[...]                       # [T, pack*Cin]
    w = w_ref[...]                       # [pack*Cin, pack*Cout]
    k = x.shape[-1]
    if k < 8:
        # Degenerate-K fallback (not hit in the demo config): VPU broadcast MAC.
        acc = b_ref[...] + jnp.zeros((x.shape[0], w.shape[1]), jnp.float32)
        for kk in range(k):
            acc = acc + x[:, kk:kk + 1] * w[kk:kk + 1, :]
        o_ref[...] = acc
    else:
        o_ref[...] = jnp.dot(x, w, preferred_element_type=jnp.float32) + b_ref[...]


def _pw_cin1_kernel(x_ref, w_ref, b_ref, o_ref):
    """Cin=1 pointwise conv on pixel-folded rows (pure VPU, no zero-padded MACs):
       out[:, j*Cout:(j+1)*Cout] = x[:, j] * w + b."""
    x = x_ref[...]                       # [T, pack]
    w = w_ref[...]                       # [1, Cout]
    b = b_ref[...]                       # [1, Cout]
    pack, cout = x.shape[1], w.shape[1]
    for j in range(pack):
        o_ref[:, j * cout:(j + 1) * cout] = x[:, j:j + 1] * w + b


def _pw_res_gelu_kernel(x_ref, spec_ref, w_ref, b_ref, o_ref):
    """out = GELU(spectral + x @ w + b)   (fused FNO-block pointwise path)."""
    z = (spec_ref[...]
         + jnp.dot(x_ref[...], w_ref[...], preferred_element_type=jnp.float32)
         + b_ref[...])
    # TODO(synk): PyTorch F.gelu default is exact erf-GELU; tanh approximation used here
    # to guarantee Mosaic lowering (max abs deviation ~1e-3).
    c = 0.7978845608028654  # sqrt(2/pi)
    o_ref[...] = 0.5 * z * (1.0 + jnp.tanh(c * (z + 0.044715 * z * z * z)))


def _spectral_modes_kernel(x_ref, w_ref, o_ref):
    """Real-packed complex contraction over grouped modes:
       y[grp] = x[grp] @ w[grp]   with x = [.. | xr_l | xi_l | ..] per local mode l and the
       per-group weight a block-diagonal of [[wr, wi], [-wi, wr]] mode blocks."""
    o_ref[...] = jnp.einsum("gbi,gio->gbo", x_ref[...], w_ref[...],
                            preferred_element_type=jnp.float32)


# ---------------------------------------------------------------------------
# Static sizing helpers (all derived from static shapes)
# ---------------------------------------------------------------------------
def _choose_pack(cin, cout):
    """Pixels folded into lanes: lane-dense (>=128) output; K capped at ~128 so the
    block-diagonal kron weight never balloons with zeros (conv_out case)."""
    pack = max(1, -(-_LANE // cout))                 # ceil(128 / cout)
    if cin > 1:
        pack = min(pack, max(1, _LANE // cin))       # keep pack*cin <= 128
    return pack


def _spectral_group(width, modes):
    """Modes per block-diagonal group: target K = g*2*width ~= 128 and g | 2*modes^2."""
    two_m = 2 * modes * modes
    g = max(1, _LANE // (2 * width))
    g = min(g, two_m)
    while g > 1 and two_m % g:
        g -= 1
    return g


def _row_tile(nf, kin, kout, fused):
    """Largest multiple-of-8 folded-row tile whose double-buffered blocks fit the budget."""
    per_row = 4 * (kin + kout + (kout if fused else 0))       # x + out (+ spec) bytes / row
    budget = _VMEM_BUDGET - 8 * (kin * kout + kout)           # resident weight + bias
    tile = max(8, budget // (2 * per_row))
    tile = min(tile, _MAX_ROW_TILE, ((nf + 7) // 8) * 8)
    return max(8, (tile // 8) * 8)


# ---------------------------------------------------------------------------
# Pallas-call wrappers
# ---------------------------------------------------------------------------
def _pointwise_flat(xf, layer, spec_f=None):
    """Pointwise (1x1) conv on a flattened channel-last slab xf: [N, Cin] -> [N, Cout].
    If spec_f is given, computes GELU(spec_f + xf @ w + b) fused in one kernel.
    Weights arrive prepacked from init_params (layer['wp'] / layer['bp'])."""
    n, cin = xf.shape
    cout = layer["w"].shape[1]
    pack = _choose_pack(cin, cout)
    kin, kout = pack * cin, pack * cout

    nf = pl.cdiv(n, pack)
    tile = _row_tile(nf, kin, kout, spec_f is not None)
    nf_pad = pl.cdiv(nf, tile) * tile
    n_pad = nf_pad * pack

    def fold(a, c):
        if n_pad != n:
            a = jnp.pad(a, ((0, n_pad - n), (0, 0)))
        return a.reshape(nf_pad, pack * c)

    x_fold = fold(xf, cin)

    if cin == 1:
        kernel = _pw_cin1_kernel
        w_arg, b_arg = layer["w"], layer["bp"]               # raw [1,Cout] row + [1,Cout] bias
        w_spec = pl.BlockSpec((1, cout), lambda i: (0, 0))
        b_spec = pl.BlockSpec((1, cout), lambda i: (0, 0))
    else:
        kernel = _pw_res_gelu_kernel if spec_f is not None else _pw_kernel
        w_arg, b_arg = layer["wp"], layer["bp"]              # prepacked kron(I_pack, W), tiled b
        w_spec = pl.BlockSpec((kin, kout), lambda i: (0, 0))
        b_spec = pl.BlockSpec((1, kout), lambda i: (0, 0))

    in_specs = [pl.BlockSpec((tile, kin), lambda i: (i, 0))]
    args = [x_fold]
    if spec_f is not None:
        in_specs.append(pl.BlockSpec((tile, kout), lambda i: (i, 0)))
        args.append(fold(spec_f, cout))
    in_specs += [w_spec, b_spec]
    args += [w_arg, b_arg]

    out = pl.pallas_call(
        kernel,
        out_shape=jax.ShapeDtypeStruct((nf_pad, kout), jnp.float32),
        grid=(nf_pad // tile,),
        in_specs=in_specs,
        out_specs=pl.BlockSpec((tile, kout), lambda i: (i, 0)),
        compiler_params=pltpu.CompilerParams(dimension_semantics=("parallel",)),
    )(*args)
    return out.reshape(n_pad, cout)[:n]


def pointwise_conv_nhwc(x, layer):
    b, h, w, cin = x.shape
    cout = layer["w"].shape[1]
    y = _pointwise_flat(x.reshape(b * h * w, cin), layer)
    return y.reshape(b, h, w, cout)


def fno_block_pointwise_nhwc(x, spec, layer):
    b, h, w, cin = x.shape
    cout = layer["w"].shape[1]
    y = _pointwise_flat(x.reshape(b * h * w, cin), layer,
                        spec_f=spec.reshape(b * h * w, cout))
    return y.reshape(b, h, w, cout)


def spectral_conv2d_nhwc(x, w_grp, modes):
    """SpectralConv2d(width, width, modes, modes) forward (Li et al. FNO), NHWC layout.
    `w_grp` is the prepacked [ngroups, g*2C, g*2Cout] block-diagonal real-packed slab."""
    b, h, w, c = x.shape
    m = modes * modes
    wf = w // 2 + 1
    ngroups, kin_g, kout_g = w_grp.shape
    g = kin_g // (2 * c)
    cout = kout_g // (2 * g)
    assert ngroups * g == 2 * m, "spectral weight slab does not match `modes`/`width`"
    assert h >= 2 * modes and wf >= modes, "padded spatial size too small for `modes`"

    # TODO(synk): 2-D (i)rFFT has no Pallas equivalent; kept in plain JAX.
    x_ft = jnp.fft.rfft2(x, axes=(1, 2))                          # [B, H, Wf, C] complex64

    # Pack both frequency corners into [ngroups, B, g*2C] (mode order: corner, h-mode, w-mode).
    xc = jnp.concatenate([x_ft[:, :modes, :modes, :],
                          x_ft[:, -modes:, :modes, :]], axis=1)   # [B, 2*modes, modes, C]
    xp = jnp.concatenate([jnp.real(xc), jnp.imag(xc)], axis=-1)   # [B, 2*modes, modes, 2C]
    x_pk = jnp.transpose(xp.reshape(b, ngroups, g * 2 * c), (1, 0, 2))

    y_pk = pl.pallas_call(
        _spectral_modes_kernel,
        out_shape=jax.ShapeDtypeStruct((ngroups, b, kout_g), jnp.float32),
        grid=(1,),
        in_specs=[
            pl.BlockSpec((ngroups, b, kin_g), lambda i: (0, 0, 0)),
            pl.BlockSpec((ngroups, kin_g, kout_g), lambda i: (0, 0, 0)),
        ],
        out_specs=pl.BlockSpec((ngroups, b, kout_g), lambda i: (0, 0, 0)),
        compiler_params=pltpu.CompilerParams(dimension_semantics=("arbitrary",)),
    )(x_pk, w_grp)

    # Unpack corners and assemble the output spectrum via concat + pad (no scatter updates).
    y = jnp.transpose(y_pk, (1, 0, 2)).reshape(b, 2, modes, modes, 2 * cout)
    y_c = y[..., :cout] + 1j * y[..., cout:]                      # [B, 2, modes, modes, Cout]
    zeros_mid = jnp.zeros((b, h - 2 * modes, modes, cout), jnp.complex64)
    left = jnp.concatenate([y_c[:, 0], zeros_mid, y_c[:, 1]], axis=1)   # [B, H, modes, Cout]
    out_ft = jnp.pad(left, ((0, 0), (0, 0), (0, wf - modes), (0, 0)))
    return jnp.fft.irfft2(out_ft, s=(h, w), axes=(1, 2)).astype(jnp.float32)


# ---------------------------------------------------------------------------
# Parameters (raw PyTorch-equivalent init + one-time kernel-ready packing)
# ---------------------------------------------------------------------------
def _conv_init(key, cin, cout):
    # nn.Conv2d(cin, cout, 1) default init: U(-1/sqrt(fan_in), 1/sqrt(fan_in)), fan_in = cin
    bound = 1.0 / float(cin) ** 0.5
    kw, kb = jax.random.split(key)
    w = jax.random.uniform(kw, (cin, cout), jnp.float32, -bound, bound)
    b = jax.random.uniform(kb, (cout,), jnp.float32, -bound, bound)
    return w, b


def _pack_pointwise(w, b):
    """Hoisted-out-of-forward pixel-folded weight/bias slabs."""
    cin, cout = w.shape
    pack = _choose_pack(cin, cout)
    layer = {"w": w, "b": b}
    if cin == 1:
        layer["bp"] = b.reshape(1, cout)                     # raw row; kernel broadcasts it
    else:
        layer["wp"] = jnp.kron(jnp.eye(pack, dtype=w.dtype), w)   # block-diag [p*Cin, p*Cout]
        layer["bp"] = jnp.tile(b, pack).reshape(1, pack * cout)
    return layer


def _pack_spectral(w1r, w1i, w2r, w2i, modes, width):
    """Real-packed, mode-grouped block-diagonal spectral weight slab [ngroups, g*2C, g*2Cout]."""
    cin, cout = w1r.shape[0], w1r.shape[1]
    m = modes * modes
    g = _spectral_group(width, modes)

    def to_mio(wr, wi):   # [Cin, Cout, modes, modes] -> [m, 2Cin, 2Cout]
        wr = wr.transpose(2, 3, 0, 1).reshape(m, cin, cout)
        wi = wi.transpose(2, 3, 0, 1).reshape(m, cin, cout)
        top = jnp.concatenate([wr, wi], axis=-1)
        bot = jnp.concatenate([-wi, wr], axis=-1)
        return jnp.concatenate([top, bot], axis=-2)

    w_all = jnp.concatenate([to_mio(w1r, w1i), to_mio(w2r, w2i)], axis=0)   # [2m, 2C, 2Cout]
    ngroups = (2 * m) // g
    blocks = w_all.reshape(ngroups, g, 2 * cin, 2 * cout)
    eye = jnp.eye(g, dtype=w_all.dtype)
    w_grp = blocks[:, :, :, None, :] * eye[None, :, None, :, None]          # block-diag per group
    return w_grp.reshape(ngroups, g * 2 * cin, g * 2 * cout)


def init_params(key, modes, width, blocks, out_channels):
    keys = jax.random.split(key, 2 + blocks)
    w, b = _conv_init(keys[0], 1, width)
    params = {"conv_in": _pack_pointwise(w, b)}
    w, b = _conv_init(keys[1], width, out_channels)
    params["conv_out"] = _pack_pointwise(w, b)
    params["blocks"] = []
    scale = 1.0 / (width * width)
    for i in range(blocks):
        k1, k2, k3, k4, k5 = jax.random.split(keys[2 + i], 5)
        w1r = scale * jax.random.uniform(k1, (width, width, modes, modes), jnp.float32)
        w1i = scale * jax.random.uniform(k2, (width, width, modes, modes), jnp.float32)
        w2r = scale * jax.random.uniform(k3, (width, width, modes, modes), jnp.float32)
        w2i = scale * jax.random.uniform(k4, (width, width, modes, modes), jnp.float32)
        wp, bp = _conv_init(k5, width, width)
        params["blocks"].append({
            "spec_wp": _pack_spectral(w1r, w1i, w2r, w2i, modes, width),
            "pw": _pack_pointwise(wp, bp),
        })
    return params


# ---------------------------------------------------------------------------
# Forward
# ---------------------------------------------------------------------------
def fno_forward(x, params, modes, padding):
    """x: [B, 1, H, W] float32 (NCHW at the module boundary, matching PyTorch)."""
    x = jnp.transpose(x, (0, 2, 3, 1))                       # NHWC for the whole body
    x = pointwise_conv_nhwc(x, params["conv_in"])            # conv_in
    p = padding
    if p > 0:                                                # pad_in (ZeroPad2d(+padding))
        x = jnp.pad(x, ((0, 0), (p, p), (p, p), (0, 0)))
    for blk in params["blocks"]:                             # fno_blocks
        spec = spectral_conv2d_nhwc(x, blk["spec_wp"], modes)
        x = fno_block_pointwise_nhwc(x, spec, blk["pw"])     # GELU(spec + 1x1conv(x)) fused
    if p > 0:                                                # pad_out (ZeroPad2d(-padding))
        x = x[:, p:-p, p:-p, :]
    x = pointwise_conv_nhwc(x, params["conv_out"])           # conv_out
    return jnp.transpose(x, (0, 3, 1, 2))                    # back to NCHW


# ---------------------------------------------------------------------------
if __name__ == "__main__":
    modes, width, blocks, padding, out_channels = 6, 32, 2, 4, 2
    B, H, W = 2, 16, 16

    key = jax.random.PRNGKey(0)
    kx, kp = jax.random.split(key)
    x = jax.random.normal(kx, (B, 1, H, W), jnp.float32)
    params = init_params(kp, modes, width, blocks, out_channels)

    fwd = jax.jit(functools.partial(fno_forward, modes=modes, padding=padding))
    y = fwd(x, params)
    jax.block_until_ready(y)

    assert y.shape == (B, out_channels, H, W), y.shape
    assert y.dtype == jnp.float32
    assert bool(jnp.all(jnp.isfinite(y)))
    print("KERNEL_OK")
</pallas_src>

<mosaic_0001>
module attributes {stable_mosaic.version = 11 : i64} {
  func.func @_pw_cin1_kernel(%arg0: i32, %arg1: memref<128x4xf32, #tpu.memory_space<vmem>>, %arg2: memref<1x32xf32, #tpu.memory_space<vmem>>, %arg3: memref<1x32xf32, #tpu.memory_space<vmem>>, %arg4: memref<128x128xf32, #tpu.memory_space<vmem>>) attributes {dimension_semantics = [#tpu.dimension_semantics<parallel>], iteration_bounds = array<i64: 1>, scalar_prefetch = 0 : i64, scratch_operands = 0 : i64, tpu.core_type = #tpu.core_type<tc>, window_params = [{transform_indices = @transform_0, window_bounds = array<i64: 128, 4>}, {pipeline_mode = #tpu.pipeline_mode<synchronous>, transform_indices = @transform_1, window_bounds = array<i64: 1, 32>}, {pipeline_mode = #tpu.pipeline_mode<synchronous>, transform_indices = @transform_2, window_bounds = array<i64: 1, 32>}, {transform_indices = @transform_3, window_bounds = array<i64: 128, 128>}]} {
    %c0 = arith.constant 0 : index
    %c0_0 = arith.constant 0 : index
    %0 = vector.load %arg1[%c0, %c0_0] : memref<128x4xf32, #tpu.memory_space<vmem>>, vector<128x4xf32>
    %c0_1 = arith.constant 0 : index
    %c0_2 = arith.constant 0 : index
    %1 = vector.load %arg2[%c0_1, %c0_2] : memref<1x32xf32, #tpu.memory_space<vmem>>, vector<1x32xf32>
    %c0_3 = arith.constant 0 : index
    %c0_4 = arith.constant 0 : index
    %2 = vector.load %arg3[%c0_3, %c0_4] : memref<1x32xf32, #tpu.memory_space<vmem>>, vector<1x32xf32>
    %3 = vector.extract_strided_slice %0 {offsets = [0, 0], sizes = [128, 1], strides = [1, 1]} : vector<128x4xf32> to vector<128x1xf32>
    %4 = vector.broadcast %3 : vector<128x1xf32> to vector<128x32xf32>
    %5 = vector.broadcast %1 : vector<1x32xf32> to vector<128x32xf32>
    %6 = arith.mulf %4, %5 : vector<128x32xf32>
    %7 = vector.broadcast %2 : vector<1x32xf32> to vector<128x32xf32>
    %8 = arith.addf %6, %7 : vector<128x32xf32>
    %c0_5 = arith.constant 0 : index
    %c0_6 = arith.constant 0 : index
    %9 = vector.load %arg4[%c0_5, %c0_6] : memref<128x128xf32, #tpu.memory_space<vmem>>, vector<128x32xf32>
    tpu.vector_store %arg4[%c0_5, %c0_6], %8 {strides = array<i32>} : memref<128x128xf32, #tpu.memory_space<vmem>>, vector<128x32xf32>,
    %10 = vector.extract_strided_slice %0 {offsets = [0, 1], sizes = [128, 1], strides = [1, 1]} : vector<128x4xf32> to vector<128x1xf32>
    %11 = vector.broadcast %10 : vector<128x1xf32> to vector<128x32xf32>
    %12 = vector.broadcast %1 : vector<1x32xf32> to vector<128x32xf32>
    %13 = arith.mulf %11, %12 : vector<128x32xf32>
    %14 = vector.broadcast %2 : vector<1x32xf32> to vector<128x32xf32>
    %15 = arith.addf %13, %14 : vector<128x32xf32>
    %c0_7 = arith.constant 0 : index
    %c32 = arith.constant 32 : index
    %16 = vector.load %arg4[%c0_7, %c32] : memref<128x128xf32, #tpu.memory_space<vmem>>, vector<128x32xf32>
    tpu.vector_store %arg4[%c0_7, %c32], %15 {strides = array<i32>} : memref<128x128xf32, #tpu.memory_space<vmem>>, vector<128x32xf32>,
    %17 = vector.extract_strided_slice %0 {offsets = [0, 2], sizes = [128, 1], strides = [1, 1]} : vector<128x4xf32> to vector<128x1xf32>
    %18 = vector.broadcast %17 : vector<128x1xf32> to vector<128x32xf32>
    %19 = vector.broadcast %1 : vector<1x32xf32> to vector<128x32xf32>
    %20 = arith.mulf %18, %19 : vector<128x32xf32>
    %21 = vector.broadcast %2 : vector<1x32xf32> to vector<128x32xf32>
    %22 = arith.addf %20, %21 : vector<128x32xf32>
    %c0_8 = arith.constant 0 : index
    %c64 = arith.constant 64 : index
    %23 = vector.load %arg4[%c0_8, %c64] : memref<128x128xf32, #tpu.memory_space<vmem>>, vector<128x32xf32>
    tpu.vector_store %arg4[%c0_8, %c64], %22 {strides = array<i32>} : memref<128x128xf32, #tpu.memory_space<vmem>>, vector<128x32xf32>,
    %24 = vector.extract_strided_slice %0 {offsets = [0, 3], sizes = [128, 1], strides = [1, 1]} : vector<128x4xf32> to vector<128x1xf32>
    %25 = vector.broadcast %24 : vector<128x1xf32> to vector<128x32xf32>
    %26 = vector.broadcast %1 : vector<1x32xf32> to vector<128x32xf32>
    %27 = arith.mulf %25, %26 : vector<128x32xf32>
    %28 = vector.broadcast %2 : vector<1x32xf32> to vector<128x32xf32>
    %29 = arith.addf %27, %28 : vector<128x32xf32>
    %c0_9 = arith.constant 0 : index
    %c96 = arith.constant 96 : index
    %30 = vector.load %arg4[%c0_9, %c96] : memref<128x128xf32, #tpu.memory_space<vmem>>, vector<128x32xf32>
    tpu.vector_store %arg4[%c0_9, %c96], %29 {strides = array<i32>} : memref<128x128xf32, #tpu.memory_space<vmem>>, vector<128x32xf32>,
    return
  }
  func.func @transform_0(%arg0: i32) -> (i32, i32) {
    %c0_i32 = arith.constant 0 : i32
    %c0_i32_0 = arith.constant 0 : i32
    return %arg0, %c0_i32 : i32, i32
  }
  func.func @transform_1(%arg0: i32) -> (i32, i32) {
    %c0_i32 = arith.constant 0 : i32
    %c0_i32_0 = arith.constant 0 : i32
    %c0_i32_1 = arith.constant 0 : i32
    return %c0_i32, %c0_i32_0 : i32, i32
  }
  func.func @transform_2(%arg0: i32) -> (i32, i32) {
    %c0_i32 = arith.constant 0 : i32
    %c0_i32_0 = arith.constant 0 : i32
    %c0_i32_1 = arith.constant 0 : i32
    return %c0_i32, %c0_i32_0 : i32, i32
  }
  func.func @transform_3(%arg0: i32) -> (i32, i32) {
    %c0_i32 = arith.constant 0 : i32
    %c0_i32_0 = arith.constant 0 : i32
    return %arg0, %c0_i32 : i32, i32
  }
}

module attributes {stable_mosaic.version = 11 : i64} {
  func.func @_spectral_modes_kernel(%arg0: i32, %arg1: memref<36x2x128xf32, #tpu.memory_space<vmem>>, %arg2: memref<36x128x128xf32, #tpu.memory_space<vmem>>, %arg3: memref<36x2x128xf32, #tpu.memory_space<vmem>>) attributes {dimension_semantics = [#tpu.dimension_semantics<arbitrary>], iteration_bounds = array<i64: 1>, scalar_prefetch = 0 : i64, scratch_operands = 0 : i64, tpu.core_type = #tpu.core_type<tc>, window_params = [{pipeline_mode = #tpu.pipeline_mode<synchronous>, transform_indices = @transform_0, window_bounds = array<i64: 36, 2, 128>}, {pipeline_mode = #tpu.pipeline_mode<synchronous>, transform_indices = @transform_1, window_bounds = array<i64: 36, 128, 128>}, {pipeline_mode = #tpu.pipeline_mode<synchronous>, transform_indices = @transform_2, window_bounds = array<i64: 36, 2, 128>}]} {
    %c0 = arith.constant 0 : index
    %c0_0 = arith.constant 0 : index
    %c0_1 = arith.constant 0 : index
    %0 = vector.load %arg1[%c0, %c0_0, %c0_1] : memref<36x2x128xf32, #tpu.memory_space<vmem>>, vector<36x2x128xf32>
    %c0_2 = arith.constant 0 : index
    %c0_3 = arith.constant 0 : index
    %c0_4 = arith.constant 0 : index
    %1 = vector.load %arg2[%c0_2, %c0_3, %c0_4] : memref<36x128x128xf32, #tpu.memory_space<vmem>>, vector<36x128x128xf32>
    "tpu.trace_start"() <{level = 10 : i32, message = "gbi,gio->gbo"}> : () -> ()
    %cst = arith.constant dense<0.000000e+00> : vector<36x2x128xf32>
    %2 = tpu.matmul %0, %1, %cst {dimension_numbers = #tpu.dot_dimension_numbers<[2], [1], [1], [2], [0, 0, 0, 1, 1, 2], [0], [0]>} : vector<36x2x128xf32>, vector<36x128x128xf32>, vector<36x2x128xf32> -> vector<36x2x128xf32>
    "tpu.trace_stop"() : () -> ()
    %c0_5 = arith.constant 0 : index
    %c0_6 = arith.constant 0 : index
    %c0_7 = arith.constant 0 : index
    %3 = vector.load %arg3[%c0_5, %c0_6, %c0_7] : memref<36x2x128xf32, #tpu.memory_space<vmem>>, vector<36x2x128xf32>
    tpu.vector_store %arg3[%c0_5, %c0_6, %c0_7], %2 {strides = array<i32>} : memref<36x2x128xf32, #tpu.memory_space<vmem>>, vector<36x2x128xf32>,
    return
  }
  func.func @transform_0(%arg0: i32) -> (i32, i32, i32) {
    %c0_i32 = arith.constant 0 : i32
    %c0_i32_0 = arith.constant 0 : i32
    %c0_i32_1 = arith.constant 0 : i32
    %c0_i32_2 = arith.constant 0 : i32
    return %c0_i32, %c0_i32_0, %c0_i32_1 : i32, i32, i32
  }
  func.func @transform_1(%arg0: i32) -> (i32, i32, i32) {
    %c0_i32 = arith.constant 0 : i32
    %c0_i32_0 = arith.constant 0 : i32
    %c0_i32_1 = arith.constant 0 : i32
    %c0_i32_2 = arith.constant 0 : i32
    return %c0_i32, %c0_i32_0, %c0_i32_1 : i32, i32, i32
  }
  func.func @transform_2(%arg0: i32) -> (i32, i32, i32) {
    %c0_i32 = arith.constant 0 : i32
    %c0_i32_0 = arith.constant 0 : i32
    %c0_i32_1 = arith.constant 0 : i32
    %c0_i32_2 = arith.constant 0 : i32
    return %c0_i32, %c0_i32_0, %c0_i32_1 : i32, i32, i32
  }
}

module attributes {stable_mosaic.version = 11 : i64} {
  func.func @_pw_res_gelu_kernel(%arg0: i32, %arg1: memref<288x128xf32, #tpu.memory_space<vmem>>, %arg2: memref<288x128xf32, #tpu.memory_space<vmem>>, %arg3: memref<128x128xf32, #tpu.memory_space<vmem>>, %arg4: memref<1x128xf32, #tpu.memory_space<vmem>>, %arg5: memref<288x128xf32, #tpu.memory_space<vmem>>) attributes {dimension_semantics = [#tpu.dimension_semantics<parallel>], iteration_bounds = array<i64: 1>, scalar_prefetch = 0 : i64, scratch_operands = 0 : i64, tpu.core_type = #tpu.core_type<tc>, window_params = [{transform_indices = @transform_0, window_bounds = array<i64: 288, 128>}, {transform_indices = @transform_1, window_bounds = array<i64: 288, 128>}, {pipeline_mode = #tpu.pipeline_mode<synchronous>, transform_indices = @transform_2, window_bounds = array<i64: 128, 128>}, {pipeline_mode = #tpu.pipeline_mode<synchronous>, transform_indices = @transform_3, window_bounds = array<i64: 1, 128>}, {transform_indices = @transform_4, window_bounds = array<i64: 288, 128>}]} {
    %c0 = arith.constant 0 : index
    %c0_0 = arith.constant 0 : index
    %0 = vector.load %arg2[%c0, %c0_0] : memref<288x128xf32, #tpu.memory_space<vmem>>, vector<288x128xf32>
    %c0_1 = arith.constant 0 : index
    %c0_2 = arith.constant 0 : index
    %1 = vector.load %arg1[%c0_1, %c0_2] : memref<288x128xf32, #tpu.memory_space<vmem>>, vector<288x128xf32>
    %c0_3 = arith.constant 0 : index
    %c0_4 = arith.constant 0 : index
    %2 = vector.load %arg3[%c0_3, %c0_4] : memref<128x128xf32, #tpu.memory_space<vmem>>, vector<128x128xf32>
    %cst = arith.constant dense<0.000000e+00> : vector<288x128xf32>
    %3 = tpu.matmul %1, %2, %cst {dimension_numbers = #tpu.dot_dimension_numbers<[1], [0], [0], [1], [0, 0, 1, 1], [], []>} : vector<288x128xf32>, vector<128x128xf32>, vector<288x128xf32> -> vector<288x128xf32>
    %4 = arith.addf %0, %3 : vector<288x128xf32>
    %c0_5 = arith.constant 0 : index
    %c0_6 = arith.constant 0 : index
    %5 = vector.load %arg4[%c0_5, %c0_6] : memref<1x128xf32, #tpu.memory_space<vmem>>, vector<1x128xf32>
    %6 = vector.broadcast %5 : vector<1x128xf32> to vector<288x128xf32>
    %7 = arith.addf %4, %6 : vector<288x128xf32>
    %cst_7 = arith.constant 5.000000e-01 : f32
    %8 = vector.broadcast %cst_7 : f32 to vector<288x128xf32>
    %9 = arith.mulf %8, %7 : vector<288x128xf32>
    %cst_8 = arith.constant 4.471500e-02 : f32
    %10 = vector.broadcast %cst_8 : f32 to vector<288x128xf32>
    %11 = arith.mulf %10, %7 : vector<288x128xf32>
    %12 = arith.mulf %11, %7 : vector<288x128xf32>
    %13 = arith.mulf %12, %7 : vector<288x128xf32>
    %14 = arith.addf %7, %13 : vector<288x128xf32>
    %cst_9 = arith.constant 0.797884583 : f32
    %15 = vector.broadcast %cst_9 : f32 to vector<288x128xf32>
    %16 = arith.mulf %15, %14 : vector<288x128xf32>
    %17 = math.tanh %16 : vector<288x128xf32>
    %cst_10 = arith.constant 1.000000e+00 : f32
    %18 = vector.broadcast %cst_10 : f32 to vector<288x128xf32>
    %19 = arith.addf %18, %17 : vector<288x128xf32>
    %20 = arith.mulf %9, %19 : vector<288x128xf32>
    %c0_11 = arith.constant 0 : index
    %c0_12 = arith.constant 0 : index
    %21 = vector.load %arg5[%c0_11, %c0_12] : memref<288x128xf32, #tpu.memory_space<vmem>>, vector<288x128xf32>
    tpu.vector_store %arg5[%c0_11, %c0_12], %20 {strides = array<i32>} : memref<288x128xf32, #tpu.memory_space<vmem>>, vector<288x128xf32>,
    return
  }
  func.func @transform_0(%arg0: i32) -> (i32, i32) {
    %c0_i32 = arith.constant 0 : i32
    %c0_i32_0 = arith.constant 0 : i32
    return %arg0, %c0_i32 : i32, i32
  }
  func.func @transform_1(%arg0: i32) -> (i32, i32) {
    %c0_i32 = arith.constant 0 : i32
    %c0_i32_0 = arith.constant 0 : i32
    return %arg0, %c0_i32 : i32, i32
  }
  func.func @transform_2(%arg0: i32) -> (i32, i32) {
    %c0_i32 = arith.constant 0 : i32
    %c0_i32_0 = arith.constant 0 : i32
    %c0_i32_1 = arith.constant 0 : i32
    return %c0_i32, %c0_i32_0 : i32, i32
  }
  func.func @transform_3(%arg0: i32) -> (i32, i32) {
    %c0_i32 = arith.constant 0 : i32
    %c0_i32_0 = arith.constant 0 : i32
    %c0_i32_1 = arith.constant 0 : i32
    return %c0_i32, %c0_i32_0 : i32, i32
  }
  func.func @transform_4(%arg0: i32) -> (i32, i32) {
    %c0_i32 = arith.constant 0 : i32
    %c0_i32_0 = arith.constant 0 : i32
    return %arg0, %c0_i32 : i32, i32
  }
}

module attributes {stable_mosaic.version = 11 : i64} {
  func.func @_pw_kernel(%arg0: i32, %arg1: memref<128x128xf32, #tpu.memory_space<vmem>>, %arg2: memref<128x8xf32, #tpu.memory_space<vmem>>, %arg3: memref<1x8xf32, #tpu.memory_space<vmem>>, %arg4: memref<128x8xf32, #tpu.memory_space<vmem>>) attributes {dimension_semantics = [#tpu.dimension_semantics<parallel>], iteration_bounds = array<i64: 1>, scalar_prefetch = 0 : i64, scratch_operands = 0 : i64, tpu.core_type = #tpu.core_type<tc>, window_params = [{transform_indices = @transform_0, window_bounds = array<i64: 128, 128>}, {pipeline_mode = #tpu.pipeline_mode<synchronous>, transform_indices = @transform_1, window_bounds = array<i64: 128, 8>}, {pipeline_mode = #tpu.pipeline_mode<synchronous>, transform_indices = @transform_2, window_bounds = array<i64: 1, 8>}, {transform_indices = @transform_3, window_bounds = array<i64: 128, 8>}]} {
    %c0 = arith.constant 0 : index
    %c0_0 = arith.constant 0 : index
    %0 = vector.load %arg1[%c0, %c0_0] : memref<128x128xf32, #tpu.memory_space<vmem>>, vector<128x128xf32>
    %c0_1 = arith.constant 0 : index
    %c0_2 = arith.constant 0 : index
    %1 = vector.load %arg2[%c0_1, %c0_2] : memref<128x8xf32, #tpu.memory_space<vmem>>, vector<128x8xf32>
    %cst = arith.constant dense<0.000000e+00> : vector<128x8xf32>
    %2 = tpu.matmul %0, %1, %cst {dimension_numbers = #tpu.dot_dimension_numbers<[1], [0], [0], [1], [0, 0, 1, 1], [], []>} : vector<128x128xf32>, vector<128x8xf32>, vector<128x8xf32> -> vector<128x8xf32>
    %c0_3 = arith.constant 0 : index
    %c0_4 = arith.constant 0 : index
    %3 = vector.load %arg3[%c0_3, %c0_4] : memref<1x8xf32, #tpu.memory_space<vmem>>, vector<1x8xf32>
    %4 = vector.broadcast %3 : vector<1x8xf32> to vector<128x8xf32>
    %5 = arith.addf %2, %4 : vector<128x8xf32>
    %c0_5 = arith.constant 0 : index
    %c0_6 = arith.constant 0 : index
    %6 = vector.load %arg4[%c0_5, %c0_6] : memref<128x8xf32, #tpu.memory_space<vmem>>, vector<128x8xf32>
    tpu.vector_store %arg4[%c0_5, %c0_6], %5 {strides = array<i32>} : memref<128x8xf32, #tpu.memory_space<vmem>>, vector<128x8xf32>,
    return
  }
  func.func @transform_0(%arg0: i32) -> (i32, i32) {
    %c0_i32 = arith.constant 0 : i32
    %c0_i32_0 = arith.constant 0 : i32
    return %arg0, %c0_i32 : i32, i32
  }
  func.func @transform_1(%arg0: i32) -> (i32, i32) {
    %c0_i32 = arith.constant 0 : i32
    %c0_i32_0 = arith.constant 0 : i32
    %c0_i32_1 = arith.constant 0 : i32
    return %c0_i32, %c0_i32_0 : i32, i32
  }
  func.func @transform_2(%arg0: i32) -> (i32, i32) {
    %c0_i32 = arith.constant 0 : i32
    %c0_i32_0 = arith.constant 0 : i32
    %c0_i32_1 = arith.constant 0 : i32
    return %c0_i32, %c0_i32_0 : i32, i32
  }
  func.func @transform_3(%arg0: i32) -> (i32, i32) {
    %c0_i32 = arith.constant 0 : i32
    %c0_i32_0 = arith.constant 0 : i32
    return %arg0, %c0_i32 : i32, i32
  }
}

</mosaic_0001>

<bundles_post_ra>
// kernel: fno_forward.6
= control target key start
LH: loop header
LB: loop body
LE: loop exit
PB: predicated region body
PF: predicated region fallthrough
CT: control target
= control target key end

     0   :  { %8 = vsyncpa [#allocation3], 0  ;;  %s1434_s0 = inlined_call_operand.vmem [shape: f32[128,4], index: 0, kind: input, shape index: {}]   ;;  %s1435_s1 = inlined_call_operand.hbm [shape: f32[1,32], index: 1, kind: input, shape index: {}]   ;;  %s1436_s2 = inlined_call_operand.hbm [shape: f32[1,32], index: 2, kind: input, shape index: {}]   ;;  %s1437_s3 = inlined_call_operand.vmem [shape: f32[128,128], index: 3, kind: output, shape index: {}]  }
   0x1   :  { %9 = vsyncpa [#allocation5], 0  ;;  %s801_s12 = smov [#allocation2]   ;;  %s802_s14 = smov [#allocation4]  }
   0x2   :  { %s18_s13 = sshll.u32 %s801_s12, 4  ;;  %s28_s15 = sshll.u32 %s802_s14, 4  ;;  %s19_s13 = int_to_ptr.vmem [resolvable:$true] %s18_s13  ;;  %s29_s15 = int_to_ptr.vmem [resolvable:$true] %s28_s15 }
   0x3   :  { %s753_s18 = scalar_lea.hbm %s1435_s1, 16 }
   0x4   :  { %p754_p0 = scmp.ne.s32.totalorder %s1435_s1, %s753_s18  ;;  %p757_p1 = scmp.lt.u32.totalorder %s753_s18, %s1435_s1 }
   0x6   :  { %p759_p2 = pnand %p757_p1, %p754_p0 }
   0x8   :  { %762 = shalt.err (!%p759_p2)
}
   0x9   :  { %s763_s23 = scalar_lea.vmem %s19_s13, 16  ;;  %s767_s24 = scalar_lea.vmem %s19_s13, 32 }
   0xa   :  { %p764_p3 = scmp.ne.s32.totalorder %s19_s13, %s763_s23  ;;  %p768_p4 = scmp.lt.s32.totalorder %s19_s13, %s19_s13 }
   0xb   :  { %p769_p5 = scmp.lt.s32.totalorder %s767_s24, %s763_s23 }
   0xd   :  { %p770_p6 = por %p769_p5, %p768_p4 }
   0xf   :  { %p771_p7 = pnand %p770_p6, %p764_p3 }
  0x11   :  { %774 = shalt.err (!%p771_p7)
}
  0x12   :  { %21 = dma.hbm_to_vmem [thread:$0]  %s1435_s1, 16, %s19_s13, [#allocation3]  }
  0x13   :  { %s775_s29 = scalar_lea.hbm %s1436_s2, 16 }
  0x14   :  { %p776_p8 = scmp.ne.s32.totalorder %s1436_s2, %s775_s29  ;;  %p779_p9 = scmp.lt.u32.totalorder %s775_s29, %s1436_s2 }
  0x16   :  { %p781_p10 = pnand %p779_p9, %p776_p8 }
  0x18   :  { %784 = shalt.err (!%p781_p10)
}
  0x19   :  { %s785_s7 = scalar_lea.vmem %s29_s15, 16  ;;  %s789_s8 = scalar_lea.vmem %s29_s15, 32 }
  0x1a   :  { %p786_p11 = scmp.ne.s32.totalorder %s29_s15, %s785_s7  ;;  %p790_p12 = scmp.lt.s32.totalorder %s29_s15, %s29_s15 }
  0x1b   :  { %p791_p13 = scmp.lt.s32.totalorder %s789_s8, %s785_s7 }
  0x1d   :  { %p792_p0 = por %p791_p13, %p790_p12 }
  0x1f   :  { %p793_p1 = pnand %p792_p0, %p786_p11 }
  0x21   :  { %796 = shalt.err (!%p793_p1)
}
  0x22   :  { %31 = dma.hbm_to_vmem [thread:$0]  %s1436_s2, 16, %s29_s15, [#allocation5]  }
  0x23   :  { %797 = dma.done.wait [#allocation3], 16  }
  0x24   :  { %798 = vsyncadd [#allocation3], 4294967280 }
  0x25   :  { %799 = dma.done.wait [#allocation5], 16  }
  0x26   :  { %800 = vsyncadd [#allocation5], 4294967280  ;;  %v803_v0 = vmov 0   ;;  %v857_v1 = vld [vmem:[%s1434_s0 + $0x10] sm:$0xff]  ;;  %v862_v2 = vld [vmem:[%s1434_s0] sm:$0xff]  ;;  %v804_v17 = vmov 1  }
  0x27   :  { %746 = vset.pattern.permute.xlu1 %v803_v0  ;;  %745 = vset.pattern.permute.xlu0 %v803_v0  ;;  %v869_v3 = vld [vmem:[%s1434_s0 + $0x18] sm:$0xff]  ;;  %v874_v4 = vld [vmem:[%s1434_s0 + $0x8] sm:$0xff]  ;;  %v886_v6 = vld [vmem:[%s1434_s0 + $0x20] sm:$0xff]  ;;  %v805_v18 = vmov 2   ;;  %v806_v19 = vmov 3   ;;  %vm180_vm0 = vcmask 261120  }
  0x28   :  { %68 = vperm.xlu1 %746, %v857_v1   ;;  %58 = vperm.xlu0 %745, %v862_v2   ;;  %v881_v5 = vld [vmem:[%s1434_s0 + $0x28] sm:$0xff]  ;;  %v893_v7 = vld [vmem:[%s1434_s0 + $0x38] sm:$0xff]  ;;  %v898_v8 = vld [vmem:[%s1434_s0 + $0x30] sm:$0xff]  ;;  %s807_s2 = smov 32   ;;  %s808_s14 = smov 64   ;;  %vm357_vm1 = vcmask 523520  }
  0x29   :  { %v905_v9 = vld [vmem:[%s1434_s0 + $0x48] sm:$0xff]  ;;  %v910_v10 = vld [vmem:[%s1434_s0 + $0x40] sm:$0xff]  ;;  %v917_v11 = vld [vmem:[%s1434_s0 + $0x58] sm:$0xff]  ;;  %s809_s15 = smov 96   ;;  %vm534_vm2 = vcmask 785920   ;;  %vm711_vm3 = vcmask 1048320  }
  0x2a   :  { %v922_v12 = vld [vmem:[%s1434_s0 + $0x50] sm:$0xff]  ;;  %v929_v13 = vld [vmem:[%s1434_s0 + $0x68] sm:$0xff]  ;;  %v934_v14 = vld [vmem:[%s1434_s0 + $0x60] sm:$0xff] }
  0x2b   :  { %v941_v15 = vld [vmem:[%s1434_s0 + $0x78] sm:$0xff]  ;;  %v946_v16 = vld [vmem:[%s1434_s0 + $0x70] sm:$0xff]  ;;  %v986_v20 = vld [vmem:[#allocation2] ss:$0 sm:$0xff] }
  0x2c   :  { %73 = vperm.xlu1 %746, %v869_v3   ;;  %63 = vperm.xlu0 %745, %v874_v4   ;;  %v988_v21 = vld [vmem:[#allocation4] ss:$0 sm:$0xff] }
  0x30   :  { %83 = vperm.xlu1 %746, %v881_v5   ;;  %78 = vperm.xlu0 %745, %v886_v6  }
  0x34   :  { %93 = vperm.xlu1 %746, %v893_v7   ;;  %88 = vperm.xlu0 %745, %v898_v8  }
  0x38   :  { %103 = vperm.xlu1 %746, %v905_v9   ;;  %98 = vperm.xlu0 %745, %v910_v10  }
  0x3c   :  { %113 = vperm.xlu1 %746, %v917_v11   ;;  %108 = vperm.xlu0 %745, %v922_v12  }
  0x40   :  { %123 = vperm.xlu1 %746, %v929_v13   ;;  %118 = vperm.xlu0 %745, %v934_v14  }
  0x44   :  { %133 = vperm.xlu1 %746, %v941_v15   ;;  %128 = vperm.xlu0 %745, %v946_v16  }
  0x48   :  { %748 = vset.pattern.permute.xlu1 %v804_v17  ;;  %747 = vset.pattern.permute.xlu0 %v804_v17 }
  0x49   :  { %202 = vperm.xlu1 %748, %v874_v4   ;;  %198 = vperm.xlu0 %747, %v862_v2  }
  0x4d   :  { %206 = vperm.xlu1 %748, %v857_v1   ;;  %210 = vperm.xlu0 %747, %v869_v3  }
  0x51   :  { %214 = vperm.xlu1 %748, %v886_v6   ;;  %218 = vperm.xlu0 %747, %v881_v5  }
  0x55   :  { %222 = vperm.xlu1 %748, %v898_v8   ;;  %226 = vperm.xlu0 %747, %v893_v7  }
  0x59   :  { %230 = vperm.xlu1 %748, %v910_v10   ;;  %234 = vperm.xlu0 %747, %v905_v9  }
  0x5d   :  { %238 = vperm.xlu1 %748, %v922_v12   ;;  %242 = vperm.xlu0 %747, %v917_v11  }
  0x61   :  { %246 = vperm.xlu1 %748, %v934_v14   ;;  %250 = vperm.xlu0 %747, %v929_v13  }
  0x65   :  { %254 = vperm.xlu1 %748, %v946_v16   ;;  %258 = vperm.xlu0 %747, %v941_v15  }
  0x69   :  { %749 = vset.pattern.permute.xlu1 %v805_v18  ;;  %750 = vset.pattern.permute.xlu0 %v805_v18 }
  0x6a   :  { %375 = vperm.xlu1 %749, %v862_v2   ;;  %379 = vperm.xlu0 %750, %v874_v4  }
  0x6e   :  { %383 = vperm.xlu1 %749, %v857_v1   ;;  %391 = vperm.xlu0 %750, %v886_v6  }
  0x72   :  { %387 = vperm.xlu1 %749, %v869_v3   ;;  %399 = vperm.xlu0 %750, %v898_v8  }
  0x76   :  { %395 = vperm.xlu1 %749, %v881_v5   ;;  %407 = vperm.xlu0 %750, %v910_v10  }
  0x7a   :  { %403 = vperm.xlu1 %749, %v893_v7   ;;  %415 = vperm.xlu0 %750, %v922_v12  }
  0x7e   :  { %411 = vperm.xlu1 %749, %v905_v9   ;;  %423 = vperm.xlu0 %750, %v934_v14  }
  0x82   :  { %419 = vperm.xlu1 %749, %v917_v11   ;;  %431 = vperm.xlu0 %750, %v946_v16  }
  0x86   :  { %427 = vperm.xlu1 %749, %v929_v13   ;;  %752 = vset.pattern.permute.xlu0 %v806_v19 }
  0x87   :  { %556 = vperm.xlu0 %752, %v874_v4  }
  0x8a   :  { %435 = vperm.xlu1 %749, %v941_v15  }
  0x8e   :  { %751 = vset.pattern.permute.xlu1 %v806_v19 }
  0x8f   :  { %552 = vperm.xlu1 %751, %v862_v2  }
  0x93   :  { %560 = vperm.xlu1 %751, %v857_v1  }
  0x97   :  { %564 = vperm.xlu1 %751, %v869_v3  }
  0xa7   :  { %v69_v22 = vpop.permute.xlu1 %68  ;;  %v59_v23 = vpop.permute.xlu0 %58 }
  0xa8   :  { %v144_v24 = vmul.f32 %v986_v20, %v69_v22  ;;  %v142_v25 = vmul.f32 %v986_v20, %v59_v23 }
  0xaa   :  { %v166_v26 = vadd.f32 %v988_v21, %v144_v24  ;;  %v164_v27 = vadd.f32 %v988_v21, %v142_v25 }
  0xab   :  { %v74_v28 = vpop.permute.xlu1 %73  ;;  %v64_v29 = vpop.permute.xlu0 %63 }
  0xac   :  { %v145_v30 = vmul.f32 %v986_v20, %v74_v28  ;;  %v143_v31 = vmul.f32 %v986_v20, %v64_v29  ;;  %181 = vst.msk [vmem:[%s1437_s3] sm:$0xff] %vm180_vm0, %v164_v27  ;;  %183 = vst.msk [vmem:[%s1437_s3 + $0x10] sm:$0xff] %vm180_vm0, %v166_v26 }
  0xae   :  { %v167_v32 = vadd.f32 %v988_v21, %v145_v30  ;;  %v165_v33 = vadd.f32 %v988_v21, %v143_v31 }
  0xaf   :  { %v84_v34 = vpop.permute.xlu1 %83  ;;  %v79_v35 = vpop.permute.xlu0 %78 }
  0xb0   :  { %v147_v36 = vmul.f32 %v986_v20, %v84_v34  ;;  %v146_v37 = vmul.f32 %v986_v20, %v79_v35  ;;  %182 = vst.msk [vmem:[%s1437_s3 + $0x8] sm:$0xff] %vm180_vm0, %v165_v33  ;;  %184 = vst.msk [vmem:[%s1437_s3 + $0x18] sm:$0xff] %vm180_vm0, %v167_v32 }
  0xb2   :  { %v169_v38 = vadd.f32 %v988_v21, %v147_v36  ;;  %v168_v39 = vadd.f32 %v988_v21, %v146_v37 }
  0xb3   :  { %v94_v40 = vpop.permute.xlu1 %93  ;;  %v89_v41 = vpop.permute.xlu0 %88 }
  0xb4   :  { %v149_v42 = vmul.f32 %v986_v20, %v94_v40  ;;  %v148_v43 = vmul.f32 %v986_v20, %v89_v41  ;;  %185 = vst.msk [vmem:[%s1437_s3 + $0x20] sm:$0xff] %vm180_vm0, %v168_v39  ;;  %186 = vst.msk [vmem:[%s1437_s3 + $0x28] sm:$0xff] %vm180_vm0, %v169_v38 }
  0xb6   :  { %v171_v44 = vadd.f32 %v988_v21, %v149_v42  ;;  %v170_v45 = vadd.f32 %v988_v21, %v148_v43 }
  0xb7   :  { %v104_v46 = vpop.permute.xlu1 %103  ;;  %v99_v47 = vpop.permute.xlu0 %98 }
  0xb8   :  { %v151_v48 = vmul.f32 %v986_v20, %v104_v46  ;;  %v150_v49 = vmul.f32 %v986_v20, %v99_v47  ;;  %187 = vst.msk [vmem:[%s1437_s3 + $0x30] sm:$0xff] %vm180_vm0, %v170_v45  ;;  %188 = vst.msk [vmem:[%s1437_s3 + $0x38] sm:$0xff] %vm180_vm0, %v171_v44 }
  0xba   :  { %v173_v50 = vadd.f32 %v988_v21, %v151_v48  ;;  %v172_v51 = vadd.f32 %v988_v21, %v150_v49 }
  0xbb   :  { %v114_v52 = vpop.permute.xlu1 %113  ;;  %v109_v53 = vpop.permute.xlu0 %108 }
  0xbc   :  { %v153_v54 = vmul.f32 %v986_v20, %v114_v52  ;;  %v152_v55 = vmul.f32 %v986_v20, %v109_v53  ;;  %189 = vst.msk [vmem:[%s1437_s3 + $0x40] sm:$0xff] %vm180_vm0, %v172_v51  ;;  %190 = vst.msk [vmem:[%s1437_s3 + $0x48] sm:$0xff] %vm180_vm0, %v173_v50 }
  0xbe   :  { %v175_v56 = vadd.f32 %v988_v21, %v153_v54  ;;  %v174_v57 = vadd.f32 %v988_v21, %v152_v55 }
  0xbf   :  { %v124_v58 = vpop.permute.xlu1 %123  ;;  %v119_v59 = vpop.permute.xlu0 %118 }
  0xc0   :  { %v155_v60 = vmul.f32 %v986_v20, %v124_v58  ;;  %v154_v61 = vmul.f32 %v986_v20, %v119_v59  ;;  %191 = vst.msk [vmem:[%s1437_s3 + $0x50] sm:$0xff] %vm180_vm0, %v174_v57  ;;  %192 = vst.msk [vmem:[%s1437_s3 + $0x58] sm:$0xff] %vm180_vm0, %v175_v56 }
  0xc2   :  { %v177_v62 = vadd.f32 %v988_v21, %v155_v60  ;;  %v176_v63 = vadd.f32 %v988_v21, %v154_v61 }
  0xc3   :  { %v134_v0 = vpop.permute.xlu1 %133  ;;  %v129_v1 = vpop.permute.xlu0 %128 }
  0xc4   :  { %193 = vst.msk [vmem:[%s1437_s3 + $0x60] sm:$0xff] %vm180_vm0, %v176_v63  ;;  %194 = vst.msk [vmem:[%s1437_s3 + $0x68] sm:$0xff] %vm180_vm0, %v177_v62  ;;  %v157_v2 = vmul.f32 %v986_v20, %v134_v0  ;;  %v156_v3 = vmul.f32 %v986_v20, %v129_v1 }
  0xc6   :  { %v179_v4 = vadd.f32 %v988_v21, %v157_v2  ;;  %v178_v17 = vadd.f32 %v988_v21, %v156_v3 }
  0xc8   :  { %196 = vst.msk [vmem:[%s1437_s3 + $0x78] sm:$0xff] %vm180_vm0, %v179_v4  ;;  %195 = vst.msk [vmem:[%s1437_s3 + $0x70] sm:$0xff] %vm180_vm0, %v178_v17  ;;  %v203_v18 = vpop.permute.xlu1 %202  ;;  %v199_v19 = vpop.permute.xlu0 %198 }
  0xc9   :  { %v262_v22 = vmul.f32 %v986_v20, %v203_v18  ;;  %v261_v23 = vmul.f32 %v986_v20, %v199_v19 }
  0xcb   :  { %v278_v24 = vadd.f32 %v988_v21, %v262_v22  ;;  %v277_v25 = vadd.f32 %v988_v21, %v261_v23 }
  0xcc   :  { %v207_v26 = vpop.permute.xlu1 %206  ;;  %v211_v27 = vpop.permute.xlu0 %210 }
  0xcd   :  { %v263_v28 = vmul.f32 %v986_v20, %v207_v26  ;;  %v264_v29 = vmul.f32 %v986_v20, %v211_v27  ;;  %311 = vrot.lane.b32.xlu0 %v278_v24, %s807_s2  ;;  %309 = vrot.lane.b32.xlu1 %v277_v25, %s807_s2 }
  0xcf   :  { %v279_v30 = vadd.f32 %v988_v21, %v263_v28  ;;  %v280_v31 = vadd.f32 %v988_v21, %v264_v29 }
  0xd0   :  { %v215_v32 = vpop.permute.xlu1 %214  ;;  %v219_v33 = vpop.permute.xlu0 %218 }
  0xd1   :  { %v265_v34 = vmul.f32 %v986_v20, %v215_v32  ;;  %v266_v35 = vmul.f32 %v986_v20, %v219_v33  ;;  %313 = vrot.lane.b32.xlu1 %v279_v30, %s807_s2  ;;  %315 = vrot.lane.b32.xlu0 %v280_v31, %s807_s2 }
  0xd3   :  { %v281_v36 = vadd.f32 %v988_v21, %v265_v34  ;;  %v282_v37 = vadd.f32 %v988_v21, %v266_v35 }
  0xd4   :  { %v223_v38 = vpop.permute.xlu1 %222  ;;  %v227_v39 = vpop.permute.xlu0 %226 }
  0xd5   :  { %v267_v40 = vmul.f32 %v986_v20, %v223_v38  ;;  %v268_v41 = vmul.f32 %v986_v20, %v227_v39  ;;  %317 = vrot.lane.b32.xlu1 %v281_v36, %s807_s2  ;;  %319 = vrot.lane.b32.xlu0 %v282_v37, %s807_s2 }
  0xd7   :  { %v283_v42 = vadd.f32 %v988_v21, %v267_v40  ;;  %v284_v43 = vadd.f32 %v988_v21, %v268_v41 }
  0xd8   :  { %v231_v44 = vpop.permute.xlu1 %230  ;;  %v235_v45 = vpop.permute.xlu0 %234 }
  0xd9   :  { %v269_v46 = vmul.f32 %v986_v20, %v231_v44  ;;  %v270_v47 = vmul.f32 %v986_v20, %v235_v45  ;;  %321 = vrot.lane.b32.xlu1 %v283_v42, %s807_s2  ;;  %323 = vrot.lane.b32.xlu0 %v284_v43, %s807_s2 }
  0xdb   :  { %v285_v48 = vadd.f32 %v988_v21, %v269_v46  ;;  %v286_v49 = vadd.f32 %v988_v21, %v270_v47 }
  0xdc   :  { %v239_v50 = vpop.permute.xlu1 %238  ;;  %v243_v51 = vpop.permute.xlu0 %242 }
  0xdd   :  { %v271_v52 = vmul.f32 %v986_v20, %v239_v50  ;;  %v272_v53 = vmul.f32 %v986_v20, %v243_v51  ;;  %325 = vrot.lane.b32.xlu1 %v285_v48, %s807_s2  ;;  %327 = vrot.lane.b32.xlu0 %v286_v49, %s807_s2 }
  0xdf   :  { %v287_v54 = vadd.f32 %v988_v21, %v271_v52  ;;  %v288_v55 = vadd.f32 %v988_v21, %v272_v53 }
  0xe0   :  { %v247_v56 = vpop.permute.xlu1 %246  ;;  %v251_v57 = vpop.permute.xlu0 %250 }
  0xe1   :  { %v273_v58 = vmul.f32 %v986_v20, %v247_v56  ;;  %v274_v59 = vmul.f32 %v986_v20, %v251_v57  ;;  %329 = vrot.lane.b32.xlu1 %v287_v54, %s807_s2  ;;  %331 = vrot.lane.b32.xlu0 %v288_v55, %s807_s2 }
  0xe3   :  { %v289_v60 = vadd.f32 %v988_v21, %v273_v58  ;;  %v290_v61 = vadd.f32 %v988_v21, %v274_v59 }
  0xe4   :  { %v255_v62 = vpop.permute.xlu1 %254  ;;  %v259_v63 = vpop.permute.xlu0 %258 }
  0xe5   :  { %v275_v0 = vmul.f32 %v986_v20, %v255_v62  ;;  %v276_v1 = vmul.f32 %v986_v20, %v259_v63  ;;  %333 = vrot.lane.b32.xlu1 %v289_v60, %s807_s2  ;;  %335 = vrot.lane.b32.xlu0 %v290_v61, %s807_s2 }
  0xe7   :  { %v291_v2 = vadd.f32 %v988_v21, %v275_v0  ;;  %v292_v3 = vadd.f32 %v988_v21, %v276_v1 }
  0xe9   :  { %v376_v4 = vpop.permute.xlu1 %375  ;;  %337 = vrot.lane.b32.xlu1 %v291_v2, %s807_s2  ;;  %339 = vrot.lane.b32.xlu0 %v292_v3, %s807_s2  ;;  %v380_v22 = vpop.permute.xlu0 %379 }
  0xea   :  { %v438_v17 = vmul.f32 %v986_v20, %v376_v4 }
  0xec   :  { %v454_v18 = vadd.f32 %v988_v21, %v438_v17 }
  0xed   :  { %v384_v19 = vpop.permute.xlu1 %383  ;;  %572 = vperm.xlu1 %751, %v881_v5   ;;  %v392_v24 = vpop.permute.xlu0 %391 }
  0xee   :  { %486 = vrot.lane.b32.xlu0 %v454_v18, %s808_s14 }
  0xf1   :  { %v388_v23 = vpop.permute.xlu1 %387  ;;  %580 = vperm.xlu1 %751, %v893_v7   ;;  %v400_v5 = vpop.permute.xlu0 %399  ;;  %v440_v7 = vmul.f32 %v986_v20, %v384_v19 }
  0xf2   :  { %568 = vperm.xlu0 %752, %v886_v6   ;;  %v441_v29 = vmul.f32 %v986_v20, %v388_v23 }
  0xf4   :  { %v457_v31 = vadd.f32 %v988_v21, %v441_v29 }
  0xf5   :  { %v396_v25 = vpop.permute.xlu1 %395  ;;  %588 = vperm.xlu1 %751, %v905_v9   ;;  %v408_v6 = vpop.permute.xlu0 %407  ;;  %v442_v9 = vmul.f32 %v986_v20, %v392_v24 }
  0xf6   :  { %576 = vperm.xlu0 %752, %v898_v8   ;;  %v439_v8 = vmul.f32 %v986_v20, %v380_v22  ;;  %v446_v30 = vmul.f32 %v986_v20, %v408_v6  ;;  %v443_v32 = vmul.f32 %v986_v20, %v396_v25 }
  0xf8   :  { %v455_v28 = vadd.f32 %v988_v21, %v439_v8  ;;  %v462_v35 = vadd.f32 %v988_v21, %v446_v30  ;;  %v459_v36 = vadd.f32 %v988_v21, %v443_v32 }
  0xf9   :  { %596 = vperm.xlu1 %751, %v917_v11   ;;  %v404_v26 = vpop.permute.xlu1 %403  ;;  %v456_v11 = vadd.f32 %v988_v21, %v440_v7 }
  0xfa   :  { %584 = vperm.xlu0 %752, %v910_v10   ;;  %v458_v10 = vadd.f32 %v988_v21, %v442_v9  ;;  %v445_v37 = vmul.f32 %v986_v20, %v404_v26 }
  0xfc   :  { %v461_v42 = vadd.f32 %v988_v21, %v445_v37 }
  0xfd   :  { %604 = vperm.xlu1 %751, %v929_v13   ;;  %v412_v27 = vpop.permute.xlu1 %411 }
  0xfe   :  { %592 = vperm.xlu0 %752, %v922_v12   ;;  %v444_v12 = vmul.f32 %v986_v20, %v400_v5  ;;  %v447_v43 = vmul.f32 %v986_v20, %v412_v27 }
 0x100   :  { %v463_v47 = vadd.f32 %v988_v21, %v447_v43 }
 0x101   :  { %612 = vperm.xlu1 %751, %v941_v15   ;;  %v420_v13 = vpop.permute.xlu1 %419  ;;  %v416_v15 = vpop.permute.xlu0 %415 }
 0x102   :  { %600 = vperm.xlu0 %752, %v934_v14   ;;  %v460_v14 = vadd.f32 %v988_v21, %v444_v12  ;;  %v449_v48 = vmul.f32 %v986_v20, %v420_v13 }
 0x104   :  { %v465_v51 = vadd.f32 %v988_v21, %v449_v48 }
 0x105   :  { %490 = vrot.lane.b32.xlu1 %v456_v11, %s808_s14  ;;  %v428_v33 = vpop.permute.xlu1 %427  ;;  %v424_v34 = vpop.permute.xlu0 %423 }
 0x106   :  { %608 = vperm.xlu0 %752, %v946_v16   ;;  %v448_v16 = vmul.f32 %v986_v20, %v416_v15  ;;  %v450_v39 = vmul.f32 %v986_v20, %v424_v34  ;;  %v451_v52 = vmul.f32 %v986_v20, %v428_v33 }
 0x108   :  { %v464_v38 = vadd.f32 %v988_v21, %v448_v16  ;;  %v466_v44 = vadd.f32 %v988_v21, %v450_v39  ;;  %v467_v56 = vadd.f32 %v988_v21, %v451_v52 }
 0x109   :  { %494 = vrot.lane.b32.xlu1 %v458_v10, %s808_s14  ;;  %v436_v40 = vpop.permute.xlu1 %435  ;;  %v432_v41 = vpop.permute.xlu0 %431 }
 0x10a   :  { %488 = vrot.lane.b32.xlu0 %v455_v28, %s808_s14  ;;  %v452_v45 = vmul.f32 %v986_v20, %v432_v41  ;;  %v453_v57 = vmul.f32 %v986_v20, %v436_v40 }
 0x10c   :  { %v468_v49 = vadd.f32 %v988_v21, %v452_v45  ;;  %v469_v61 = vadd.f32 %v988_v21, %v453_v57 }
 0x10d   :  { %498 = vrot.lane.b32.xlu1 %v460_v14, %s808_s14  ;;  %v557_v59 = vpop.permute.xlu0 %556 }
 0x10e   :  { %492 = vrot.lane.b32.xlu0 %v457_v31, %s808_s14  ;;  %v553_v46 = vpop.permute.xlu1 %552  ;;  %v616_v60 = vmul.f32 %v986_v20, %v557_v59 }
 0x10f   :  { %v615_v50 = vmul.f32 %v986_v20, %v553_v46 }
 0x110   :  { %v632_v0 = vadd.f32 %v988_v21, %v616_v60 }
 0x111   :  { %502 = vrot.lane.b32.xlu1 %v462_v35, %s808_s14  ;;  %v631_v54 = vadd.f32 %v988_v21, %v615_v50 }
 0x112   :  { %496 = vrot.lane.b32.xlu0 %v459_v36, %s808_s14  ;;  %v561_v53 = vpop.permute.xlu1 %560 }
 0x113   :  { %v617_v55 = vmul.f32 %v986_v20, %v561_v53 }
 0x115   :  { %506 = vrot.lane.b32.xlu1 %v464_v38, %s808_s14  ;;  %v633_v58 = vadd.f32 %v988_v21, %v617_v55 }
 0x116   :  { %500 = vrot.lane.b32.xlu0 %v461_v42, %s808_s14  ;;  %v565_v62 = vpop.permute.xlu1 %564 }
 0x117   :  { %v618_v63 = vmul.f32 %v986_v20, %v565_v62 }
 0x119   :  { %510 = vrot.lane.b32.xlu1 %v466_v44, %s808_s14  ;;  %v634_v1 = vadd.f32 %v988_v21, %v618_v63 }
 0x11a   :  { %504 = vrot.lane.b32.xlu0 %v463_v47, %s808_s14 }
 0x11d   :  { %514 = vrot.lane.b32.xlu1 %v468_v49, %s808_s14 }
 0x11e   :  { %508 = vrot.lane.b32.xlu0 %v465_v51, %s808_s14 }
 0x121   :  { %663 = vrot.lane.b32.xlu1 %v631_v54, %s809_s15 }
 0x122   :  { %512 = vrot.lane.b32.xlu0 %v467_v56, %s808_s14 }
 0x125   :  { %667 = vrot.lane.b32.xlu1 %v633_v58, %s809_s15 }
 0x126   :  { %516 = vrot.lane.b32.xlu0 %v469_v61, %s808_s14 }
 0x12a   :  { %665 = vrot.lane.b32.xlu0 %v632_v0, %s809_s15 }
 0x12e   :  { %669 = vrot.lane.b32.xlu0 %v634_v1, %s809_s15 }
 0x13f   :  { %v310_v2 = vpop.permute.xlu1 %309  ;;  %v312_v3 = vpop.permute.xlu0 %311 }
 0x140   :  { %358 = vst.msk [vmem:[%s1437_s3] sm:$0xff] %vm357_vm1, %v310_v2  ;;  %359 = vst.msk [vmem:[%s1437_s3 + $0x8] sm:$0xff] %vm357_vm1, %v312_v3 }
 0x143   :  { %v314_v4 = vpop.permute.xlu1 %313  ;;  %v316_v17 = vpop.permute.xlu0 %315 }
 0x144   :  { %360 = vst.msk [vmem:[%s1437_s3 + $0x10] sm:$0xff] %vm357_vm1, %v314_v4  ;;  %361 = vst.msk [vmem:[%s1437_s3 + $0x18] sm:$0xff] %vm357_vm1, %v316_v17 }
 0x147   :  { %v318_v18 = vpop.permute.xlu1 %317  ;;  %v320_v19 = vpop.permute.xlu0 %319 }
 0x148   :  { %362 = vst.msk [vmem:[%s1437_s3 + $0x20] sm:$0xff] %vm357_vm1, %v318_v18  ;;  %363 = vst.msk [vmem:[%s1437_s3 + $0x28] sm:$0xff] %vm357_vm1, %v320_v19 }
 0x14b   :  { %v322_v22 = vpop.permute.xlu1 %321  ;;  %v324_v23 = vpop.permute.xlu0 %323 }
 0x14c   :  { %364 = vst.msk [vmem:[%s1437_s3 + $0x30] sm:$0xff] %vm357_vm1, %v322_v22  ;;  %365 = vst.msk [vmem:[%s1437_s3 + $0x38] sm:$0xff] %vm357_vm1, %v324_v23 }
 0x14f   :  { %v326_v24 = vpop.permute.xlu1 %325  ;;  %v328_v25 = vpop.permute.xlu0 %327 }
 0x150   :  { %366 = vst.msk [vmem:[%s1437_s3 + $0x40] sm:$0xff] %vm357_vm1, %v326_v24  ;;  %367 = vst.msk [vmem:[%s1437_s3 + $0x48] sm:$0xff] %vm357_vm1, %v328_v25 }
 0x153   :  { %v330_v26 = vpop.permute.xlu1 %329  ;;  %v332_v5 = vpop.permute.xlu0 %331 }
 0x154   :  { %368 = vst.msk [vmem:[%s1437_s3 + $0x50] sm:$0xff] %vm357_vm1, %v330_v26  ;;  %369 = vst.msk [vmem:[%s1437_s3 + $0x58] sm:$0xff] %vm357_vm1, %v332_v5 }
 0x157   :  { %v334_v7 = vpop.permute.xlu1 %333  ;;  %v336_v27 = vpop.permute.xlu0 %335 }
 0x158   :  { %370 = vst.msk [vmem:[%s1437_s3 + $0x60] sm:$0xff] %vm357_vm1, %v334_v7  ;;  %371 = vst.msk [vmem:[%s1437_s3 + $0x68] sm:$0xff] %vm357_vm1, %v336_v27 }
 0x15b   :  { %v338_v6 = vpop.permute.xlu1 %337  ;;  %v340_v9 = vpop.permute.xlu0 %339 }
 0x15c   :  { %372 = vst.msk [vmem:[%s1437_s3 + $0x70] sm:$0xff] %vm357_vm1, %v338_v6  ;;  %373 = vst.msk [vmem:[%s1437_s3 + $0x78] sm:$0xff] %vm357_vm1, %v340_v9 }
 0x160   :  { %v487_v8 = vpop.permute.xlu0 %486 }
 0x161   :  { %535 = vst.msk [vmem:[%s1437_s3] sm:$0xff] %vm534_vm2, %v487_v8 }
 0x16c   :  { %v573_v11 = vpop.permute.xlu1 %572 }
 0x16d   :  { %v620_v10 = vmul.f32 %v986_v20, %v573_v11 }
 0x16f   :  { %v636_v12 = vadd.f32 %v988_v21, %v620_v10 }
 0x170   :  { %v581_v13 = vpop.permute.xlu1 %580 }
 0x171   :  { %v622_v28 = vmul.f32 %v986_v20, %v581_v13  ;;  %673 = vrot.lane.b32.xlu0 %v636_v12, %s809_s15  ;;  %v569_v15 = vpop.permute.xlu0 %568 }
 0x172   :  { %v619_v29 = vmul.f32 %v986_v20, %v569_v15 }
 0x173   :  { %v638_v14 = vadd.f32 %v988_v21, %v622_v28 }
 0x174   :  { %v635_v30 = vadd.f32 %v988_v21, %v619_v29  ;;  %v589_v31 = vpop.permute.xlu1 %588 }
 0x175   :  { %v624_v32 = vmul.f32 %v986_v20, %v589_v31  ;;  %677 = vrot.lane.b32.xlu0 %v638_v14, %s809_s15  ;;  %v577_v33 = vpop.permute.xlu0 %576 }
 0x176   :  { %v621_v34 = vmul.f32 %v986_v20, %v577_v33  ;;  %671 = vrot.lane.b32.xlu1 %v635_v30, %s809_s15 }
 0x177   :  { %v640_v35 = vadd.f32 %v988_v21, %v624_v32 }
 0x178   :  { %v637_v16 = vadd.f32 %v988_v21, %v621_v34  ;;  %v597_v36 = vpop.permute.xlu1 %596 }
 0x179   :  { %v626_v37 = vmul.f32 %v986_v20, %v597_v36  ;;  %681 = vrot.lane.b32.xlu0 %v640_v35, %s809_s15  ;;  %v585_v38 = vpop.permute.xlu0 %584 }
 0x17a   :  { %v623_v39 = vmul.f32 %v986_v20, %v585_v38  ;;  %675 = vrot.lane.b32.xlu1 %v637_v16, %s809_s15 }
 0x17b   :  { %v642_v40 = vadd.f32 %v988_v21, %v626_v37 }
 0x17c   :  { %v639_v41 = vadd.f32 %v988_v21, %v623_v39  ;;  %v605_v42 = vpop.permute.xlu1 %604 }
 0x17d   :  { %v628_v43 = vmul.f32 %v986_v20, %v605_v42  ;;  %685 = vrot.lane.b32.xlu0 %v642_v40, %s809_s15  ;;  %v593_v44 = vpop.permute.xlu0 %592 }
 0x17e   :  { %v625_v45 = vmul.f32 %v986_v20, %v593_v44  ;;  %679 = vrot.lane.b32.xlu1 %v639_v41, %s809_s15 }
 0x17f   :  { %v644_v46 = vadd.f32 %v988_v21, %v628_v43 }
 0x180   :  { %v641_v47 = vadd.f32 %v988_v21, %v625_v45  ;;  %v613_v48 = vpop.permute.xlu1 %612 }
 0x181   :  { %v630_v49 = vmul.f32 %v986_v20, %v613_v48  ;;  %689 = vrot.lane.b32.xlu0 %v644_v46, %s809_s15  ;;  %v601_v50 = vpop.permute.xlu0 %600 }
 0x182   :  { %v627_v51 = vmul.f32 %v986_v20, %v601_v50  ;;  %683 = vrot.lane.b32.xlu1 %v641_v47, %s809_s15 }
 0x183   :  { %v646_v52 = vadd.f32 %v988_v21, %v630_v49 }
 0x184   :  { %v643_v53 = vadd.f32 %v988_v21, %v627_v51  ;;  %v491_v54 = vpop.permute.xlu1 %490 }
 0x185   :  { %537 = vst.msk [vmem:[%s1437_s3 + $0x10] sm:$0xff] %vm534_vm2, %v491_v54  ;;  %693 = vrot.lane.b32.xlu0 %v646_v52, %s809_s15  ;;  %v609_v55 = vpop.permute.xlu0 %608 }
 0x186   :  { %v629_v56 = vmul.f32 %v986_v20, %v609_v55  ;;  %687 = vrot.lane.b32.xlu1 %v643_v53, %s809_s15 }
 0x188   :  { %v645_v57 = vadd.f32 %v988_v21, %v629_v56  ;;  %v495_v58 = vpop.permute.xlu1 %494 }
 0x189   :  { %v489_v59 = vpop.permute.xlu0 %488  ;;  %539 = vst.msk [vmem:[%s1437_s3 + $0x20] sm:$0xff] %vm534_vm2, %v495_v58 }
 0x18a   :  { %536 = vst.msk [vmem:[%s1437_s3 + $0x8] sm:$0xff] %vm534_vm2, %v489_v59  ;;  %691 = vrot.lane.b32.xlu1 %v645_v57, %s809_s15 }
 0x18c   :  { %v499_v60 = vpop.permute.xlu1 %498 }
 0x18d   :  { %v493_v20 = vpop.permute.xlu0 %492  ;;  %541 = vst.msk [vmem:[%s1437_s3 + $0x30] sm:$0xff] %vm534_vm2, %v499_v60 }
 0x18e   :  { %538 = vst.msk [vmem:[%s1437_s3 + $0x18] sm:$0xff] %vm534_vm2, %v493_v20 }
 0x190   :  { %v503_v21 = vpop.permute.xlu1 %502 }
 0x191   :  { %v497_v61 = vpop.permute.xlu0 %496  ;;  %543 = vst.msk [vmem:[%s1437_s3 + $0x40] sm:$0xff] %vm534_vm2, %v503_v21 }
 0x192   :  { %540 = vst.msk [vmem:[%s1437_s3 + $0x28] sm:$0xff] %vm534_vm2, %v497_v61 }
 0x194   :  { %v507_v62 = vpop.permute.xlu1 %506 }
 0x195   :  { %v501_v63 = vpop.permute.xlu0 %500  ;;  %545 = vst.msk [vmem:[%s1437_s3 + $0x50] sm:$0xff] %vm534_vm2, %v507_v62 }
 0x196   :  { %542 = vst.msk [vmem:[%s1437_s3 + $0x38] sm:$0xff] %vm534_vm2, %v501_v63 }
 0x198   :  { %v511_v0 = vpop.permute.xlu1 %510 }
 0x199   :  { %v505_v1 = vpop.permute.xlu0 %504  ;;  %547 = vst.msk [vmem:[%s1437_s3 + $0x60] sm:$0xff] %vm534_vm2, %v511_v0 }
 0x19a   :  { %544 = vst.msk [vmem:[%s1437_s3 + $0x48] sm:$0xff] %vm534_vm2, %v505_v1 }
 0x19c   :  { %v515_v2 = vpop.permute.xlu1 %514 }
 0x19d   :  { %v509_v3 = vpop.permute.xlu0 %508  ;;  %549 = vst.msk [vmem:[%s1437_s3 + $0x70] sm:$0xff] %vm534_vm2, %v515_v2 }
 0x19e   :  { %546 = vst.msk [vmem:[%s1437_s3 + $0x58] sm:$0xff] %vm534_vm2, %v509_v3 }
 0x1a0   :  { %v664_v4 = vpop.permute.xlu1 %663 }
 0x1a1   :  { %v513_v17 = vpop.permute.xlu0 %512  ;;  %712 = vst.msk [vmem:[%s1437_s3] sm:$0xff] %vm711_vm3, %v664_v4 }
 0x1a2   :  { %548 = vst.msk [vmem:[%s1437_s3 + $0x68] sm:$0xff] %vm534_vm2, %v513_v17 }
 0x1a4   :  { %v668_v18 = vpop.permute.xlu1 %667 }
 0x1a5   :  { %v517_v19 = vpop.permute.xlu0 %516  ;;  %714 = vst.msk [vmem:[%s1437_s3 + $0x10] sm:$0xff] %vm711_vm3, %v668_v18 }
 0x1a6   :  { %550 = vst.msk [vmem:[%s1437_s3 + $0x78] sm:$0xff] %vm534_vm2, %v517_v19 }
 0x1a9   :  { %v666_v22 = vpop.permute.xlu0 %665 }
 0x1aa   :  { %713 = vst.msk [vmem:[%s1437_s3 + $0x8] sm:$0xff] %vm711_vm3, %v666_v22 }
 0x1ad   :  { %v670_v23 = vpop.permute.xlu0 %669 }
 0x1ae   :  { %715 = vst.msk [vmem:[%s1437_s3 + $0x18] sm:$0xff] %vm711_vm3, %v670_v23 }
 0x1e3   :  { %v674_v24 = vpop.permute.xlu0 %673 }
 0x1e4   :  { %717 = vst.msk [vmem:[%s1437_s3 + $0x28] sm:$0xff] %vm711_vm3, %v674_v24 }
 0x1e7   :  { %v678_v25 = vpop.permute.xlu0 %677 }
 0x1e8   :  { %719 = vst.msk [vmem:[%s1437_s3 + $0x38] sm:$0xff] %vm711_vm3, %v678_v25  ;;  %v672_v26 = vpop.permute.xlu1 %671 }
 0x1e9   :  { %716 = vst.msk [vmem:[%s1437_s3 + $0x20] sm:$0xff] %vm711_vm3, %v672_v26 }
 0x1eb   :  { %v682_v5 = vpop.permute.xlu0 %681 }
 0x1ec   :  { %721 = vst.msk [vmem:[%s1437_s3 + $0x48] sm:$0xff] %vm711_vm3, %v682_v5  ;;  %v676_v7 = vpop.permute.xlu1 %675 }
 0x1ed   :  { %718 = vst.msk [vmem:[%s1437_s3 + $0x30] sm:$0xff] %vm711_vm3, %v676_v7 }
 0x1ef   :  { %v686_v27 = vpop.permute.xlu0 %685 }
 0x1f0   :  { %723 = vst.msk [vmem:[%s1437_s3 + $0x58] sm:$0xff] %vm711_vm3, %v686_v27  ;;  %v680_v6 = vpop.permute.xlu1 %679 }
 0x1f1   :  { %720 = vst.msk [vmem:[%s1437_s3 + $0x40] sm:$0xff] %vm711_vm3, %v680_v6 }
 0x1f3   :  { %v690_v9 = vpop.permute.xlu0 %689 }
 0x1f4   :  { %725 = vst.msk [vmem:[%s1437_s3 + $0x68] sm:$0xff] %vm711_vm3, %v690_v9  ;;  %v684_v8 = vpop.permute.xlu1 %683 }
 0x1f5   :  { %722 = vst.msk [vmem:[%s1437_s3 + $0x50] sm:$0xff] %vm711_vm3, %v684_v8 }
 0x1f7   :  { %v694_v11 = vpop.permute.xlu0 %693 }
 0x1f8   :  { %727 = vst.msk [vmem:[%s1437_s3 + $0x78] sm:$0xff] %vm711_vm3, %v694_v11  ;;  %v688_v10 = vpop.permute.xlu1 %687 }
 0x1f9   :  { %724 = vst.msk [vmem:[%s1437_s3 + $0x60] sm:$0xff] %vm711_vm3, %v688_v10 }
 0x1fc   :  { %v692_v12 = vpop.permute.xlu1 %691 }
 0x1fd   :  { %726 = vst.msk [vmem:[%s1437_s3 + $0x70] sm:$0xff] %vm711_vm3, %v692_v12 }
 0x1fe   :  { %732 = vsyncpa [#allocation3], 1 }
 0x1ff   :  { %733 = vsyncpa [#allocation5], 1 }

// kernel: fno_forward.7
= control target key start
LH: loop header
LB: loop body
LE: loop exit
PB: predicated region body
PF: predicated region fallthrough
CT: control target
= control target key end

     0   :  { %v5922_v0 = vmov 0.0|0.0   ;;  %vm5923_vm0 = vmmov 0   ;;  %v5924_v8 = vmov 0.0   ;;  %s8244_s1 = inlined_call_operand.vmem [shape: f32[36,128,128], index: 1, kind: input, shape index: {}]   ;;  %s8245_s0 = inlined_call_operand.vmem [shape: f32[36,2,128], index: 0, kind: input, shape index: {}]   ;;  %s8246_s2 = inlined_call_operand.vmem [shape: f32[36,2,128], index: 2, kind: output, shape index: {}]  }
   0x1   :  { %5055 = vmatprep.subr.bf16.mxu0 %v5922_v0  ;;  %5079 = vmatprep.subr.bf16.mxu1 %v5922_v0  ;;  %v47_v1 = vld [vmem:[%s8244_s1] sm:$0xff]  ;;  %v48_v2 = vld [vmem:[%s8244_s1 + $0x8] sm:$0xff]  ;;  %v49_v6 = vld [vmem:[%s8244_s1 + $0x10] sm:$0xff] }
   0x2   :  { %v63_v3 = vld [vmem:[%s8244_s1 + $0x80] sm:$0xff]  ;;  %v5056_v4 = vpack.c.bf16 %v48_v2, %v47_v1  ;;  %v64_v5 = vld [vmem:[%s8244_s1 + $0x88] sm:$0xff]  ;;  %v50_v7 = vld [vmem:[%s8244_s1 + $0x18] sm:$0xff]  ;;  %3827 = vmatprep.mubr.msk.f32.mxu0 %vm5923_vm0, %v5924_v8  ;;  %3862 = vmatprep.mubr.msk.f32.mxu1 %vm5923_vm0, %v5924_v8 }
   0x3   :  { %v5080_v9 = vpack.c.bf16 %v64_v5, %v63_v3  ;;  %v65_v10 = vld [vmem:[%s8244_s1 + $0x90] sm:$0xff]  ;;  %v66_v11 = vld [vmem:[%s8244_s1 + $0x98] sm:$0xff]  ;;  %v5059_v12 = vpack.c.bf16 %v50_v7, %v49_v6  ;;  %v51_v14 = vld [vmem:[%s8244_s1 + $0x20] sm:$0xff] }
   0x4   :  { %5057 = vmatpush3.bf16.msra.mxu0 %v5056_v4  ;;  %v5083_v13 = vpack.c.bf16 %v66_v11, %v65_v10  ;;  %v52_v15 = vld [vmem:[%s8244_s1 + $0x28] sm:$0xff]  ;;  %v67_v16 = vld [vmem:[%s8244_s1 + $0xa0] sm:$0xff]  ;;  %v53_v20 = vld [vmem:[%s8244_s1 + $0x30] sm:$0xff] }
   0x5   :  { %5081 = vmatpush3.bf16.msra.mxu1 %v5080_v9  ;;  %5058 = vmatprep.subr.bf16.mxu0 %v5922_v0  ;;  %v68_v17 = vld [vmem:[%s8244_s1 + $0xa8] sm:$0xff]  ;;  %v5062_v18 = vpack.c.bf16 %v52_v15, %v51_v14  ;;  %v54_v21 = vld [vmem:[%s8244_s1 + $0x38] sm:$0xff]  ;;  %v69_v22 = vld [vmem:[%s8244_s1 + $0xb0] sm:$0xff] }
   0x6   :  { %5082 = vmatprep.subr.bf16.mxu1 %v5922_v0  ;;  %v5086_v19 = vpack.c.bf16 %v68_v17, %v67_v16  ;;  %v70_v23 = vld [vmem:[%s8244_s1 + $0xb8] sm:$0xff]  ;;  %v5065_v24 = vpack.c.bf16 %v54_v21, %v53_v20  ;;  %v55_v26 = vld [vmem:[%s8244_s1 + $0x40] sm:$0xff]  ;;  %v56_v27 = vld [vmem:[%s8244_s1 + $0x48] sm:$0xff] }
   0x7   :  { %v5089_v25 = vpack.c.bf16 %v70_v23, %v69_v22  ;;  %v71_v28 = vld [vmem:[%s8244_s1 + $0xc0] sm:$0xff]  ;;  %v72_v29 = vld [vmem:[%s8244_s1 + $0xc8] sm:$0xff]  ;;  %v5068_v30 = vpack.c.bf16 %v56_v27, %v55_v26  ;;  %v57_v32 = vld [vmem:[%s8244_s1 + $0x50] sm:$0xff] }
   0x8   :  { %5060 = vmatpush3.bf16.msra.mxu0 %v5059_v12  ;;  %v5092_v31 = vpack.c.bf16 %v72_v29, %v71_v28  ;;  %v58_v33 = vld [vmem:[%s8244_s1 + $0x58] sm:$0xff]  ;;  %v73_v34 = vld [vmem:[%s8244_s1 + $0xd0] sm:$0xff]  ;;  %v59_v38 = vld [vmem:[%s8244_s1 + $0x60] sm:$0xff] }
   0x9   :  { %5084 = vmatpush3.bf16.msra.mxu1 %v5083_v13  ;;  %5061 = vmatprep.subr.bf16.mxu0 %v5922_v0  ;;  %v74_v35 = vld [vmem:[%s8244_s1 + $0xd8] sm:$0xff]  ;;  %v5071_v36 = vpack.c.bf16 %v58_v33, %v57_v32  ;;  %v60_v39 = vld [vmem:[%s8244_s1 + $0x68] sm:$0xff]  ;;  %v75_v40 = vld [vmem:[%s8244_s1 + $0xe0] sm:$0xff] }
   0xa   :  { %5085 = vmatprep.subr.bf16.mxu1 %v5922_v0  ;;  %v5095_v37 = vpack.c.bf16 %v74_v35, %v73_v34  ;;  %v76_v41 = vld [vmem:[%s8244_s1 + $0xe8] sm:$0xff]  ;;  %v5074_v42 = vpack.c.bf16 %v60_v39, %v59_v38  ;;  %v61_v44 = vld [vmem:[%s8244_s1 + $0x70] sm:$0xff]  ;;  %v62_v45 = vld [vmem:[%s8244_s1 + $0x78] sm:$0xff] }
   0xb   :  { %v5098_v43 = vpack.c.bf16 %v76_v41, %v75_v40  ;;  %v77_v46 = vld [vmem:[%s8244_s1 + $0xf0] sm:$0xff]  ;;  %v78_v47 = vld [vmem:[%s8244_s1 + $0xf8] sm:$0xff]  ;;  %v5077_v48 = vpack.c.bf16 %v62_v45, %v61_v44  ;;  %v79_v50 = vld [vmem:[%s8244_s1 + $0x100] sm:$0xff] }
   0xc   :  { %5063 = vmatpush3.bf16.msra.mxu0 %v5062_v18  ;;  %v5101_v49 = vpack.c.bf16 %v78_v47, %v77_v46  ;;  %v80_v51 = vld [vmem:[%s8244_s1 + $0x108] sm:$0xff]  ;;  %v95_v52 = vld [vmem:[%s8244_s1 + $0x180] sm:$0xff]  ;;  %v81_v58 = vld [vmem:[%s8244_s1 + $0x110] sm:$0xff] }
   0xd   :  { %5087 = vmatpush3.bf16.msra.mxu1 %v5086_v19  ;;  %5064 = vmatprep.subr.bf16.mxu0 %v5922_v0  ;;  %v96_v53 = vld [vmem:[%s8244_s1 + $0x188] sm:$0xff]  ;;  %v11_v54 = vld [vmem:[%s8245_s0] sm:$0x3]  ;;  %v5104_v55 = vpack.c.bf16 %v80_v51, %v79_v50  ;;  %v12_v56 = vld [vmem:[%s8245_s0 + $0x2] sm:$0x3] }
   0xe   :  { %5088 = vmatprep.subr.bf16.mxu1 %v5922_v0  ;;  %v5128_v57 = vpack.c.bf16 %v96_v53, %v95_v52  ;;  %v82_v59 = vld [vmem:[%s8244_s1 + $0x118] sm:$0xff]  ;;  %v97_v60 = vld [vmem:[%s8244_s1 + $0x190] sm:$0xff]  ;;  %v83_v1 = vld [vmem:[%s8244_s1 + $0x120] sm:$0xff] }
   0xf   :  { %v98_v61 = vld [vmem:[%s8244_s1 + $0x198] sm:$0xff]  ;;  %v5107_v62 = vpack.c.bf16 %v82_v59, %v81_v58  ;;  %v84_v2 = vld [vmem:[%s8244_s1 + $0x128] sm:$0xff]  ;;  %v99_v3 = vld [vmem:[%s8244_s1 + $0x1a0] sm:$0xff] }
  0x10   :  { %5066 = vmatpush3.bf16.msra.mxu0 %v5065_v24  ;;  %v5131_v63 = vpack.c.bf16 %v98_v61, %v97_v60  ;;  %v100_v4 = vld [vmem:[%s8244_s1 + $0x1a8] sm:$0xff]  ;;  %v5110_v5 = vpack.c.bf16 %v84_v2, %v83_v1  ;;  %v85_v7 = vld [vmem:[%s8244_s1 + $0x130] sm:$0xff]  ;;  %v86_v9 = vld [vmem:[%s8244_s1 + $0x138] sm:$0xff] }
  0x11   :  { %5090 = vmatpush3.bf16.msra.mxu1 %v5089_v25  ;;  %5067 = vmatprep.subr.bf16.mxu0 %v5922_v0  ;;  %v5134_v6 = vpack.c.bf16 %v100_v4, %v99_v3  ;;  %v101_v10 = vld [vmem:[%s8244_s1 + $0x1b0] sm:$0xff]  ;;  %v102_v11 = vld [vmem:[%s8244_s1 + $0x1b8] sm:$0xff]  ;;  %v5113_v12 = vpack.c.bf16 %v86_v9, %v85_v7  ;;  %v87_v14 = vld [vmem:[%s8244_s1 + $0x140] sm:$0xff] }
  0x12   :  { %5091 = vmatprep.subr.bf16.mxu1 %v5922_v0  ;;  %v5137_v13 = vpack.c.bf16 %v102_v11, %v101_v10  ;;  %v88_v15 = vld [vmem:[%s8244_s1 + $0x148] sm:$0xff]  ;;  %v103_v16 = vld [vmem:[%s8244_s1 + $0x1c0] sm:$0xff]  ;;  %v89_v20 = vld [vmem:[%s8244_s1 + $0x150] sm:$0xff] }
  0x13   :  { %v104_v17 = vld [vmem:[%s8244_s1 + $0x1c8] sm:$0xff]  ;;  %v5116_v18 = vpack.c.bf16 %v88_v15, %v87_v14  ;;  %v90_v21 = vld [vmem:[%s8244_s1 + $0x158] sm:$0xff]  ;;  %v105_v22 = vld [vmem:[%s8244_s1 + $0x1d0] sm:$0xff] }
  0x14   :  { %5069 = vmatpush3.bf16.msra.mxu0 %v5068_v30  ;;  %v5140_v19 = vpack.c.bf16 %v104_v17, %v103_v16  ;;  %v106_v23 = vld [vmem:[%s8244_s1 + $0x1d8] sm:$0xff]  ;;  %v5119_v24 = vpack.c.bf16 %v90_v21, %v89_v20  ;;  %v91_v26 = vld [vmem:[%s8244_s1 + $0x160] sm:$0xff]  ;;  %v92_v27 = vld [vmem:[%s8244_s1 + $0x168] sm:$0xff] }
  0x15   :  { %5093 = vmatpush3.bf16.msra.mxu1 %v5092_v31  ;;  %5070 = vmatprep.subr.bf16.mxu0 %v5922_v0  ;;  %v5143_v25 = vpack.c.bf16 %v106_v23, %v105_v22  ;;  %v107_v28 = vld [vmem:[%s8244_s1 + $0x1e0] sm:$0xff]  ;;  %v108_v29 = vld [vmem:[%s8244_s1 + $0x1e8] sm:$0xff]  ;;  %v5122_v30 = vpack.c.bf16 %v92_v27, %v91_v26  ;;  %v93_v32 = vld [vmem:[%s8244_s1 + $0x170] sm:$0xff] }
  0x16   :  { %5094 = vmatprep.subr.bf16.mxu1 %v5922_v0  ;;  %v5146_v31 = vpack.c.bf16 %v108_v29, %v107_v28  ;;  %v94_v33 = vld [vmem:[%s8244_s1 + $0x178] sm:$0xff]  ;;  %v109_v34 = vld [vmem:[%s8244_s1 + $0x1f0] sm:$0xff]  ;;  %v111_v38 = vld [vmem:[%s8244_s1 + $0x200] sm:$0xff] }
  0x17   :  { %v110_v35 = vld [vmem:[%s8244_s1 + $0x1f8] sm:$0xff]  ;;  %v112_v39 = vld [vmem:[%s8244_s1 + $0x208] sm:$0xff]  ;;  %v127_v40 = vld [vmem:[%s8244_s1 + $0x280] sm:$0xff] }
  0x18   :  { %5072 = vmatpush3.bf16.msra.mxu0 %v5071_v36  ;;  %v5125_v36 = vpack.c.bf16 %v94_v33, %v93_v32  ;;  %v128_v41 = vld [vmem:[%s8244_s1 + $0x288] sm:$0xff]  ;;  %v14_v44 = vld [vmem:[%s8245_s0 + $0x6] sm:$0x3]  ;;  %v113_v46 = vld [vmem:[%s8244_s1 + $0x210] sm:$0xff] }
  0x19   :  { %5096 = vmatpush3.bf16.msra.mxu1 %v5095_v37  ;;  %5073 = vmatprep.subr.bf16.mxu0 %v5922_v0  ;;  %v5149_v37 = vpack.c.bf16 %v110_v35, %v109_v34  ;;  %v5176_v45 = vpack.c.bf16 %v128_v41, %v127_v40  ;;  %v114_v47 = vld [vmem:[%s8244_s1 + $0x218] sm:$0xff]  ;;  %v115_v52 = vld [vmem:[%s8244_s1 + $0x220] sm:$0xff]  ;;  %v116_v53 = vld [vmem:[%s8244_s1 + $0x228] sm:$0xff] }
  0x1a   :  { %5097 = vmatprep.subr.bf16.mxu1 %v5922_v0  ;;  %v5155_v50 = vpack.c.bf16 %v114_v47, %v113_v46  ;;  %v117_v58 = vld [vmem:[%s8244_s1 + $0x230] sm:$0xff]  ;;  %v118_v59 = vld [vmem:[%s8244_s1 + $0x238] sm:$0xff]  ;;  %v119_v1 = vld [vmem:[%s8244_s1 + $0x240] sm:$0xff] }
  0x1b   :  { %v133_v60 = vld [vmem:[%s8244_s1 + $0x2b0] sm:$0xff]  ;;  %v134_v61 = vld [vmem:[%s8244_s1 + $0x2b8] sm:$0xff]  ;;  %v120_v2 = vld [vmem:[%s8244_s1 + $0x248] sm:$0xff] }
  0x1c   :  { %5075 = vmatpush3.bf16.msra.mxu0 %v5074_v42  ;;  %v13_v42 = vld [vmem:[%s8245_s0 + $0x4] sm:$0x3]  ;;  %v136_v4 = vld [vmem:[%s8244_s1 + $0x2c8] sm:$0xff]  ;;  %v121_v7 = vld [vmem:[%s8244_s1 + $0x250] sm:$0xff] }
  0x1d   :  { %5099 = vmatpush3.bf16.msra.mxu1 %v5098_v43  ;;  %5076 = vmatprep.subr.bf16.mxu0 %v5922_v0  ;;  %v5152_v43 = vpack.c.bf16 %v112_v39, %v111_v38  ;;  %v135_v3 = vld [vmem:[%s8244_s1 + $0x2c0] sm:$0xff]  ;;  %v122_v9 = vld [vmem:[%s8244_s1 + $0x258] sm:$0xff]  ;;  %v137_v10 = vld [vmem:[%s8244_s1 + $0x2d0] sm:$0xff] }
  0x1e   :  { %5100 = vmatprep.subr.bf16.mxu1 %v5922_v0  ;;  %v138_v11 = vld [vmem:[%s8244_s1 + $0x2d8] sm:$0xff]  ;;  %v123_v14 = vld [vmem:[%s8244_s1 + $0x260] sm:$0xff]  ;;  %v124_v15 = vld [vmem:[%s8244_s1 + $0x268] sm:$0xff] }
  0x1f   :  { %v139_v16 = vld [vmem:[%s8244_s1 + $0x2e0] sm:$0xff]  ;;  %v140_v17 = vld [vmem:[%s8244_s1 + $0x2e8] sm:$0xff]  ;;  %v125_v20 = vld [vmem:[%s8244_s1 + $0x270] sm:$0xff] }
  0x20   :  { %5078 = vmatpush3.bf16.msra.mxu0 %v5077_v48  ;;  %v129_v48 = vld [vmem:[%s8244_s1 + $0x290] sm:$0xff]  ;;  %v126_v21 = vld [vmem:[%s8244_s1 + $0x278] sm:$0xff]  ;;  %v143_v26 = vld [vmem:[%s8244_s1 + $0x300] sm:$0xff] }
  0x21   :  { %5102 = vmatpush3.bf16.msra.mxu1 %v5101_v49  ;;  %5103 = vmatprep.subr.bf16.mxu0 %v5922_v0  ;;  %v130_v49 = vld [vmem:[%s8244_s1 + $0x298] sm:$0xff]  ;;  %v141_v22 = vld [vmem:[%s8244_s1 + $0x2f0] sm:$0xff]  ;;  %v144_v27 = vld [vmem:[%s8244_s1 + $0x308] sm:$0xff] }
  0x22   :  { %5127 = vmatprep.subr.bf16.mxu1 %v5922_v0  ;;  %v5179_v51 = vpack.c.bf16 %v130_v49, %v129_v48  ;;  %v142_v23 = vld [vmem:[%s8244_s1 + $0x2f8] sm:$0xff]  ;;  %v159_v28 = vld [vmem:[%s8244_s1 + $0x380] sm:$0xff]  ;;  %v160_v29 = vld [vmem:[%s8244_s1 + $0x388] sm:$0xff] }
  0x23   :  { %3828 = vmatmul.mubr.f32.vlgmr.msra.gmra.mrb[0].mxu0 %v11_v54  ;;  %v131_v54 = vld [vmem:[%s8244_s1 + $0x2a0] sm:$0xff]  ;;  %v16_v32 = vld [vmem:[%s8245_s0 + $0xa] sm:$0x3]  ;;  %v5224_v33 = vpack.c.bf16 %v160_v29, %v159_v28  ;;  %v145_v34 = vld [vmem:[%s8244_s1 + $0x310] sm:$0xff] }
  0x24   :  { %3863 = vmatmul.mubr.f32.vlgmr.msra.gmra.mrb[0].mxu1 %v12_v56  ;;  %5105 = vmatpush3.bf16.msra.mxu0 %v5104_v55  ;;  %v132_v55 = vld [vmem:[%s8244_s1 + $0x2a8] sm:$0xff]  ;;  %v5158_v56 = vpack.c.bf16 %v116_v53, %v115_v52  ;;  %v146_v35 = vld [vmem:[%s8244_s1 + $0x318] sm:$0xff]  ;;  %v147_v40 = vld [vmem:[%s8244_s1 + $0x320] sm:$0xff] }
  0x25   :  { %5129 = vmatpush3.bf16.msra.mxu1 %v5128_v57  ;;  %5106 = vmatprep.subr.bf16.mxu0 %v5922_v0  ;;  %v5182_v57 = vpack.c.bf16 %v132_v55, %v131_v54  ;;  %v5203_v38 = vpack.c.bf16 %v146_v35, %v145_v34  ;;  %v148_v41 = vld [vmem:[%s8244_s1 + $0x328] sm:$0xff]  ;;  %v149_v46 = vld [vmem:[%s8244_s1 + $0x330] sm:$0xff]  ;;  %v150_v47 = vld [vmem:[%s8244_s1 + $0x338] sm:$0xff] }
  0x26   :  { %5130 = vmatprep.subr.bf16.mxu1 %v5922_v0  ;;  %3897 = vmatprep.mubr.msk.f32.mxu0 %vm5923_vm0, %v5924_v8  ;;  %v165_v48 = vld [vmem:[%s8244_s1 + $0x3b0] sm:$0xff]  ;;  %v166_v49 = vld [vmem:[%s8244_s1 + $0x3b8] sm:$0xff]  ;;  %v151_v52 = vld [vmem:[%s8244_s1 + $0x340] sm:$0xff] }
  0x27   :  { %3932 = vmatprep.mubr.msk.f32.mxu1 %vm5923_vm0, %v5924_v8  ;;  %v152_v53 = vld [vmem:[%s8244_s1 + $0x348] sm:$0xff]  ;;  %v167_v54 = vld [vmem:[%s8244_s1 + $0x3c0] sm:$0xff]  ;;  %v181_v34 = vld [vmem:[%s8244_s1 + $0x430] sm:$0xff] }
  0x28   :  { %5108 = vmatpush3.bf16.msra.mxu0 %v5107_v62  ;;  %v5161_v62 = vpack.c.bf16 %v118_v59, %v117_v58  ;;  %v168_v55 = vld [vmem:[%s8244_s1 + $0x3c8] sm:$0xff]  ;;  %v153_v58 = vld [vmem:[%s8244_s1 + $0x350] sm:$0xff]  ;;  %v154_v59 = vld [vmem:[%s8244_s1 + $0x358] sm:$0xff] }
  0x29   :  { %5132 = vmatpush3.bf16.msra.mxu1 %v5131_v63  ;;  %5109 = vmatprep.subr.bf16.mxu0 %v5922_v0  ;;  %v5185_v63 = vpack.c.bf16 %v134_v61, %v133_v60  ;;  %v169_v60 = vld [vmem:[%s8244_s1 + $0x3d0] sm:$0xff]  ;;  %v170_v61 = vld [vmem:[%s8244_s1 + $0x3d8] sm:$0xff]  ;;  %v179_v28 = vld [vmem:[%s8244_s1 + $0x420] sm:$0xff] }
  0x2a   :  { %5133 = vmatprep.subr.bf16.mxu1 %v5922_v0  ;;  %v180_v29 = vld [vmem:[%s8244_s1 + $0x428] sm:$0xff]  ;;  %v182_v35 = vld [vmem:[%s8244_s1 + $0x438] sm:$0xff] }
  0x2c   :  { %5111 = vmatpush3.bf16.msra.mxu0 %v5110_v5  ;;  %v5164_v5 = vpack.c.bf16 %v120_v2, %v119_v1  ;;  %v155_v1 = vld [vmem:[%s8244_s1 + $0x360] sm:$0xff]  ;;  %v156_v2 = vld [vmem:[%s8244_s1 + $0x368] sm:$0xff] }
  0x2d   :  { %5135 = vmatpush3.bf16.msra.mxu1 %v5134_v6  ;;  %5112 = vmatprep.subr.bf16.mxu0 %v5922_v0  ;;  %v5188_v6 = vpack.c.bf16 %v136_v4, %v135_v3  ;;  %v171_v3 = vld [vmem:[%s8244_s1 + $0x3e0] sm:$0xff]  ;;  %v172_v4 = vld [vmem:[%s8244_s1 + $0x3e8] sm:$0xff] }
  0x2e   :  { %5136 = vmatprep.subr.bf16.mxu1 %v5922_v0 }
  0x30   :  { %5114 = vmatpush3.bf16.msra.mxu0 %v5113_v12  ;;  %v5167_v12 = vpack.c.bf16 %v122_v9, %v121_v7  ;;  %v157_v7 = vld [vmem:[%s8244_s1 + $0x370] sm:$0xff]  ;;  %v158_v9 = vld [vmem:[%s8244_s1 + $0x378] sm:$0xff] }
  0x31   :  { %5138 = vmatpush3.bf16.msra.mxu1 %v5137_v13  ;;  %5115 = vmatprep.subr.bf16.mxu0 %v5922_v0  ;;  %v5191_v13 = vpack.c.bf16 %v138_v11, %v137_v10  ;;  %v173_v10 = vld [vmem:[%s8244_s1 + $0x3f0] sm:$0xff]  ;;  %v174_v11 = vld [vmem:[%s8244_s1 + $0x3f8] sm:$0xff] }
  0x32   :  { %5139 = vmatprep.subr.bf16.mxu1 %v5922_v0 }
  0x34   :  { %5117 = vmatpush3.bf16.msra.mxu0 %v5116_v18  ;;  %v5170_v18 = vpack.c.bf16 %v124_v15, %v123_v14  ;;  %v175_v14 = vld [vmem:[%s8244_s1 + $0x400] sm:$0xff]  ;;  %v176_v15 = vld [vmem:[%s8244_s1 + $0x408] sm:$0xff] }
  0x35   :  { %5141 = vmatpush3.bf16.msra.mxu1 %v5140_v19  ;;  %5118 = vmatprep.subr.bf16.mxu0 %v5922_v0  ;;  %v5194_v19 = vpack.c.bf16 %v140_v17, %v139_v16  ;;  %v191_v16 = vld [vmem:[%s8244_s1 + $0x480] sm:$0xff]  ;;  %v192_v17 = vld [vmem:[%s8244_s1 + $0x488] sm:$0xff] }
  0x36   :  { %5142 = vmatprep.subr.bf16.mxu1 %v5922_v0 }
  0x38   :  { %5120 = vmatpush3.bf16.msra.mxu0 %v5119_v24  ;;  %v5173_v24 = vpack.c.bf16 %v126_v21, %v125_v20  ;;  %v18_v20 = vld [vmem:[%s8245_s0 + $0xe] sm:$0x3]  ;;  %v5272_v21 = vpack.c.bf16 %v192_v17, %v191_v16  ;;  %v211_v16 = vld [vmem:[%s8244_s1 + $0x520] sm:$0xff] }
  0x39   :  { %5144 = vmatpush3.bf16.msra.mxu1 %v5143_v25  ;;  %5121 = vmatprep.subr.bf16.mxu0 %v5922_v0  ;;  %v5197_v25 = vpack.c.bf16 %v142_v23, %v141_v22  ;;  %v177_v22 = vld [vmem:[%s8244_s1 + $0x410] sm:$0xff]  ;;  %v178_v23 = vld [vmem:[%s8244_s1 + $0x418] sm:$0xff]  ;;  %v212_v17 = vld [vmem:[%s8244_s1 + $0x528] sm:$0xff] }
  0x3a   :  { %5145 = vmatprep.subr.bf16.mxu1 %v5922_v0 }
  0x3c   :  { %5123 = vmatpush3.bf16.msra.mxu0 %v5122_v30  ;;  %v15_v30 = vld [vmem:[%s8245_s0 + $0x8] sm:$0x3] }
  0x3d   :  { %5147 = vmatpush3.bf16.msra.mxu1 %v5146_v31  ;;  %5124 = vmatprep.subr.bf16.mxu0 %v5922_v0  ;;  %v5200_v31 = vpack.c.bf16 %v144_v27, %v143_v26  ;;  %v5251_v26 = vpack.c.bf16 %v178_v23, %v177_v22  ;;  %v213_v22 = vld [vmem:[%s8244_s1 + $0x530] sm:$0xff]  ;;  %v214_v23 = vld [vmem:[%s8244_s1 + $0x538] sm:$0xff] }
  0x3e   :  { %5148 = vmatprep.subr.bf16.mxu1 %v5922_v0 }
  0x40   :  { %5126 = vmatpush3.bf16.msra.mxu0 %v5125_v36  ;;  %v161_v36 = vld [vmem:[%s8244_s1 + $0x390] sm:$0xff] }
  0x41   :  { %5150 = vmatpush3.bf16.msra.mxu1 %v5149_v37  ;;  %5151 = vmatprep.subr.bf16.mxu0 %v5922_v0  ;;  %v162_v37 = vld [vmem:[%s8244_s1 + $0x398] sm:$0xff] }
  0x42   :  { %5175 = vmatprep.subr.bf16.mxu1 %v5922_v0  ;;  %v5227_v39 = vpack.c.bf16 %v162_v37, %v161_v36  ;;  %v197_v36 = vld [vmem:[%s8244_s1 + $0x4b0] sm:$0xff]  ;;  %v198_v37 = vld [vmem:[%s8244_s1 + $0x4b8] sm:$0xff] }
  0x43   :  { %3898 = vmatmul.mubr.f32.vlgmr.msra.gmra.mrb[2].mxu0 %v13_v42  ;;  %v163_v42 = vld [vmem:[%s8244_s1 + $0x3a0] sm:$0xff] }
  0x44   :  { %3933 = vmatmul.mubr.f32.vlgmr.msra.gmra.mrb[2].mxu1 %v14_v44  ;;  %5153 = vmatpush3.bf16.msra.mxu0 %v5152_v43  ;;  %v164_v43 = vld [vmem:[%s8244_s1 + $0x3a8] sm:$0xff]  ;;  %v5206_v44 = vpack.c.bf16 %v148_v41, %v147_v40  ;;  %v183_v40 = vld [vmem:[%s8244_s1 + $0x440] sm:$0xff] }
  0x45   :  { %5177 = vmatpush3.bf16.msra.mxu1 %v5176_v45  ;;  %5154 = vmatprep.subr.bf16.mxu0 %v5922_v0  ;;  %v5230_v45 = vpack.c.bf16 %v164_v43, %v163_v42  ;;  %v184_v41 = vld [vmem:[%s8244_s1 + $0x448] sm:$0xff]  ;;  %v199_v42 = vld [vmem:[%s8244_s1 + $0x4c0] sm:$0xff] }
  0x46   :  { %5178 = vmatprep.subr.bf16.mxu1 %v5922_v0  ;;  %3967 = vmatprep.mubr.msk.f32.mxu0 %vm5923_vm0, %v5924_v8  ;;  %v200_v43 = vld [vmem:[%s8244_s1 + $0x4c8] sm:$0xff] }
  0x47   :  { %4002 = vmatprep.mubr.msk.f32.mxu1 %vm5923_vm0, %v5924_v8 }
  0x48   :  { %5156 = vmatpush3.bf16.msra.mxu0 %v5155_v50  ;;  %v5209_v50 = vpack.c.bf16 %v150_v47, %v149_v46  ;;  %v185_v46 = vld [vmem:[%s8244_s1 + $0x450] sm:$0xff]  ;;  %v186_v47 = vld [vmem:[%s8244_s1 + $0x458] sm:$0xff] }
  0x49   :  { %5180 = vmatpush3.bf16.msra.mxu1 %v5179_v51  ;;  %5157 = vmatprep.subr.bf16.mxu0 %v5922_v0  ;;  %v5233_v51 = vpack.c.bf16 %v166_v49, %v165_v48  ;;  %v201_v48 = vld [vmem:[%s8244_s1 + $0x4d0] sm:$0xff]  ;;  %v202_v49 = vld [vmem:[%s8244_s1 + $0x4d8] sm:$0xff] }
  0x4a   :  { %5181 = vmatprep.subr.bf16.mxu1 %v5922_v0 }
  0x4c   :  { %5159 = vmatpush3.bf16.msra.mxu0 %v5158_v56  ;;  %v5212_v56 = vpack.c.bf16 %v152_v53, %v151_v52  ;;  %v187_v52 = vld [vmem:[%s8244_s1 + $0x460] sm:$0xff]  ;;  %v188_v53 = vld [vmem:[%s8244_s1 + $0x468] sm:$0xff] }
  0x4d   :  { %5183 = vmatpush3.bf16.msra.mxu1 %v5182_v57  ;;  %5160 = vmatprep.subr.bf16.mxu0 %v5922_v0  ;;  %v5236_v57 = vpack.c.bf16 %v168_v55, %v167_v54  ;;  %v203_v54 = vld [vmem:[%s8244_s1 + $0x4e0] sm:$0xff]  ;;  %v204_v55 = vld [vmem:[%s8244_s1 + $0x4e8] sm:$0xff] }
  0x4e   :  { %5184 = vmatprep.subr.bf16.mxu1 %v5922_v0 }
  0x50   :  { %5162 = vmatpush3.bf16.msra.mxu0 %v5161_v62  ;;  %v5215_v62 = vpack.c.bf16 %v154_v59, %v153_v58  ;;  %v189_v58 = vld [vmem:[%s8244_s1 + $0x470] sm:$0xff]  ;;  %v190_v59 = vld [vmem:[%s8244_s1 + $0x478] sm:$0xff] }
  0x51   :  { %5186 = vmatpush3.bf16.msra.mxu1 %v5185_v63  ;;  %5163 = vmatprep.subr.bf16.mxu0 %v5922_v0  ;;  %v5239_v63 = vpack.c.bf16 %v170_v61, %v169_v60  ;;  %v205_v60 = vld [vmem:[%s8244_s1 + $0x4f0] sm:$0xff]  ;;  %v206_v61 = vld [vmem:[%s8244_s1 + $0x4f8] sm:$0xff] }
  0x52   :  { %5187 = vmatprep.subr.bf16.mxu1 %v5922_v0 }
  0x54   :  { %5165 = vmatpush3.bf16.msra.mxu0 %v5164_v5  ;;  %v5218_v5 = vpack.c.bf16 %v156_v2, %v155_v1  ;;  %v207_v1 = vld [vmem:[%s8244_s1 + $0x500] sm:$0xff]  ;;  %v208_v2 = vld [vmem:[%s8244_s1 + $0x508] sm:$0xff] }
  0x55   :  { %5189 = vmatpush3.bf16.msra.mxu1 %v5188_v6  ;;  %5166 = vmatprep.subr.bf16.mxu0 %v5922_v0  ;;  %v5242_v6 = vpack.c.bf16 %v172_v4, %v171_v3  ;;  %v223_v3 = vld [vmem:[%s8244_s1 + $0x580] sm:$0xff]  ;;  %v224_v4 = vld [vmem:[%s8244_s1 + $0x588] sm:$0xff] }
  0x56   :  { %5190 = vmatprep.subr.bf16.mxu1 %v5922_v0 }
  0x58   :  { %5168 = vmatpush3.bf16.msra.mxu0 %v5167_v12  ;;  %v5221_v12 = vpack.c.bf16 %v158_v9, %v157_v7  ;;  %v20_v7 = vld [vmem:[%s8245_s0 + $0x12] sm:$0x3]  ;;  %v5320_v9 = vpack.c.bf16 %v224_v4, %v223_v3  ;;  %v243_v3 = vld [vmem:[%s8244_s1 + $0x620] sm:$0xff]  ;;  %v244_v4 = vld [vmem:[%s8244_s1 + $0x628] sm:$0xff] }
  0x59   :  { %5192 = vmatpush3.bf16.msra.mxu1 %v5191_v13  ;;  %5169 = vmatprep.subr.bf16.mxu0 %v5922_v0  ;;  %v5245_v13 = vpack.c.bf16 %v174_v11, %v173_v10  ;;  %v209_v10 = vld [vmem:[%s8244_s1 + $0x510] sm:$0xff]  ;;  %v210_v11 = vld [vmem:[%s8244_s1 + $0x518] sm:$0xff] }
  0x5a   :  { %5193 = vmatprep.subr.bf16.mxu1 %v5922_v0 }
  0x5c   :  { %5171 = vmatpush3.bf16.msra.mxu0 %v5170_v18  ;;  %v17_v18 = vld [vmem:[%s8245_s0 + $0xc] sm:$0x3] }
  0x5d   :  { %5195 = vmatpush3.bf16.msra.mxu1 %v5194_v19  ;;  %5172 = vmatprep.subr.bf16.mxu0 %v5922_v0  ;;  %v5248_v19 = vpack.c.bf16 %v176_v15, %v175_v14  ;;  %v5299_v14 = vpack.c.bf16 %v210_v11, %v209_v10  ;;  %v245_v10 = vld [vmem:[%s8244_s1 + $0x630] sm:$0xff]  ;;  %v246_v11 = vld [vmem:[%s8244_s1 + $0x638] sm:$0xff] }
  0x5e   :  { %5196 = vmatprep.subr.bf16.mxu1 %v5922_v0 }
  0x60   :  { %5174 = vmatpush3.bf16.msra.mxu0 %v5173_v24  ;;  %v193_v24 = vld [vmem:[%s8244_s1 + $0x490] sm:$0xff] }
  0x61   :  { %5198 = vmatpush3.bf16.msra.mxu1 %v5197_v25  ;;  %5199 = vmatprep.subr.bf16.mxu0 %v5922_v0  ;;  %v194_v25 = vld [vmem:[%s8244_s1 + $0x498] sm:$0xff] }
  0x62   :  { %5223 = vmatprep.subr.bf16.mxu1 %v5922_v0  ;;  %v5275_v27 = vpack.c.bf16 %v194_v25, %v193_v24  ;;  %v229_v24 = vld [vmem:[%s8244_s1 + $0x5b0] sm:$0xff]  ;;  %v230_v25 = vld [vmem:[%s8244_s1 + $0x5b8] sm:$0xff] }
  0x63   :  { %3968 = vmatmul.mubr.f32.vlgmr.msra.gmra.mrb[4].mxu0 %v15_v30  ;;  %v195_v30 = vld [vmem:[%s8244_s1 + $0x4a0] sm:$0xff] }
  0x64   :  { %4003 = vmatmul.mubr.f32.vlgmr.msra.gmra.mrb[4].mxu1 %v16_v32  ;;  %5201 = vmatpush3.bf16.msra.mxu0 %v5200_v31  ;;  %v196_v31 = vld [vmem:[%s8244_s1 + $0x4a8] sm:$0xff]  ;;  %v5254_v32 = vpack.c.bf16 %v180_v29, %v179_v28  ;;  %v215_v28 = vld [vmem:[%s8244_s1 + $0x540] sm:$0xff] }
  0x65   :  { %5225 = vmatpush3.bf16.msra.mxu1 %v5224_v33  ;;  %5202 = vmatprep.subr.bf16.mxu0 %v5922_v0  ;;  %v5278_v33 = vpack.c.bf16 %v196_v31, %v195_v30  ;;  %v216_v29 = vld [vmem:[%s8244_s1 + $0x548] sm:$0xff]  ;;  %v231_v30 = vld [vmem:[%s8244_s1 + $0x5c0] sm:$0xff] }
  0x66   :  { %5226 = vmatprep.subr.bf16.mxu1 %v5922_v0  ;;  %4037 = vmatprep.mubr.msk.f32.mxu0 %vm5923_vm0, %v5924_v8  ;;  %v232_v31 = vld [vmem:[%s8244_s1 + $0x5c8] sm:$0xff] }
  0x67   :  { %4072 = vmatprep.mubr.msk.f32.mxu1 %vm5923_vm0, %v5924_v8 }
  0x68   :  { %5204 = vmatpush3.bf16.msra.mxu0 %v5203_v38  ;;  %v5257_v38 = vpack.c.bf16 %v182_v35, %v181_v34  ;;  %v217_v34 = vld [vmem:[%s8244_s1 + $0x550] sm:$0xff]  ;;  %v218_v35 = vld [vmem:[%s8244_s1 + $0x558] sm:$0xff] }
  0x69   :  { %5228 = vmatpush3.bf16.msra.mxu1 %v5227_v39  ;;  %5205 = vmatprep.subr.bf16.mxu0 %v5922_v0  ;;  %v5281_v39 = vpack.c.bf16 %v198_v37, %v197_v36  ;;  %v233_v36 = vld [vmem:[%s8244_s1 + $0x5d0] sm:$0xff]  ;;  %v234_v37 = vld [vmem:[%s8244_s1 + $0x5d8] sm:$0xff] }
  0x6a   :  { %5229 = vmatprep.subr.bf16.mxu1 %v5922_v0 }
  0x6c   :  { %5207 = vmatpush3.bf16.msra.mxu0 %v5206_v44  ;;  %v5260_v44 = vpack.c.bf16 %v184_v41, %v183_v40  ;;  %v219_v40 = vld [vmem:[%s8244_s1 + $0x560] sm:$0xff]  ;;  %v220_v41 = vld [vmem:[%s8244_s1 + $0x568] sm:$0xff] }
  0x6d   :  { %5231 = vmatpush3.bf16.msra.mxu1 %v5230_v45  ;;  %5208 = vmatprep.subr.bf16.mxu0 %v5922_v0  ;;  %v5284_v45 = vpack.c.bf16 %v200_v43, %v199_v42  ;;  %v235_v42 = vld [vmem:[%s8244_s1 + $0x5e0] sm:$0xff]  ;;  %v236_v43 = vld [vmem:[%s8244_s1 + $0x5e8] sm:$0xff] }
  0x6e   :  { %5232 = vmatprep.subr.bf16.mxu1 %v5922_v0 }
  0x70   :  { %5210 = vmatpush3.bf16.msra.mxu0 %v5209_v50  ;;  %v5263_v50 = vpack.c.bf16 %v186_v47, %v185_v46  ;;  %v221_v46 = vld [vmem:[%s8244_s1 + $0x570] sm:$0xff]  ;;  %v222_v47 = vld [vmem:[%s8244_s1 + $0x578] sm:$0xff] }
  0x71   :  { %5234 = vmatpush3.bf16.msra.mxu1 %v5233_v51  ;;  %5211 = vmatprep.subr.bf16.mxu0 %v5922_v0  ;;  %v5287_v51 = vpack.c.bf16 %v202_v49, %v201_v48  ;;  %v237_v48 = vld [vmem:[%s8244_s1 + $0x5f0] sm:$0xff]  ;;  %v238_v49 = vld [vmem:[%s8244_s1 + $0x5f8] sm:$0xff] }
  0x72   :  { %5235 = vmatprep.subr.bf16.mxu1 %v5922_v0 }
  0x74   :  { %5213 = vmatpush3.bf16.msra.mxu0 %v5212_v56  ;;  %v5266_v56 = vpack.c.bf16 %v188_v53, %v187_v52  ;;  %v239_v52 = vld [vmem:[%s8244_s1 + $0x600] sm:$0xff]  ;;  %v240_v53 = vld [vmem:[%s8244_s1 + $0x608] sm:$0xff] }
  0x75   :  { %5237 = vmatpush3.bf16.msra.mxu1 %v5236_v57  ;;  %5214 = vmatprep.subr.bf16.mxu0 %v5922_v0  ;;  %v5290_v57 = vpack.c.bf16 %v204_v55, %v203_v54  ;;  %v255_v54 = vld [vmem:[%s8244_s1 + $0x680] sm:$0xff]  ;;  %v256_v55 = vld [vmem:[%s8244_s1 + $0x688] sm:$0xff] }
  0x76   :  { %5238 = vmatprep.subr.bf16.mxu1 %v5922_v0 }
  0x78   :  { %5216 = vmatpush3.bf16.msra.mxu0 %v5215_v62  ;;  %v5269_v62 = vpack.c.bf16 %v190_v59, %v189_v58  ;;  %v22_v58 = vld [vmem:[%s8245_s0 + $0x16] sm:$0x3]  ;;  %v5368_v59 = vpack.c.bf16 %v256_v55, %v255_v54  ;;  %v275_v54 = vld [vmem:[%s8244_s1 + $0x720] sm:$0xff]  ;;  %v276_v55 = vld [vmem:[%s8244_s1 + $0x728] sm:$0xff] }
  0x79   :  { %5240 = vmatpush3.bf16.msra.mxu1 %v5239_v63  ;;  %5217 = vmatprep.subr.bf16.mxu0 %v5922_v0  ;;  %v5293_v63 = vpack.c.bf16 %v206_v61, %v205_v60  ;;  %v241_v60 = vld [vmem:[%s8244_s1 + $0x610] sm:$0xff]  ;;  %v242_v61 = vld [vmem:[%s8244_s1 + $0x618] sm:$0xff] }
  0x7a   :  { %5241 = vmatprep.subr.bf16.mxu1 %v5922_v0 }
  0x7c   :  { %5219 = vmatpush3.bf16.msra.mxu0 %v5218_v5  ;;  %v19_v5 = vld [vmem:[%s8245_s0 + $0x10] sm:$0x3] }
  0x7d   :  { %5243 = vmatpush3.bf16.msra.mxu1 %v5242_v6  ;;  %5220 = vmatprep.subr.bf16.mxu0 %v5922_v0  ;;  %v5296_v6 = vpack.c.bf16 %v208_v2, %v207_v1  ;;  %v5347_v1 = vpack.c.bf16 %v242_v61, %v241_v60  ;;  %v277_v60 = vld [vmem:[%s8244_s1 + $0x730] sm:$0xff]  ;;  %v278_v61 = vld [vmem:[%s8244_s1 + $0x738] sm:$0xff] }
  0x7e   :  { %5244 = vmatprep.subr.bf16.mxu1 %v5922_v0 }
  0x80   :  { %5222 = vmatpush3.bf16.msra.mxu0 %v5221_v12  ;;  %v225_v12 = vld [vmem:[%s8244_s1 + $0x590] sm:$0xff] }
  0x81   :  { %5246 = vmatpush3.bf16.msra.mxu1 %v5245_v13  ;;  %5247 = vmatprep.subr.bf16.mxu0 %v5922_v0  ;;  %v226_v13 = vld [vmem:[%s8244_s1 + $0x598] sm:$0xff] }
  0x82   :  { %5271 = vmatprep.subr.bf16.mxu1 %v5922_v0  ;;  %v5323_v15 = vpack.c.bf16 %v226_v13, %v225_v12  ;;  %v261_v12 = vld [vmem:[%s8244_s1 + $0x6b0] sm:$0xff]  ;;  %v262_v13 = vld [vmem:[%s8244_s1 + $0x6b8] sm:$0xff] }
  0x83   :  { %4038 = vmatmul.mubr.f32.vlgmr.msra.gmra.mrb[6].mxu0 %v17_v18  ;;  %v227_v18 = vld [vmem:[%s8244_s1 + $0x5a0] sm:$0xff] }
  0x84   :  { %4073 = vmatmul.mubr.f32.vlgmr.msra.gmra.mrb[6].mxu1 %v18_v20  ;;  %5249 = vmatpush3.bf16.msra.mxu0 %v5248_v19  ;;  %v228_v19 = vld [vmem:[%s8244_s1 + $0x5a8] sm:$0xff]  ;;  %v5302_v20 = vpack.c.bf16 %v212_v17, %v211_v16  ;;  %v247_v16 = vld [vmem:[%s8244_s1 + $0x640] sm:$0xff] }
  0x85   :  { %5273 = vmatpush3.bf16.msra.mxu1 %v5272_v21  ;;  %5250 = vmatprep.subr.bf16.mxu0 %v5922_v0  ;;  %v5326_v21 = vpack.c.bf16 %v228_v19, %v227_v18  ;;  %v248_v17 = vld [vmem:[%s8244_s1 + $0x648] sm:$0xff]  ;;  %v263_v18 = vld [vmem:[%s8244_s1 + $0x6c0] sm:$0xff] }
  0x86   :  { %5274 = vmatprep.subr.bf16.mxu1 %v5922_v0  ;;  %4107 = vmatprep.mubr.msk.f32.mxu0 %vm5923_vm0, %v5924_v8  ;;  %v264_v19 = vld [vmem:[%s8244_s1 + $0x6c8] sm:$0xff] }
  0x87   :  { %4142 = vmatprep.mubr.msk.f32.mxu1 %vm5923_vm0, %v5924_v8 }
  0x88   :  { %5252 = vmatpush3.bf16.msra.mxu0 %v5251_v26  ;;  %v5305_v26 = vpack.c.bf16 %v214_v23, %v213_v22  ;;  %v249_v22 = vld [vmem:[%s8244_s1 + $0x650] sm:$0xff]  ;;  %v250_v23 = vld [vmem:[%s8244_s1 + $0x658] sm:$0xff] }
  0x89   :  { %5276 = vmatpush3.bf16.msra.mxu1 %v5275_v27  ;;  %5253 = vmatprep.subr.bf16.mxu0 %v5922_v0  ;;  %v5329_v27 = vpack.c.bf16 %v230_v25, %v229_v24  ;;  %v265_v24 = vld [vmem:[%s8244_s1 + $0x6d0] sm:$0xff]  ;;  %v266_v25 = vld [vmem:[%s8244_s1 + $0x6d8] sm:$0xff] }
  0x8a   :  { %5277 = vmatprep.subr.bf16.mxu1 %v5922_v0 }
  0x8c   :  { %5255 = vmatpush3.bf16.msra.mxu0 %v5254_v32  ;;  %v5308_v32 = vpack.c.bf16 %v216_v29, %v215_v28  ;;  %v251_v28 = vld [vmem:[%s8244_s1 + $0x660] sm:$0xff]  ;;  %v252_v29 = vld [vmem:[%s8244_s1 + $0x668] sm:$0xff] }
  0x8d   :  { %5279 = vmatpush3.bf16.msra.mxu1 %v5278_v33  ;;  %5256 = vmatprep.subr.bf16.mxu0 %v5922_v0  ;;  %v5332_v33 = vpack.c.bf16 %v232_v31, %v231_v30  ;;  %v267_v30 = vld [vmem:[%s8244_s1 + $0x6e0] sm:$0xff]  ;;  %v268_v31 = vld [vmem:[%s8244_s1 + $0x6e8] sm:$0xff] }
  0x8e   :  { %5280 = vmatprep.subr.bf16.mxu1 %v5922_v0 }
  0x90   :  { %5258 = vmatpush3.bf16.msra.mxu0 %v5257_v38  ;;  %v5311_v38 = vpack.c.bf16 %v218_v35, %v217_v34  ;;  %v253_v34 = vld [vmem:[%s8244_s1 + $0x670] sm:$0xff]  ;;  %v254_v35 = vld [vmem:[%s8244_s1 + $0x678] sm:$0xff] }
  0x91   :  { %5282 = vmatpush3.bf16.msra.mxu1 %v5281_v39  ;;  %5259 = vmatprep.subr.bf16.mxu0 %v5922_v0  ;;  %v5335_v39 = vpack.c.bf16 %v234_v37, %v233_v36  ;;  %v269_v36 = vld [vmem:[%s8244_s1 + $0x6f0] sm:$0xff]  ;;  %v270_v37 = vld [vmem:[%s8244_s1 + $0x6f8] sm:$0xff] }
  0x92   :  { %5283 = vmatprep.subr.bf16.mxu1 %v5922_v0 }
  0x94   :  { %5261 = vmatpush3.bf16.msra.mxu0 %v5260_v44  ;;  %v5314_v44 = vpack.c.bf16 %v220_v41, %v219_v40  ;;  %v271_v40 = vld [vmem:[%s8244_s1 + $0x700] sm:$0xff]  ;;  %v272_v41 = vld [vmem:[%s8244_s1 + $0x708] sm:$0xff] }
  0x95   :  { %5285 = vmatpush3.bf16.msra.mxu1 %v5284_v45  ;;  %5262 = vmatprep.subr.bf16.mxu0 %v5922_v0  ;;  %v5338_v45 = vpack.c.bf16 %v236_v43, %v235_v42  ;;  %v287_v42 = vld [vmem:[%s8244_s1 + $0x780] sm:$0xff]  ;;  %v288_v43 = vld [vmem:[%s8244_s1 + $0x788] sm:$0xff] }
  0x96   :  { %5286 = vmatprep.subr.bf16.mxu1 %v5922_v0 }
  0x98   :  { %5264 = vmatpush3.bf16.msra.mxu0 %v5263_v50  ;;  %v5317_v50 = vpack.c.bf16 %v222_v47, %v221_v46  ;;  %v24_v46 = vld [vmem:[%s8245_s0 + $0x1a] sm:$0x3]  ;;  %v5416_v47 = vpack.c.bf16 %v288_v43, %v287_v42  ;;  %v321_v42 = vld [vmem:[%s8244_s1 + $0x890] sm:$0xff] }
  0x99   :  { %5288 = vmatpush3.bf16.msra.mxu1 %v5287_v51  ;;  %5265 = vmatprep.subr.bf16.mxu0 %v5922_v0  ;;  %v5341_v51 = vpack.c.bf16 %v238_v49, %v237_v48  ;;  %v273_v48 = vld [vmem:[%s8244_s1 + $0x710] sm:$0xff]  ;;  %v274_v49 = vld [vmem:[%s8244_s1 + $0x718] sm:$0xff] }
  0x9a   :  { %5289 = vmatprep.subr.bf16.mxu1 %v5922_v0  ;;  %v322_v43 = vld [vmem:[%s8244_s1 + $0x898] sm:$0xff] }
  0x9c   :  { %5267 = vmatpush3.bf16.msra.mxu0 %v5266_v56  ;;  %v21_v56 = vld [vmem:[%s8245_s0 + $0x14] sm:$0x3] }
  0x9d   :  { %5291 = vmatpush3.bf16.msra.mxu1 %v5290_v57  ;;  %5268 = vmatprep.subr.bf16.mxu0 %v5922_v0  ;;  %v5344_v57 = vpack.c.bf16 %v240_v53, %v239_v52  ;;  %v5395_v52 = vpack.c.bf16 %v274_v49, %v273_v48  ;;  %v323_v48 = vld [vmem:[%s8244_s1 + $0x8a0] sm:$0xff]  ;;  %v324_v49 = vld [vmem:[%s8244_s1 + $0x8a8] sm:$0xff] }
  0x9e   :  { %5292 = vmatprep.subr.bf16.mxu1 %v5922_v0 }
  0xa0   :  { %5270 = vmatpush3.bf16.msra.mxu0 %v5269_v62  ;;  %v257_v62 = vld [vmem:[%s8244_s1 + $0x690] sm:$0xff] }
  0xa1   :  { %5294 = vmatpush3.bf16.msra.mxu1 %v5293_v63  ;;  %5295 = vmatprep.subr.bf16.mxu0 %v5922_v0  ;;  %v258_v63 = vld [vmem:[%s8244_s1 + $0x698] sm:$0xff] }
  0xa2   :  { %5319 = vmatprep.subr.bf16.mxu1 %v5922_v0  ;;  %v5371_v2 = vpack.c.bf16 %v258_v63, %v257_v62  ;;  %v293_v62 = vld [vmem:[%s8244_s1 + $0x7b0] sm:$0xff]  ;;  %v294_v63 = vld [vmem:[%s8244_s1 + $0x7b8] sm:$0xff] }
  0xa3   :  { %4108 = vmatmul.mubr.f32.vlgmr.msra.gmra.mrb[8].mxu0 %v19_v5  ;;  %v259_v5 = vld [vmem:[%s8244_s1 + $0x6a0] sm:$0xff] }
  0xa4   :  { %4143 = vmatmul.mubr.f32.vlgmr.msra.gmra.mrb[8].mxu1 %v20_v7  ;;  %5297 = vmatpush3.bf16.msra.mxu0 %v5296_v6  ;;  %v260_v6 = vld [vmem:[%s8244_s1 + $0x6a8] sm:$0xff]  ;;  %v5350_v7 = vpack.c.bf16 %v244_v4, %v243_v3  ;;  %v279_v3 = vld [vmem:[%s8244_s1 + $0x740] sm:$0xff] }
  0xa5   :  { %5321 = vmatpush3.bf16.msra.mxu1 %v5320_v9  ;;  %5298 = vmatprep.subr.bf16.mxu0 %v5922_v0  ;;  %v5374_v9 = vpack.c.bf16 %v260_v6, %v259_v5  ;;  %v280_v4 = vld [vmem:[%s8244_s1 + $0x748] sm:$0xff]  ;;  %v295_v5 = vld [vmem:[%s8244_s1 + $0x7c0] sm:$0xff] }
  0xa6   :  { %5322 = vmatprep.subr.bf16.mxu1 %v5922_v0  ;;  %4177 = vmatprep.mubr.msk.f32.mxu0 %vm5923_vm0, %v5924_v8  ;;  %v296_v6 = vld [vmem:[%s8244_s1 + $0x7c8] sm:$0xff] }
  0xa7   :  { %4212 = vmatprep.mubr.msk.f32.mxu1 %vm5923_vm0, %v5924_v8 }
  0xa8   :  { %5300 = vmatpush3.bf16.msra.mxu0 %v5299_v14  ;;  %v5353_v14 = vpack.c.bf16 %v246_v11, %v245_v10  ;;  %v281_v10 = vld [vmem:[%s8244_s1 + $0x750] sm:$0xff]  ;;  %v282_v11 = vld [vmem:[%s8244_s1 + $0x758] sm:$0xff] }
  0xa9   :  { %5324 = vmatpush3.bf16.msra.mxu1 %v5323_v15  ;;  %5301 = vmatprep.subr.bf16.mxu0 %v5922_v0  ;;  %v5377_v15 = vpack.c.bf16 %v262_v13, %v261_v12  ;;  %v297_v12 = vld [vmem:[%s8244_s1 + $0x7d0] sm:$0xff]  ;;  %v298_v13 = vld [vmem:[%s8244_s1 + $0x7d8] sm:$0xff] }
  0xaa   :  { %5325 = vmatprep.subr.bf16.mxu1 %v5922_v0 }
  0xac   :  { %5303 = vmatpush3.bf16.msra.mxu0 %v5302_v20  ;;  %v5356_v20 = vpack.c.bf16 %v248_v17, %v247_v16  ;;  %v283_v16 = vld [vmem:[%s8244_s1 + $0x760] sm:$0xff]  ;;  %v284_v17 = vld [vmem:[%s8244_s1 + $0x768] sm:$0xff] }
  0xad   :  { %5327 = vmatpush3.bf16.msra.mxu1 %v5326_v21  ;;  %5304 = vmatprep.subr.bf16.mxu0 %v5922_v0  ;;  %v5380_v21 = vpack.c.bf16 %v264_v19, %v263_v18  ;;  %v299_v19 = vld [vmem:[%s8244_s1 + $0x7e0] sm:$0xff] }
  0xae   :  { %5328 = vmatprep.subr.bf16.mxu1 %v5922_v0 }
  0xb0   :  { %5306 = vmatpush3.bf16.msra.mxu0 %v5305_v26  ;;  %v5359_v26 = vpack.c.bf16 %v250_v23, %v249_v22 }
  0xb1   :  { %5330 = vmatpush3.bf16.msra.mxu1 %v5329_v27  ;;  %5307 = vmatprep.subr.bf16.mxu0 %v5922_v0  ;;  %v5383_v27 = vpack.c.bf16 %v266_v25, %v265_v24  ;;  %v5410_v24 = vpack.c.bf16 %v284_v17, %v283_v16 }
  0xb2   :  { %5331 = vmatprep.subr.bf16.mxu1 %v5922_v0 }
  0xb4   :  { %5309 = vmatpush3.bf16.msra.mxu0 %v5308_v32  ;;  %v5362_v32 = vpack.c.bf16 %v252_v29, %v251_v28  ;;  %v301_v28 = vld [vmem:[%s8244_s1 + $0x7f0] sm:$0xff]  ;;  %v302_v29 = vld [vmem:[%s8244_s1 + $0x7f8] sm:$0xff] }
  0xb5   :  { %5333 = vmatpush3.bf16.msra.mxu1 %v5332_v33  ;;  %5310 = vmatprep.subr.bf16.mxu0 %v5922_v0  ;;  %v5386_v33 = vpack.c.bf16 %v268_v31, %v267_v30  ;;  %v5437_v31 = vpack.c.bf16 %v302_v29, %v301_v28  ;;  %v27_v28 = vld [vmem:[%s8245_s0 + $0x20] sm:$0x3] }
  0xb6   :  { %5334 = vmatprep.subr.bf16.mxu1 %v5922_v0 }
  0xb8   :  { %5312 = vmatpush3.bf16.msra.mxu0 %v5311_v38  ;;  %v5365_v38 = vpack.c.bf16 %v254_v35, %v253_v34  ;;  %v319_v34 = vld [vmem:[%s8244_s1 + $0x880] sm:$0xff]  ;;  %v320_v35 = vld [vmem:[%s8244_s1 + $0x888] sm:$0xff] }
  0xb9   :  { %5336 = vmatpush3.bf16.msra.mxu1 %v5335_v39  ;;  %5313 = vmatprep.subr.bf16.mxu0 %v5922_v0  ;;  %v5389_v39 = vpack.c.bf16 %v270_v37, %v269_v36  ;;  %v25_v36 = vld [vmem:[%s8245_s0 + $0x1c] sm:$0x3] }
  0xba   :  { %5337 = vmatprep.subr.bf16.mxu1 %v5922_v0 }
  0xbc   :  { %5315 = vmatpush3.bf16.msra.mxu0 %v5314_v44  ;;  %v23_v44 = vld [vmem:[%s8245_s0 + $0x18] sm:$0x3] }
  0xbd   :  { %5339 = vmatpush3.bf16.msra.mxu1 %v5338_v45  ;;  %5316 = vmatprep.subr.bf16.mxu0 %v5922_v0  ;;  %v5392_v45 = vpack.c.bf16 %v272_v41, %v271_v40  ;;  %v305_v40 = vld [vmem:[%s8244_s1 + $0x810] sm:$0xff]  ;;  %v306_v41 = vld [vmem:[%s8244_s1 + $0x818] sm:$0xff] }
  0xbe   :  { %5340 = vmatprep.subr.bf16.mxu1 %v5922_v0 }
  0xc0   :  { %5318 = vmatpush3.bf16.msra.mxu0 %v5317_v50  ;;  %v289_v50 = vld [vmem:[%s8244_s1 + $0x790] sm:$0xff] }
  0xc1   :  { %5342 = vmatpush3.bf16.msra.mxu1 %v5341_v51  ;;  %5343 = vmatprep.subr.bf16.mxu0 %v5922_v0  ;;  %v290_v51 = vld [vmem:[%s8244_s1 + $0x798] sm:$0xff] }
  0xc2   :  { %5367 = vmatprep.subr.bf16.mxu1 %v5922_v0  ;;  %v5419_v53 = vpack.c.bf16 %v290_v51, %v289_v50  ;;  %v5470_v51 = vpack.c.bf16 %v324_v49, %v323_v48 }
  0xc3   :  { %4178 = vmatmul.mubr.f32.vlgmr.msra.gmra.mrb[10].mxu0 %v21_v56  ;;  %v291_v56 = vld [vmem:[%s8244_s1 + $0x7a0] sm:$0xff] }
  0xc4   :  { %4213 = vmatmul.mubr.f32.vlgmr.msra.gmra.mrb[10].mxu1 %v22_v58  ;;  %5345 = vmatpush3.bf16.msra.mxu0 %v5344_v57  ;;  %v292_v57 = vld [vmem:[%s8244_s1 + $0x7a8] sm:$0xff]  ;;  %v5398_v58 = vpack.c.bf16 %v276_v55, %v275_v54  ;;  %v325_v54 = vld [vmem:[%s8244_s1 + $0x8b0] sm:$0xff]  ;;  %v326_v55 = vld [vmem:[%s8244_s1 + $0x8b8] sm:$0xff] }
  0xc5   :  { %5369 = vmatpush3.bf16.msra.mxu1 %v5368_v59  ;;  %5346 = vmatprep.subr.bf16.mxu0 %v5922_v0  ;;  %v5422_v59 = vpack.c.bf16 %v292_v57, %v291_v56  ;;  %v5473_v57 = vpack.c.bf16 %v326_v55, %v325_v54 }
  0xc6   :  { %5370 = vmatprep.subr.bf16.mxu1 %v5922_v0  ;;  %4247 = vmatprep.mubr.msk.f32.mxu0 %vm5923_vm0, %v5924_v8 }
  0xc7   :  { %4282 = vmatprep.mubr.msk.f32.mxu1 %vm5923_vm0, %v5924_v8 }
  0xc8   :  { %5348 = vmatpush3.bf16.msra.mxu0 %v5347_v1  ;;  %v5401_v1 = vpack.c.bf16 %v278_v61, %v277_v60  ;;  %v327_v60 = vld [vmem:[%s8244_s1 + $0x8c0] sm:$0xff]  ;;  %v328_v61 = vld [vmem:[%s8244_s1 + $0x8c8] sm:$0xff] }
  0xc9   :  { %5372 = vmatpush3.bf16.msra.mxu1 %v5371_v2  ;;  %5349 = vmatprep.subr.bf16.mxu0 %v5922_v0  ;;  %v5425_v2 = vpack.c.bf16 %v294_v63, %v293_v62  ;;  %v5476_v63 = vpack.c.bf16 %v328_v61, %v327_v60 }
  0xca   :  { %5373 = vmatprep.subr.bf16.mxu1 %v5922_v0 }
  0xcc   :  { %5351 = vmatpush3.bf16.msra.mxu0 %v5350_v7  ;;  %v5404_v7 = vpack.c.bf16 %v280_v4, %v279_v3  ;;  %v329_v3 = vld [vmem:[%s8244_s1 + $0x8d0] sm:$0xff]  ;;  %v330_v4 = vld [vmem:[%s8244_s1 + $0x8d8] sm:$0xff] }
  0xcd   :  { %5375 = vmatpush3.bf16.msra.mxu1 %v5374_v9  ;;  %5352 = vmatprep.subr.bf16.mxu0 %v5922_v0  ;;  %v5428_v9 = vpack.c.bf16 %v296_v6, %v295_v5  ;;  %v5479_v6 = vpack.c.bf16 %v330_v4, %v329_v3  ;;  %v364_v3 = vld [vmem:[%s8244_s1 + $0x9e8] sm:$0xff] }
  0xce   :  { %5376 = vmatprep.subr.bf16.mxu1 %v5922_v0 }
  0xd0   :  { %5354 = vmatpush3.bf16.msra.mxu0 %v5353_v14  ;;  %v5407_v14 = vpack.c.bf16 %v282_v11, %v281_v10  ;;  %v331_v11 = vld [vmem:[%s8244_s1 + $0x8e0] sm:$0xff] }
  0xd1   :  { %5378 = vmatpush3.bf16.msra.mxu1 %v5377_v15  ;;  %5355 = vmatprep.subr.bf16.mxu0 %v5922_v0  ;;  %v5431_v15 = vpack.c.bf16 %v298_v13, %v297_v12  ;;  %v332_v12 = vld [vmem:[%s8244_s1 + $0x8e8] sm:$0xff] }
  0xd2   :  { %5379 = vmatprep.subr.bf16.mxu1 %v5922_v0  ;;  %v5482_v17 = vpack.c.bf16 %v332_v12, %v331_v11  ;;  %v350_v11 = vld [vmem:[%s8244_s1 + $0x978] sm:$0xff]  ;;  %v365_v12 = vld [vmem:[%s8244_s1 + $0x9f0] sm:$0xff] }
  0xd4   :  { %5357 = vmatpush3.bf16.msra.mxu0 %v5356_v20  ;;  %v300_v20 = vld [vmem:[%s8244_s1 + $0x7e8] sm:$0xff] }
  0xd5   :  { %5381 = vmatpush3.bf16.msra.mxu1 %v5380_v21  ;;  %5358 = vmatprep.subr.bf16.mxu0 %v5922_v0  ;;  %v5434_v25 = vpack.c.bf16 %v300_v20, %v299_v19  ;;  %v318_v19 = vld [vmem:[%s8244_s1 + $0x878] sm:$0xff]  ;;  %v333_v20 = vld [vmem:[%s8244_s1 + $0x8f0] sm:$0xff] }
  0xd6   :  { %5382 = vmatprep.subr.bf16.mxu1 %v5922_v0 }
  0xd8   :  { %5360 = vmatpush3.bf16.msra.mxu0 %v5359_v26  ;;  %v285_v26 = vld [vmem:[%s8244_s1 + $0x770] sm:$0xff] }
  0xd9   :  { %5384 = vmatpush3.bf16.msra.mxu1 %v5383_v27  ;;  %5361 = vmatprep.subr.bf16.mxu0 %v5922_v0  ;;  %v286_v27 = vld [vmem:[%s8244_s1 + $0x778] sm:$0xff] }
  0xda   :  { %5385 = vmatprep.subr.bf16.mxu1 %v5922_v0  ;;  %v5413_v30 = vpack.c.bf16 %v286_v27, %v285_v26  ;;  %v351_v26 = vld [vmem:[%s8244_s1 + $0x980] sm:$0xff]  ;;  %v352_v27 = vld [vmem:[%s8244_s1 + $0x988] sm:$0xff] }
  0xdc   :  { %5363 = vmatpush3.bf16.msra.mxu0 %v5362_v32  ;;  %v303_v32 = vld [vmem:[%s8244_s1 + $0x800] sm:$0xff] }
  0xdd   :  { %5387 = vmatpush3.bf16.msra.mxu1 %v5386_v33  ;;  %5364 = vmatprep.subr.bf16.mxu0 %v5922_v0  ;;  %v304_v33 = vld [vmem:[%s8244_s1 + $0x808] sm:$0xff] }
  0xde   :  { %5388 = vmatprep.subr.bf16.mxu1 %v5922_v0  ;;  %v5440_v37 = vpack.c.bf16 %v304_v33, %v303_v32  ;;  %v337_v32 = vld [vmem:[%s8244_s1 + $0x910] sm:$0xff]  ;;  %v338_v33 = vld [vmem:[%s8244_s1 + $0x918] sm:$0xff] }
  0xe0   :  { %5366 = vmatpush3.bf16.msra.mxu0 %v5365_v38  ;;  %v26_v38 = vld [vmem:[%s8245_s0 + $0x1e] sm:$0x3] }
  0xe1   :  { %5390 = vmatpush3.bf16.msra.mxu1 %v5389_v39  ;;  %5391 = vmatprep.subr.bf16.mxu0 %v5922_v0  ;;  %v5464_v39 = vpack.c.bf16 %v320_v35, %v319_v34  ;;  %v353_v34 = vld [vmem:[%s8244_s1 + $0x990] sm:$0xff]  ;;  %v354_v35 = vld [vmem:[%s8244_s1 + $0x998] sm:$0xff] }
  0xe2   :  { %5415 = vmatprep.subr.bf16.mxu1 %v5922_v0 }
  0xe3   :  { %4248 = vmatmul.mubr.f32.vlgmr.msra.gmra.mrb[12].mxu0 %v23_v44  ;;  %v5443_v44 = vpack.c.bf16 %v306_v41, %v305_v40  ;;  %v355_v40 = vld [vmem:[%s8244_s1 + $0x9a0] sm:$0xff]  ;;  %v356_v41 = vld [vmem:[%s8244_s1 + $0x9a8] sm:$0xff] }
  0xe4   :  { %4283 = vmatmul.mubr.f32.vlgmr.msra.gmra.mrb[12].mxu1 %v24_v46  ;;  %5393 = vmatpush3.bf16.msra.mxu0 %v5392_v45  ;;  %v5467_v45 = vpack.c.bf16 %v322_v43, %v321_v42  ;;  %v307_v46 = vld [vmem:[%s8244_s1 + $0x820] sm:$0xff]  ;;  %v5518_v43 = vpack.c.bf16 %v356_v41, %v355_v40 }
  0xe5   :  { %5417 = vmatpush3.bf16.msra.mxu1 %v5416_v47  ;;  %5394 = vmatprep.subr.bf16.mxu0 %v5922_v0  ;;  %v308_v47 = vld [vmem:[%s8244_s1 + $0x828] sm:$0xff] }
  0xe6   :  { %5418 = vmatprep.subr.bf16.mxu1 %v5922_v0  ;;  %4317 = vmatprep.mubr.msk.f32.mxu0 %vm5923_vm0, %v5924_v8  ;;  %v5446_v50 = vpack.c.bf16 %v308_v47, %v307_v46  ;;  %v357_v46 = vld [vmem:[%s8244_s1 + $0x9b0] sm:$0xff]  ;;  %v358_v47 = vld [vmem:[%s8244_s1 + $0x9b8] sm:$0xff] }
  0xe7   :  { %4352 = vmatprep.mubr.msk.f32.mxu1 %vm5923_vm0, %v5924_v8  ;;  %v5521_v49 = vpack.c.bf16 %v358_v47, %v357_v46 }
  0xe8   :  { %5396 = vmatpush3.bf16.msra.mxu0 %v5395_v52  ;;  %v309_v52 = vld [vmem:[%s8244_s1 + $0x830] sm:$0xff] }
  0xe9   :  { %5420 = vmatpush3.bf16.msra.mxu1 %v5419_v53  ;;  %5397 = vmatprep.subr.bf16.mxu0 %v5922_v0  ;;  %v310_v53 = vld [vmem:[%s8244_s1 + $0x838] sm:$0xff] }
  0xea   :  { %5421 = vmatprep.subr.bf16.mxu1 %v5922_v0  ;;  %v5449_v56 = vpack.c.bf16 %v310_v53, %v309_v52  ;;  %v359_v52 = vld [vmem:[%s8244_s1 + $0x9c0] sm:$0xff]  ;;  %v360_v53 = vld [vmem:[%s8244_s1 + $0x9c8] sm:$0xff] }
  0xeb   :  { %v5524_v55 = vpack.c.bf16 %v360_v53, %v359_v52 }
  0xec   :  { %5399 = vmatpush3.bf16.msra.mxu0 %v5398_v58  ;;  %v311_v58 = vld [vmem:[%s8244_s1 + $0x840] sm:$0xff] }
  0xed   :  { %5423 = vmatpush3.bf16.msra.mxu1 %v5422_v59  ;;  %5400 = vmatprep.subr.bf16.mxu0 %v5922_v0  ;;  %v312_v59 = vld [vmem:[%s8244_s1 + $0x848] sm:$0xff] }
  0xee   :  { %5424 = vmatprep.subr.bf16.mxu1 %v5922_v0  ;;  %v5452_v62 = vpack.c.bf16 %v312_v59, %v311_v58  ;;  %v361_v58 = vld [vmem:[%s8244_s1 + $0x9d0] sm:$0xff]  ;;  %v362_v59 = vld [vmem:[%s8244_s1 + $0x9d8] sm:$0xff] }
  0xef   :  { %v5527_v61 = vpack.c.bf16 %v362_v59, %v361_v58  ;;  %v396_v58 = vld [vmem:[%s8244_s1 + $0xae8] sm:$0xff] }
  0xf0   :  { %5402 = vmatpush3.bf16.msra.mxu0 %v5401_v1  ;;  %v313_v1 = vld [vmem:[%s8244_s1 + $0x850] sm:$0xff] }
  0xf1   :  { %5426 = vmatpush3.bf16.msra.mxu1 %v5425_v2  ;;  %5403 = vmatprep.subr.bf16.mxu0 %v5922_v0  ;;  %v314_v2 = vld [vmem:[%s8244_s1 + $0x858] sm:$0xff] }
  0xf2   :  { %5427 = vmatprep.subr.bf16.mxu1 %v5922_v0  ;;  %v5455_v5 = vpack.c.bf16 %v314_v2, %v313_v1  ;;  %v363_v2 = vld [vmem:[%s8244_s1 + $0x9e0] sm:$0xff] }
  0xf4   :  { %5405 = vmatpush3.bf16.msra.mxu0 %v5404_v7  ;;  %v315_v7 = vld [vmem:[%s8244_s1 + $0x860] sm:$0xff] }
  0xf5   :  { %5429 = vmatpush3.bf16.msra.mxu1 %v5428_v9  ;;  %5406 = vmatprep.subr.bf16.mxu0 %v5922_v0  ;;  %v316_v9 = vld [vmem:[%s8244_s1 + $0x868] sm:$0xff] }
  0xf6   :  { %v689_v18 = vpop.f32.mrb[0].mxu0  ;;  %5430 = vmatprep.subr.bf16.mxu1 %v5922_v0  ;;  %v5458_v16 = vpack.c.bf16 %v316_v9, %v315_v7  ;;  %v5530_v9 = vpack.c.bf16 %v364_v3, %v363_v2  ;;  %v382_v2 = vld [vmem:[%s8244_s1 + $0xa78] sm:$0xff]  ;;  %v397_v3 = vld [vmem:[%s8244_s1 + $0xaf0] sm:$0xff] }
  0xf7   :  { %3143 = vst [vmem:[%s8246_s2] sm:$0x3] %v689_v18  ;;  %v759_v21 = vpop.f32.mrb[0].mxu1  ;;  %v3829_v22 = vpop.f32.mrb[1].mxu0  ;;  %v317_v18 = vld [vmem:[%s8244_s1 + $0x870] sm:$0xff] }
  0xf8   :  { %3144 = vst [vmem:[%s8246_s2 + $0x2] sm:$0x3] %v759_v21  ;;  %v3864_v23 = vpop.f32.mrb[1].mxu1  ;;  %5408 = vmatpush3.bf16.msra.mxu0 %v5407_v14  ;;  %v334_v21 = vld [vmem:[%s8244_s1 + $0x8f8] sm:$0xff]  ;;  %v5461_v22 = vpack.c.bf16 %v318_v19, %v317_v18  ;;  %v383_v18 = vld [vmem:[%s8244_s1 + $0xa80] sm:$0xff]  ;;  %v384_v19 = vld [vmem:[%s8244_s1 + $0xa88] sm:$0xff] }
  0xf9   :  { %5432 = vmatpush3.bf16.msra.mxu1 %v5431_v15  ;;  %5409 = vmatprep.subr.bf16.mxu0 %v5922_v0  ;;  %v5485_v23 = vpack.c.bf16 %v334_v21, %v333_v20  ;;  %v29_v20 = vld [vmem:[%s8245_s0 + $0x24] sm:$0x3] }
  0xfa   :  { %5433 = vmatprep.subr.bf16.mxu1 %v5922_v0 }
  0xfc   :  { %5411 = vmatpush3.bf16.msra.mxu0 %v5410_v24  ;;  %v335_v24 = vld [vmem:[%s8244_s1 + $0x900] sm:$0xff] }
  0xfd   :  { %5435 = vmatpush3.bf16.msra.mxu1 %v5434_v25  ;;  %5412 = vmatprep.subr.bf16.mxu0 %v5922_v0  ;;  %v336_v25 = vld [vmem:[%s8244_s1 + $0x908] sm:$0xff] }
  0xfe   :  { %5436 = vmatprep.subr.bf16.mxu1 %v5922_v0  ;;  %v5488_v29 = vpack.c.bf16 %v336_v25, %v335_v24  ;;  %v369_v24 = vld [vmem:[%s8244_s1 + $0xa10] sm:$0xff]  ;;  %v370_v25 = vld [vmem:[%s8244_s1 + $0xa18] sm:$0xff] }
 0x100   :  { %5414 = vmatpush3.bf16.msra.mxu0 %v5413_v30  ;;  %v28_v30 = vld [vmem:[%s8245_s0 + $0x22] sm:$0x3] }
 0x101   :  { %5438 = vmatpush3.bf16.msra.mxu1 %v5437_v31  ;;  %5439 = vmatprep.subr.bf16.mxu0 %v5922_v0  ;;  %v5512_v31 = vpack.c.bf16 %v352_v27, %v351_v26  ;;  %v385_v26 = vld [vmem:[%s8244_s1 + $0xa90] sm:$0xff]  ;;  %v386_v27 = vld [vmem:[%s8244_s1 + $0xa98] sm:$0xff] }
 0x102   :  { %5463 = vmatprep.subr.bf16.mxu1 %v5922_v0 }
 0x103   :  { %4318 = vmatmul.mubr.f32.vlgmr.msra.gmra.mrb[14].mxu0 %v25_v36  ;;  %v5491_v36 = vpack.c.bf16 %v338_v33, %v337_v32  ;;  %v387_v32 = vld [vmem:[%s8244_s1 + $0xaa0] sm:$0xff]  ;;  %v388_v33 = vld [vmem:[%s8244_s1 + $0xaa8] sm:$0xff] }
 0x104   :  { %4353 = vmatmul.mubr.f32.vlgmr.msra.gmra.mrb[14].mxu1 %v26_v38  ;;  %5441 = vmatpush3.bf16.msra.mxu0 %v5440_v37  ;;  %v5515_v37 = vpack.c.bf16 %v354_v35, %v353_v34  ;;  %v339_v38 = vld [vmem:[%s8244_s1 + $0x920] sm:$0xff]  ;;  %v5566_v35 = vpack.c.bf16 %v388_v33, %v387_v32 }
 0x105   :  { %5465 = vmatpush3.bf16.msra.mxu1 %v5464_v39  ;;  %5442 = vmatprep.subr.bf16.mxu0 %v5922_v0  ;;  %v340_v39 = vld [vmem:[%s8244_s1 + $0x928] sm:$0xff] }
 0x106   :  { %5466 = vmatprep.subr.bf16.mxu1 %v5922_v0  ;;  %4387 = vmatprep.mubr.msk.f32.mxu0 %vm5923_vm0, %v5924_v8  ;;  %v5494_v42 = vpack.c.bf16 %v340_v39, %v339_v38  ;;  %v389_v38 = vld [vmem:[%s8244_s1 + $0xab0] sm:$0xff]  ;;  %v390_v39 = vld [vmem:[%s8244_s1 + $0xab8] sm:$0xff] }
 0x107   :  { %4422 = vmatprep.mubr.msk.f32.mxu1 %vm5923_vm0, %v5924_v8  ;;  %v5569_v41 = vpack.c.bf16 %v390_v39, %v389_v38 }
 0x108   :  { %5444 = vmatpush3.bf16.msra.mxu0 %v5443_v44  ;;  %v341_v44 = vld [vmem:[%s8244_s1 + $0x930] sm:$0xff] }
 0x109   :  { %5468 = vmatpush3.bf16.msra.mxu1 %v5467_v45  ;;  %5445 = vmatprep.subr.bf16.mxu0 %v5922_v0  ;;  %v342_v45 = vld [vmem:[%s8244_s1 + $0x938] sm:$0xff] }
 0x10a   :  { %5469 = vmatprep.subr.bf16.mxu1 %v5922_v0  ;;  %v5497_v48 = vpack.c.bf16 %v342_v45, %v341_v44  ;;  %v391_v44 = vld [vmem:[%s8244_s1 + $0xac0] sm:$0xff]  ;;  %v392_v45 = vld [vmem:[%s8244_s1 + $0xac8] sm:$0xff] }
 0x10b   :  { %v5572_v47 = vpack.c.bf16 %v392_v45, %v391_v44 }
 0x10c   :  { %5447 = vmatpush3.bf16.msra.mxu0 %v5446_v50  ;;  %v343_v50 = vld [vmem:[%s8244_s1 + $0x940] sm:$0xff] }
 0x10d   :  { %5471 = vmatpush3.bf16.msra.mxu1 %v5470_v51  ;;  %5448 = vmatprep.subr.bf16.mxu0 %v5922_v0  ;;  %v344_v51 = vld [vmem:[%s8244_s1 + $0x948] sm:$0xff] }
 0x10e   :  { %5472 = vmatprep.subr.bf16.mxu1 %v5922_v0  ;;  %v5500_v54 = vpack.c.bf16 %v344_v51, %v343_v50  ;;  %v393_v50 = vld [vmem:[%s8244_s1 + $0xad0] sm:$0xff]  ;;  %v394_v51 = vld [vmem:[%s8244_s1 + $0xad8] sm:$0xff] }
 0x10f   :  { %v5575_v53 = vpack.c.bf16 %v394_v51, %v393_v50  ;;  %v428_v50 = vld [vmem:[%s8244_s1 + $0xbe8] sm:$0xff] }
 0x110   :  { %5450 = vmatpush3.bf16.msra.mxu0 %v5449_v56  ;;  %v345_v56 = vld [vmem:[%s8244_s1 + $0x950] sm:$0xff] }
 0x111   :  { %5474 = vmatpush3.bf16.msra.mxu1 %v5473_v57  ;;  %5451 = vmatprep.subr.bf16.mxu0 %v5922_v0  ;;  %v346_v57 = vld [vmem:[%s8244_s1 + $0x958] sm:$0xff] }
 0x112   :  { %5475 = vmatprep.subr.bf16.mxu1 %v5922_v0  ;;  %v5503_v60 = vpack.c.bf16 %v346_v57, %v345_v56  ;;  %v395_v57 = vld [vmem:[%s8244_s1 + $0xae0] sm:$0xff] }
 0x114   :  { %5453 = vmatpush3.bf16.msra.mxu0 %v5452_v62  ;;  %v347_v62 = vld [vmem:[%s8244_s1 + $0x960] sm:$0xff] }
 0x115   :  { %5477 = vmatpush3.bf16.msra.mxu1 %v5476_v63  ;;  %5454 = vmatprep.subr.bf16.mxu0 %v5922_v0  ;;  %v348_v63 = vld [vmem:[%s8244_s1 + $0x968] sm:$0xff] }
 0x116   :  { %v829_v10 = vpop.f32.mrb[2].mxu0  ;;  %5478 = vmatprep.subr.bf16.mxu1 %v5922_v0  ;;  %v5506_v7 = vpack.c.bf16 %v348_v63, %v347_v62  ;;  %v5578_v63 = vpack.c.bf16 %v396_v58, %v395_v57  ;;  %v414_v57 = vld [vmem:[%s8244_s1 + $0xb78] sm:$0xff]  ;;  %v429_v58 = vld [vmem:[%s8244_s1 + $0xbf0] sm:$0xff] }
 0x117   :  { %3145 = vst [vmem:[%s8246_s2 + $0x4] sm:$0x3] %v829_v10  ;;  %v899_v13 = vpop.f32.mrb[2].mxu1  ;;  %v3899_v14 = vpop.f32.mrb[3].mxu0  ;;  %v349_v10 = vld [vmem:[%s8244_s1 + $0x970] sm:$0xff] }
 0x118   :  { %3146 = vst [vmem:[%s8246_s2 + $0x6] sm:$0x3] %v899_v13  ;;  %v3934_v15 = vpop.f32.mrb[3].mxu1  ;;  %5456 = vmatpush3.bf16.msra.mxu0 %v5455_v5  ;;  %v366_v13 = vld [vmem:[%s8244_s1 + $0x9f8] sm:$0xff]  ;;  %v5509_v14 = vpack.c.bf16 %v350_v11, %v349_v10  ;;  %v415_v10 = vld [vmem:[%s8244_s1 + $0xb80] sm:$0xff]  ;;  %v416_v11 = vld [vmem:[%s8244_s1 + $0xb88] sm:$0xff] }
 0x119   :  { %5480 = vmatpush3.bf16.msra.mxu1 %v5479_v6  ;;  %5457 = vmatprep.subr.bf16.mxu0 %v5922_v0  ;;  %v5533_v15 = vpack.c.bf16 %v366_v13, %v365_v12  ;;  %v31_v12 = vld [vmem:[%s8245_s0 + $0x28] sm:$0x3] }
 0x11a   :  { %5481 = vmatprep.subr.bf16.mxu1 %v5922_v0 }
 0x11c   :  { %5459 = vmatpush3.bf16.msra.mxu0 %v5458_v16  ;;  %v367_v16 = vld [vmem:[%s8244_s1 + $0xa00] sm:$0xff] }
 0x11d   :  { %5483 = vmatpush3.bf16.msra.mxu1 %v5482_v17  ;;  %5460 = vmatprep.subr.bf16.mxu0 %v5922_v0  ;;  %v368_v17 = vld [vmem:[%s8244_s1 + $0xa08] sm:$0xff] }
 0x11e   :  { %5484 = vmatprep.subr.bf16.mxu1 %v5922_v0  ;;  %v5536_v21 = vpack.c.bf16 %v368_v17, %v367_v16  ;;  %v401_v16 = vld [vmem:[%s8244_s1 + $0xb10] sm:$0xff]  ;;  %v402_v17 = vld [vmem:[%s8244_s1 + $0xb18] sm:$0xff] }
 0x120   :  { %5462 = vmatpush3.bf16.msra.mxu0 %v5461_v22  ;;  %v30_v22 = vld [vmem:[%s8245_s0 + $0x26] sm:$0x3] }
 0x121   :  { %5486 = vmatpush3.bf16.msra.mxu1 %v5485_v23  ;;  %5487 = vmatprep.subr.bf16.mxu0 %v5922_v0  ;;  %v5560_v23 = vpack.c.bf16 %v384_v19, %v383_v18  ;;  %v417_v18 = vld [vmem:[%s8244_s1 + $0xb90] sm:$0xff]  ;;  %v418_v19 = vld [vmem:[%s8244_s1 + $0xb98] sm:$0xff] }
 0x122   :  { %5511 = vmatprep.subr.bf16.mxu1 %v5922_v0 }
 0x123   :  { %4388 = vmatmul.mubr.f32.vlgmr.msra.gmra.mrb[16].mxu0 %v27_v28  ;;  %v5539_v28 = vpack.c.bf16 %v370_v25, %v369_v24  ;;  %v419_v24 = vld [vmem:[%s8244_s1 + $0xba0] sm:$0xff]  ;;  %v420_v25 = vld [vmem:[%s8244_s1 + $0xba8] sm:$0xff] }
 0x124   :  { %4423 = vmatmul.mubr.f32.vlgmr.msra.gmra.mrb[16].mxu1 %v28_v30  ;;  %5489 = vmatpush3.bf16.msra.mxu0 %v5488_v29  ;;  %v5563_v29 = vpack.c.bf16 %v386_v27, %v385_v26  ;;  %v371_v30 = vld [vmem:[%s8244_s1 + $0xa20] sm:$0xff]  ;;  %v5614_v27 = vpack.c.bf16 %v420_v25, %v419_v24 }
 0x125   :  { %5513 = vmatpush3.bf16.msra.mxu1 %v5512_v31  ;;  %5490 = vmatprep.subr.bf16.mxu0 %v5922_v0  ;;  %v372_v31 = vld [vmem:[%s8244_s1 + $0xa28] sm:$0xff] }
 0x126   :  { %5514 = vmatprep.subr.bf16.mxu1 %v5922_v0  ;;  %4457 = vmatprep.mubr.msk.f32.mxu0 %vm5923_vm0, %v5924_v8  ;;  %v5542_v34 = vpack.c.bf16 %v372_v31, %v371_v30  ;;  %v421_v30 = vld [vmem:[%s8244_s1 + $0xbb0] sm:$0xff]  ;;  %v422_v31 = vld [vmem:[%s8244_s1 + $0xbb8] sm:$0xff] }
 0x127   :  { %4492 = vmatprep.mubr.msk.f32.mxu1 %vm5923_vm0, %v5924_v8  ;;  %v5617_v33 = vpack.c.bf16 %v422_v31, %v421_v30 }
 0x128   :  { %5492 = vmatpush3.bf16.msra.mxu0 %v5491_v36  ;;  %v373_v36 = vld [vmem:[%s8244_s1 + $0xa30] sm:$0xff] }
 0x129   :  { %5516 = vmatpush3.bf16.msra.mxu1 %v5515_v37  ;;  %5493 = vmatprep.subr.bf16.mxu0 %v5922_v0  ;;  %v374_v37 = vld [vmem:[%s8244_s1 + $0xa38] sm:$0xff] }
 0x12a   :  { %5517 = vmatprep.subr.bf16.mxu1 %v5922_v0  ;;  %v5545_v40 = vpack.c.bf16 %v374_v37, %v373_v36  ;;  %v423_v36 = vld [vmem:[%s8244_s1 + $0xbc0] sm:$0xff]  ;;  %v424_v37 = vld [vmem:[%s8244_s1 + $0xbc8] sm:$0xff] }
 0x12b   :  { %v5620_v39 = vpack.c.bf16 %v424_v37, %v423_v36 }
 0x12c   :  { %5495 = vmatpush3.bf16.msra.mxu0 %v5494_v42  ;;  %v375_v42 = vld [vmem:[%s8244_s1 + $0xa40] sm:$0xff] }
 0x12d   :  { %5519 = vmatpush3.bf16.msra.mxu1 %v5518_v43  ;;  %5496 = vmatprep.subr.bf16.mxu0 %v5922_v0  ;;  %v376_v43 = vld [vmem:[%s8244_s1 + $0xa48] sm:$0xff] }
 0x12e   :  { %5520 = vmatprep.subr.bf16.mxu1 %v5922_v0  ;;  %v5548_v46 = vpack.c.bf16 %v376_v43, %v375_v42  ;;  %v425_v42 = vld [vmem:[%s8244_s1 + $0xbd0] sm:$0xff]  ;;  %v426_v43 = vld [vmem:[%s8244_s1 + $0xbd8] sm:$0xff] }
 0x12f   :  { %v5623_v45 = vpack.c.bf16 %v426_v43, %v425_v42  ;;  %v460_v42 = vld [vmem:[%s8244_s1 + $0xce8] sm:$0xff] }
 0x130   :  { %5498 = vmatpush3.bf16.msra.mxu0 %v5497_v48  ;;  %v377_v48 = vld [vmem:[%s8244_s1 + $0xa50] sm:$0xff] }
 0x131   :  { %5522 = vmatpush3.bf16.msra.mxu1 %v5521_v49  ;;  %5499 = vmatprep.subr.bf16.mxu0 %v5922_v0  ;;  %v378_v49 = vld [vmem:[%s8244_s1 + $0xa58] sm:$0xff] }
 0x132   :  { %5523 = vmatprep.subr.bf16.mxu1 %v5922_v0  ;;  %v5551_v52 = vpack.c.bf16 %v378_v49, %v377_v48  ;;  %v427_v49 = vld [vmem:[%s8244_s1 + $0xbe0] sm:$0xff] }
 0x134   :  { %5501 = vmatpush3.bf16.msra.mxu0 %v5500_v54  ;;  %v379_v54 = vld [vmem:[%s8244_s1 + $0xa60] sm:$0xff] }
 0x135   :  { %5525 = vmatpush3.bf16.msra.mxu1 %v5524_v55  ;;  %5502 = vmatprep.subr.bf16.mxu0 %v5922_v0  ;;  %v380_v55 = vld [vmem:[%s8244_s1 + $0xa68] sm:$0xff] }
 0x136   :  { %v969_v1 = vpop.f32.mrb[4].mxu0  ;;  %5526 = vmatprep.subr.bf16.mxu1 %v5922_v0  ;;  %v5554_v62 = vpack.c.bf16 %v380_v55, %v379_v54  ;;  %v5626_v55 = vpack.c.bf16 %v428_v50, %v427_v49  ;;  %v446_v49 = vld [vmem:[%s8244_s1 + $0xc78] sm:$0xff]  ;;  %v461_v50 = vld [vmem:[%s8244_s1 + $0xcf0] sm:$0xff] }
 0x137   :  { %3147 = vst [vmem:[%s8246_s2 + $0x8] sm:$0x3] %v969_v1  ;;  %v1039_v4 = vpop.f32.mrb[4].mxu1  ;;  %v3969_v5 = vpop.f32.mrb[5].mxu0  ;;  %v381_v1 = vld [vmem:[%s8244_s1 + $0xa70] sm:$0xff] }
 0x138   :  { %3148 = vst [vmem:[%s8246_s2 + $0xa] sm:$0x3] %v1039_v4  ;;  %v4004_v6 = vpop.f32.mrb[5].mxu1  ;;  %5504 = vmatpush3.bf16.msra.mxu0 %v5503_v60  ;;  %v398_v4 = vld [vmem:[%s8244_s1 + $0xaf8] sm:$0xff]  ;;  %v5557_v5 = vpack.c.bf16 %v382_v2, %v381_v1  ;;  %v447_v1 = vld [vmem:[%s8244_s1 + $0xc80] sm:$0xff]  ;;  %v448_v2 = vld [vmem:[%s8244_s1 + $0xc88] sm:$0xff] }
 0x139   :  { %5528 = vmatpush3.bf16.msra.mxu1 %v5527_v61  ;;  %5505 = vmatprep.subr.bf16.mxu0 %v5922_v0  ;;  %v5581_v6 = vpack.c.bf16 %v398_v4, %v397_v3  ;;  %v33_v3 = vld [vmem:[%s8245_s0 + $0x2c] sm:$0x3] }
 0x13a   :  { %5529 = vmatprep.subr.bf16.mxu1 %v5922_v0 }
 0x13c   :  { %5507 = vmatpush3.bf16.msra.mxu0 %v5506_v7  ;;  %v399_v7 = vld [vmem:[%s8244_s1 + $0xb00] sm:$0xff] }
 0x13d   :  { %5531 = vmatpush3.bf16.msra.mxu1 %v5530_v9  ;;  %5508 = vmatprep.subr.bf16.mxu0 %v5922_v0  ;;  %v400_v9 = vld [vmem:[%s8244_s1 + $0xb08] sm:$0xff] }
 0x13e   :  { %5532 = vmatprep.subr.bf16.mxu1 %v5922_v0  ;;  %v5584_v13 = vpack.c.bf16 %v400_v9, %v399_v7  ;;  %v433_v7 = vld [vmem:[%s8244_s1 + $0xc10] sm:$0xff]  ;;  %v434_v9 = vld [vmem:[%s8244_s1 + $0xc18] sm:$0xff] }
 0x140   :  { %5510 = vmatpush3.bf16.msra.mxu0 %v5509_v14  ;;  %v32_v14 = vld [vmem:[%s8245_s0 + $0x2a] sm:$0x3] }
 0x141   :  { %5534 = vmatpush3.bf16.msra.mxu1 %v5533_v15  ;;  %5535 = vmatprep.subr.bf16.mxu0 %v5922_v0  ;;  %v5608_v15 = vpack.c.bf16 %v416_v11, %v415_v10  ;;  %v449_v10 = vld [vmem:[%s8244_s1 + $0xc90] sm:$0xff]  ;;  %v450_v11 = vld [vmem:[%s8244_s1 + $0xc98] sm:$0xff] }
 0x142   :  { %5559 = vmatprep.subr.bf16.mxu1 %v5922_v0 }
 0x143   :  { %4458 = vmatmul.mubr.f32.vlgmr.msra.gmra.mrb[18].mxu0 %v29_v20  ;;  %v5587_v20 = vpack.c.bf16 %v402_v17, %v401_v16  ;;  %v451_v16 = vld [vmem:[%s8244_s1 + $0xca0] sm:$0xff]  ;;  %v452_v17 = vld [vmem:[%s8244_s1 + $0xca8] sm:$0xff] }
 0x144   :  { %4493 = vmatmul.mubr.f32.vlgmr.msra.gmra.mrb[18].mxu1 %v30_v22  ;;  %5537 = vmatpush3.bf16.msra.mxu0 %v5536_v21  ;;  %v5611_v21 = vpack.c.bf16 %v418_v19, %v417_v18  ;;  %v403_v22 = vld [vmem:[%s8244_s1 + $0xb20] sm:$0xff]  ;;  %v5662_v19 = vpack.c.bf16 %v452_v17, %v451_v16 }
 0x145   :  { %5561 = vmatpush3.bf16.msra.mxu1 %v5560_v23  ;;  %5538 = vmatprep.subr.bf16.mxu0 %v5922_v0  ;;  %v404_v23 = vld [vmem:[%s8244_s1 + $0xb28] sm:$0xff] }
 0x146   :  { %5562 = vmatprep.subr.bf16.mxu1 %v5922_v0  ;;  %4527 = vmatprep.mubr.msk.f32.mxu0 %vm5923_vm0, %v5924_v8  ;;  %v5590_v26 = vpack.c.bf16 %v404_v23, %v403_v22  ;;  %v453_v22 = vld [vmem:[%s8244_s1 + $0xcb0] sm:$0xff]  ;;  %v454_v23 = vld [vmem:[%s8244_s1 + $0xcb8] sm:$0xff] }
 0x147   :  { %4562 = vmatprep.mubr.msk.f32.mxu1 %vm5923_vm0, %v5924_v8  ;;  %v5665_v25 = vpack.c.bf16 %v454_v23, %v453_v22 }
 0x148   :  { %5540 = vmatpush3.bf16.msra.mxu0 %v5539_v28  ;;  %v405_v28 = vld [vmem:[%s8244_s1 + $0xb30] sm:$0xff] }
 0x149   :  { %5564 = vmatpush3.bf16.msra.mxu1 %v5563_v29  ;;  %5541 = vmatprep.subr.bf16.mxu0 %v5922_v0  ;;  %v406_v29 = vld [vmem:[%s8244_s1 + $0xb38] sm:$0xff] }
 0x14a   :  { %5565 = vmatprep.subr.bf16.mxu1 %v5922_v0  ;;  %v5593_v32 = vpack.c.bf16 %v406_v29, %v405_v28  ;;  %v455_v28 = vld [vmem:[%s8244_s1 + $0xcc0] sm:$0xff]  ;;  %v456_v29 = vld [vmem:[%s8244_s1 + $0xcc8] sm:$0xff] }
 0x14b   :  { %v5668_v31 = vpack.c.bf16 %v456_v29, %v455_v28 }
 0x14c   :  { %5543 = vmatpush3.bf16.msra.mxu0 %v5542_v34  ;;  %v407_v34 = vld [vmem:[%s8244_s1 + $0xb40] sm:$0xff] }
 0x14d   :  { %5567 = vmatpush3.bf16.msra.mxu1 %v5566_v35  ;;  %5544 = vmatprep.subr.bf16.mxu0 %v5922_v0  ;;  %v408_v35 = vld [vmem:[%s8244_s1 + $0xb48] sm:$0xff] }
 0x14e   :  { %5568 = vmatprep.subr.bf16.mxu1 %v5922_v0  ;;  %v5596_v38 = vpack.c.bf16 %v408_v35, %v407_v34  ;;  %v457_v34 = vld [vmem:[%s8244_s1 + $0xcd0] sm:$0xff]  ;;  %v458_v35 = vld [vmem:[%s8244_s1 + $0xcd8] sm:$0xff] }
 0x14f   :  { %v5671_v37 = vpack.c.bf16 %v458_v35, %v457_v34  ;;  %v492_v34 = vld [vmem:[%s8244_s1 + $0xde8] sm:$0xff] }
 0x150   :  { %5546 = vmatpush3.bf16.msra.mxu0 %v5545_v40  ;;  %v409_v40 = vld [vmem:[%s8244_s1 + $0xb50] sm:$0xff] }
 0x151   :  { %5570 = vmatpush3.bf16.msra.mxu1 %v5569_v41  ;;  %5547 = vmatprep.subr.bf16.mxu0 %v5922_v0  ;;  %v410_v41 = vld [vmem:[%s8244_s1 + $0xb58] sm:$0xff] }
 0x152   :  { %5571 = vmatprep.subr.bf16.mxu1 %v5922_v0  ;;  %v5599_v44 = vpack.c.bf16 %v410_v41, %v409_v40  ;;  %v459_v41 = vld [vmem:[%s8244_s1 + $0xce0] sm:$0xff] }
 0x154   :  { %5549 = vmatpush3.bf16.msra.mxu0 %v5548_v46  ;;  %v411_v46 = vld [vmem:[%s8244_s1 + $0xb60] sm:$0xff] }
 0x155   :  { %5573 = vmatpush3.bf16.msra.mxu1 %v5572_v47  ;;  %5550 = vmatprep.subr.bf16.mxu0 %v5922_v0  ;;  %v412_v47 = vld [vmem:[%s8244_s1 + $0xb68] sm:$0xff] }
 0x156   :  { %v1109_v56 = vpop.f32.mrb[6].mxu0  ;;  %5574 = vmatprep.subr.bf16.mxu1 %v5922_v0  ;;  %v5602_v54 = vpack.c.bf16 %v412_v47, %v411_v46  ;;  %v5674_v47 = vpack.c.bf16 %v460_v42, %v459_v41  ;;  %v478_v41 = vld [vmem:[%s8244_s1 + $0xd78] sm:$0xff]  ;;  %v493_v42 = vld [vmem:[%s8244_s1 + $0xdf0] sm:$0xff] }
 0x157   :  { %3149 = vst [vmem:[%s8246_s2 + $0xc] sm:$0x3] %v1109_v56  ;;  %v1179_v59 = vpop.f32.mrb[6].mxu1  ;;  %v4039_v60 = vpop.f32.mrb[7].mxu0  ;;  %v413_v56 = vld [vmem:[%s8244_s1 + $0xb70] sm:$0xff] }
 0x158   :  { %3150 = vst [vmem:[%s8246_s2 + $0xe] sm:$0x3] %v1179_v59  ;;  %v4074_v61 = vpop.f32.mrb[7].mxu1  ;;  %5552 = vmatpush3.bf16.msra.mxu0 %v5551_v52  ;;  %v430_v59 = vld [vmem:[%s8244_s1 + $0xbf8] sm:$0xff]  ;;  %v5605_v60 = vpack.c.bf16 %v414_v57, %v413_v56  ;;  %v479_v56 = vld [vmem:[%s8244_s1 + $0xd80] sm:$0xff]  ;;  %v480_v57 = vld [vmem:[%s8244_s1 + $0xd88] sm:$0xff] }
 0x159   :  { %5576 = vmatpush3.bf16.msra.mxu1 %v5575_v53  ;;  %5553 = vmatprep.subr.bf16.mxu0 %v5922_v0  ;;  %v5629_v61 = vpack.c.bf16 %v430_v59, %v429_v58  ;;  %v35_v58 = vld [vmem:[%s8245_s0 + $0x30] sm:$0x3] }
 0x15a   :  { %5577 = vmatprep.subr.bf16.mxu1 %v5922_v0 }
 0x15c   :  { %5555 = vmatpush3.bf16.msra.mxu0 %v5554_v62  ;;  %v431_v62 = vld [vmem:[%s8244_s1 + $0xc00] sm:$0xff] }
 0x15d   :  { %5579 = vmatpush3.bf16.msra.mxu1 %v5578_v63  ;;  %5556 = vmatprep.subr.bf16.mxu0 %v5922_v0  ;;  %v432_v63 = vld [vmem:[%s8244_s1 + $0xc08] sm:$0xff] }
 0x15e   :  { %5580 = vmatprep.subr.bf16.mxu1 %v5922_v0  ;;  %v5632_v4 = vpack.c.bf16 %v432_v63, %v431_v62  ;;  %v465_v62 = vld [vmem:[%s8244_s1 + $0xd10] sm:$0xff]  ;;  %v466_v63 = vld [vmem:[%s8244_s1 + $0xd18] sm:$0xff] }
 0x160   :  { %5558 = vmatpush3.bf16.msra.mxu0 %v5557_v5  ;;  %v34_v5 = vld [vmem:[%s8245_s0 + $0x2e] sm:$0x3] }
 0x161   :  { %5582 = vmatpush3.bf16.msra.mxu1 %v5581_v6  ;;  %5583 = vmatprep.subr.bf16.mxu0 %v5922_v0  ;;  %v5656_v6 = vpack.c.bf16 %v448_v2, %v447_v1  ;;  %v481_v1 = vld [vmem:[%s8244_s1 + $0xd90] sm:$0xff]  ;;  %v482_v2 = vld [vmem:[%s8244_s1 + $0xd98] sm:$0xff] }
 0x162   :  { %5607 = vmatprep.subr.bf16.mxu1 %v5922_v0 }
 0x163   :  { %4528 = vmatmul.mubr.f32.vlgmr.msra.gmra.mrb[20].mxu0 %v31_v12  ;;  %v5635_v12 = vpack.c.bf16 %v434_v9, %v433_v7  ;;  %v483_v7 = vld [vmem:[%s8244_s1 + $0xda0] sm:$0xff]  ;;  %v484_v9 = vld [vmem:[%s8244_s1 + $0xda8] sm:$0xff] }
 0x164   :  { %4563 = vmatmul.mubr.f32.vlgmr.msra.gmra.mrb[20].mxu1 %v32_v14  ;;  %5585 = vmatpush3.bf16.msra.mxu0 %v5584_v13  ;;  %v5659_v13 = vpack.c.bf16 %v450_v11, %v449_v10  ;;  %v435_v14 = vld [vmem:[%s8244_s1 + $0xc20] sm:$0xff]  ;;  %v5710_v11 = vpack.c.bf16 %v484_v9, %v483_v7 }
 0x165   :  { %5609 = vmatpush3.bf16.msra.mxu1 %v5608_v15  ;;  %5586 = vmatprep.subr.bf16.mxu0 %v5922_v0  ;;  %v436_v15 = vld [vmem:[%s8244_s1 + $0xc28] sm:$0xff] }
 0x166   :  { %5610 = vmatprep.subr.bf16.mxu1 %v5922_v0  ;;  %4597 = vmatprep.mubr.msk.f32.mxu0 %vm5923_vm0, %v5924_v8  ;;  %v5638_v18 = vpack.c.bf16 %v436_v15, %v435_v14  ;;  %v485_v14 = vld [vmem:[%s8244_s1 + $0xdb0] sm:$0xff]  ;;  %v486_v15 = vld [vmem:[%s8244_s1 + $0xdb8] sm:$0xff] }
 0x167   :  { %4632 = vmatprep.mubr.msk.f32.mxu1 %vm5923_vm0, %v5924_v8  ;;  %v5713_v17 = vpack.c.bf16 %v486_v15, %v485_v14 }
 0x168   :  { %5588 = vmatpush3.bf16.msra.mxu0 %v5587_v20  ;;  %v437_v20 = vld [vmem:[%s8244_s1 + $0xc30] sm:$0xff] }
 0x169   :  { %5612 = vmatpush3.bf16.msra.mxu1 %v5611_v21  ;;  %5589 = vmatprep.subr.bf16.mxu0 %v5922_v0  ;;  %v438_v21 = vld [vmem:[%s8244_s1 + $0xc38] sm:$0xff] }
 0x16a   :  { %5613 = vmatprep.subr.bf16.mxu1 %v5922_v0  ;;  %v5641_v24 = vpack.c.bf16 %v438_v21, %v437_v20  ;;  %v487_v20 = vld [vmem:[%s8244_s1 + $0xdc0] sm:$0xff]  ;;  %v488_v21 = vld [vmem:[%s8244_s1 + $0xdc8] sm:$0xff] }
 0x16b   :  { %v5716_v23 = vpack.c.bf16 %v488_v21, %v487_v20 }
 0x16c   :  { %5591 = vmatpush3.bf16.msra.mxu0 %v5590_v26  ;;  %v439_v26 = vld [vmem:[%s8244_s1 + $0xc40] sm:$0xff] }
 0x16d   :  { %5615 = vmatpush3.bf16.msra.mxu1 %v5614_v27  ;;  %5592 = vmatprep.subr.bf16.mxu0 %v5922_v0  ;;  %v440_v27 = vld [vmem:[%s8244_s1 + $0xc48] sm:$0xff] }
 0x16e   :  { %5616 = vmatprep.subr.bf16.mxu1 %v5922_v0  ;;  %v5644_v30 = vpack.c.bf16 %v440_v27, %v439_v26  ;;  %v489_v26 = vld [vmem:[%s8244_s1 + $0xdd0] sm:$0xff]  ;;  %v490_v27 = vld [vmem:[%s8244_s1 + $0xdd8] sm:$0xff] }
 0x16f   :  { %v5719_v29 = vpack.c.bf16 %v490_v27, %v489_v26  ;;  %v524_v26 = vld [vmem:[%s8244_s1 + $0xee8] sm:$0xff] }
 0x170   :  { %5594 = vmatpush3.bf16.msra.mxu0 %v5593_v32  ;;  %v441_v32 = vld [vmem:[%s8244_s1 + $0xc50] sm:$0xff] }
 0x171   :  { %5618 = vmatpush3.bf16.msra.mxu1 %v5617_v33  ;;  %5595 = vmatprep.subr.bf16.mxu0 %v5922_v0  ;;  %v442_v33 = vld [vmem:[%s8244_s1 + $0xc58] sm:$0xff] }
 0x172   :  { %5619 = vmatprep.subr.bf16.mxu1 %v5922_v0  ;;  %v5647_v36 = vpack.c.bf16 %v442_v33, %v441_v32  ;;  %v491_v33 = vld [vmem:[%s8244_s1 + $0xde0] sm:$0xff] }
 0x174   :  { %5597 = vmatpush3.bf16.msra.mxu0 %v5596_v38  ;;  %v443_v38 = vld [vmem:[%s8244_s1 + $0xc60] sm:$0xff] }
 0x175   :  { %5621 = vmatpush3.bf16.msra.mxu1 %v5620_v39  ;;  %5598 = vmatprep.subr.bf16.mxu0 %v5922_v0  ;;  %v444_v39 = vld [vmem:[%s8244_s1 + $0xc68] sm:$0xff] }
 0x176   :  { %v1249_v48 = vpop.f32.mrb[8].mxu0  ;;  %5622 = vmatprep.subr.bf16.mxu1 %v5922_v0  ;;  %v5650_v46 = vpack.c.bf16 %v444_v39, %v443_v38  ;;  %v5722_v39 = vpack.c.bf16 %v492_v34, %v491_v33  ;;  %v510_v33 = vld [vmem:[%s8244_s1 + $0xe78] sm:$0xff]  ;;  %v525_v34 = vld [vmem:[%s8244_s1 + $0xef0] sm:$0xff] }
 0x177   :  { %3151 = vst [vmem:[%s8246_s2 + $0x10] sm:$0x3] %v1249_v48  ;;  %v1319_v51 = vpop.f32.mrb[8].mxu1  ;;  %v4109_v52 = vpop.f32.mrb[9].mxu0  ;;  %v445_v48 = vld [vmem:[%s8244_s1 + $0xc70] sm:$0xff] }
 0x178   :  { %3152 = vst [vmem:[%s8246_s2 + $0x12] sm:$0x3] %v1319_v51  ;;  %v4144_v53 = vpop.f32.mrb[9].mxu1  ;;  %5600 = vmatpush3.bf16.msra.mxu0 %v5599_v44  ;;  %v462_v51 = vld [vmem:[%s8244_s1 + $0xcf8] sm:$0xff]  ;;  %v5653_v52 = vpack.c.bf16 %v446_v49, %v445_v48  ;;  %v511_v48 = vld [vmem:[%s8244_s1 + $0xe80] sm:$0xff]  ;;  %v512_v49 = vld [vmem:[%s8244_s1 + $0xe88] sm:$0xff] }
 0x179   :  { %5624 = vmatpush3.bf16.msra.mxu1 %v5623_v45  ;;  %5601 = vmatprep.subr.bf16.mxu0 %v5922_v0  ;;  %v5677_v53 = vpack.c.bf16 %v462_v51, %v461_v50  ;;  %v37_v50 = vld [vmem:[%s8245_s0 + $0x34] sm:$0x3] }
 0x17a   :  { %5625 = vmatprep.subr.bf16.mxu1 %v5922_v0 }
 0x17c   :  { %5603 = vmatpush3.bf16.msra.mxu0 %v5602_v54  ;;  %v463_v54 = vld [vmem:[%s8244_s1 + $0xd00] sm:$0xff] }
 0x17d   :  { %5627 = vmatpush3.bf16.msra.mxu1 %v5626_v55  ;;  %5604 = vmatprep.subr.bf16.mxu0 %v5922_v0  ;;  %v464_v55 = vld [vmem:[%s8244_s1 + $0xd08] sm:$0xff] }
 0x17e   :  { %5628 = vmatprep.subr.bf16.mxu1 %v5922_v0  ;;  %v5680_v59 = vpack.c.bf16 %v464_v55, %v463_v54  ;;  %v497_v54 = vld [vmem:[%s8244_s1 + $0xe10] sm:$0xff]  ;;  %v498_v55 = vld [vmem:[%s8244_s1 + $0xe18] sm:$0xff] }
 0x180   :  { %5606 = vmatpush3.bf16.msra.mxu0 %v5605_v60  ;;  %v36_v60 = vld [vmem:[%s8245_s0 + $0x32] sm:$0x3] }
 0x181   :  { %5630 = vmatpush3.bf16.msra.mxu1 %v5629_v61  ;;  %5631 = vmatprep.subr.bf16.mxu0 %v5922_v0  ;;  %v5704_v61 = vpack.c.bf16 %v480_v57, %v479_v56  ;;  %v513_v56 = vld [vmem:[%s8244_s1 + $0xe90] sm:$0xff]  ;;  %v514_v57 = vld [vmem:[%s8244_s1 + $0xe98] sm:$0xff] }
 0x182   :  { %5655 = vmatprep.subr.bf16.mxu1 %v5922_v0 }
 0x183   :  { %4598 = vmatmul.mubr.f32.vlgmr.msra.gmra.mrb[22].mxu0 %v33_v3  ;;  %v5683_v3 = vpack.c.bf16 %v466_v63, %v465_v62  ;;  %v515_v62 = vld [vmem:[%s8244_s1 + $0xea0] sm:$0xff]  ;;  %v516_v63 = vld [vmem:[%s8244_s1 + $0xea8] sm:$0xff] }
 0x184   :  { %4633 = vmatmul.mubr.f32.vlgmr.msra.gmra.mrb[22].mxu1 %v34_v5  ;;  %5633 = vmatpush3.bf16.msra.mxu0 %v5632_v4  ;;  %v5707_v4 = vpack.c.bf16 %v482_v2, %v481_v1  ;;  %v467_v5 = vld [vmem:[%s8244_s1 + $0xd20] sm:$0xff]  ;;  %v5758_v2 = vpack.c.bf16 %v516_v63, %v515_v62 }
 0x185   :  { %5657 = vmatpush3.bf16.msra.mxu1 %v5656_v6  ;;  %5634 = vmatprep.subr.bf16.mxu0 %v5922_v0  ;;  %v468_v6 = vld [vmem:[%s8244_s1 + $0xd28] sm:$0xff] }
 0x186   :  { %5658 = vmatprep.subr.bf16.mxu1 %v5922_v0  ;;  %4667 = vmatprep.mubr.msk.f32.mxu0 %vm5923_vm0, %v5924_v8  ;;  %v5686_v10 = vpack.c.bf16 %v468_v6, %v467_v5  ;;  %v517_v5 = vld [vmem:[%s8244_s1 + $0xeb0] sm:$0xff]  ;;  %v518_v6 = vld [vmem:[%s8244_s1 + $0xeb8] sm:$0xff] }
 0x187   :  { %4702 = vmatprep.mubr.msk.f32.mxu1 %vm5923_vm0, %v5924_v8  ;;  %v5761_v9 = vpack.c.bf16 %v518_v6, %v517_v5 }
 0x188   :  { %5636 = vmatpush3.bf16.msra.mxu0 %v5635_v12  ;;  %v469_v12 = vld [vmem:[%s8244_s1 + $0xd30] sm:$0xff] }
 0x189   :  { %5660 = vmatpush3.bf16.msra.mxu1 %v5659_v13  ;;  %5637 = vmatprep.subr.bf16.mxu0 %v5922_v0  ;;  %v470_v13 = vld [vmem:[%s8244_s1 + $0xd38] sm:$0xff] }
 0x18a   :  { %5661 = vmatprep.subr.bf16.mxu1 %v5922_v0  ;;  %v5689_v16 = vpack.c.bf16 %v470_v13, %v469_v12  ;;  %v519_v12 = vld [vmem:[%s8244_s1 + $0xec0] sm:$0xff]  ;;  %v520_v13 = vld [vmem:[%s8244_s1 + $0xec8] sm:$0xff] }
 0x18b   :  { %v5764_v15 = vpack.c.bf16 %v520_v13, %v519_v12 }
 0x18c   :  { %5639 = vmatpush3.bf16.msra.mxu0 %v5638_v18  ;;  %v471_v18 = vld [vmem:[%s8244_s1 + $0xd40] sm:$0xff] }
 0x18d   :  { %5663 = vmatpush3.bf16.msra.mxu1 %v5662_v19  ;;  %5640 = vmatprep.subr.bf16.mxu0 %v5922_v0  ;;  %v472_v19 = vld [vmem:[%s8244_s1 + $0xd48] sm:$0xff] }
 0x18e   :  { %5664 = vmatprep.subr.bf16.mxu1 %v5922_v0  ;;  %v5692_v22 = vpack.c.bf16 %v472_v19, %v471_v18  ;;  %v521_v18 = vld [vmem:[%s8244_s1 + $0xed0] sm:$0xff]  ;;  %v522_v19 = vld [vmem:[%s8244_s1 + $0xed8] sm:$0xff] }
 0x18f   :  { %v5767_v21 = vpack.c.bf16 %v522_v19, %v521_v18  ;;  %v556_v18 = vld [vmem:[%s8244_s1 + $0xfe8] sm:$0xff] }
 0x190   :  { %5642 = vmatpush3.bf16.msra.mxu0 %v5641_v24  ;;  %v473_v24 = vld [vmem:[%s8244_s1 + $0xd50] sm:$0xff] }
 0x191   :  { %5666 = vmatpush3.bf16.msra.mxu1 %v5665_v25  ;;  %5643 = vmatprep.subr.bf16.mxu0 %v5922_v0  ;;  %v474_v25 = vld [vmem:[%s8244_s1 + $0xd58] sm:$0xff] }
 0x192   :  { %5667 = vmatprep.subr.bf16.mxu1 %v5922_v0  ;;  %v5695_v28 = vpack.c.bf16 %v474_v25, %v473_v24  ;;  %v523_v25 = vld [vmem:[%s8244_s1 + $0xee0] sm:$0xff] }
 0x194   :  { %5645 = vmatpush3.bf16.msra.mxu0 %v5644_v30  ;;  %v475_v30 = vld [vmem:[%s8244_s1 + $0xd60] sm:$0xff] }
 0x195   :  { %5669 = vmatpush3.bf16.msra.mxu1 %v5668_v31  ;;  %5646 = vmatprep.subr.bf16.mxu0 %v5922_v0  ;;  %v476_v31 = vld [vmem:[%s8244_s1 + $0xd68] sm:$0xff] }
 0x196   :  { %v1389_v40 = vpop.f32.mrb[10].mxu0  ;;  %5670 = vmatprep.subr.bf16.mxu1 %v5922_v0  ;;  %v5698_v38 = vpack.c.bf16 %v476_v31, %v475_v30  ;;  %v5770_v31 = vpack.c.bf16 %v524_v26, %v523_v25  ;;  %v542_v25 = vld [vmem:[%s8244_s1 + $0xf78] sm:$0xff]  ;;  %v557_v26 = vld [vmem:[%s8244_s1 + $0xff0] sm:$0xff] }
 0x197   :  { %3153 = vst [vmem:[%s8246_s2 + $0x14] sm:$0x3] %v1389_v40  ;;  %v1459_v43 = vpop.f32.mrb[10].mxu1  ;;  %v4179_v44 = vpop.f32.mrb[11].mxu0  ;;  %v477_v40 = vld [vmem:[%s8244_s1 + $0xd70] sm:$0xff] }
 0x198   :  { %3154 = vst [vmem:[%s8246_s2 + $0x16] sm:$0x3] %v1459_v43  ;;  %v4214_v45 = vpop.f32.mrb[11].mxu1  ;;  %5648 = vmatpush3.bf16.msra.mxu0 %v5647_v36  ;;  %v494_v43 = vld [vmem:[%s8244_s1 + $0xdf8] sm:$0xff]  ;;  %v5701_v44 = vpack.c.bf16 %v478_v41, %v477_v40  ;;  %v543_v40 = vld [vmem:[%s8244_s1 + $0xf80] sm:$0xff]  ;;  %v544_v41 = vld [vmem:[%s8244_s1 + $0xf88] sm:$0xff] }
 0x199   :  { %5672 = vmatpush3.bf16.msra.mxu1 %v5671_v37  ;;  %5649 = vmatprep.subr.bf16.mxu0 %v5922_v0  ;;  %v5725_v45 = vpack.c.bf16 %v494_v43, %v493_v42  ;;  %v39_v42 = vld [vmem:[%s8245_s0 + $0x38] sm:$0x3] }
 0x19a   :  { %5673 = vmatprep.subr.bf16.mxu1 %v5922_v0 }
 0x19c   :  { %5651 = vmatpush3.bf16.msra.mxu0 %v5650_v46  ;;  %v495_v46 = vld [vmem:[%s8244_s1 + $0xe00] sm:$0xff] }
 0x19d   :  { %5675 = vmatpush3.bf16.msra.mxu1 %v5674_v47  ;;  %5652 = vmatprep.subr.bf16.mxu0 %v5922_v0  ;;  %v496_v47 = vld [vmem:[%s8244_s1 + $0xe08] sm:$0xff] }
 0x19e   :  { %5676 = vmatprep.subr.bf16.mxu1 %v5922_v0  ;;  %v5728_v51 = vpack.c.bf16 %v496_v47, %v495_v46  ;;  %v529_v46 = vld [vmem:[%s8244_s1 + $0xf10] sm:$0xff]  ;;  %v530_v47 = vld [vmem:[%s8244_s1 + $0xf18] sm:$0xff] }
 0x1a0   :  { %5654 = vmatpush3.bf16.msra.mxu0 %v5653_v52  ;;  %v38_v52 = vld [vmem:[%s8245_s0 + $0x36] sm:$0x3] }
 0x1a1   :  { %5678 = vmatpush3.bf16.msra.mxu1 %v5677_v53  ;;  %5679 = vmatprep.subr.bf16.mxu0 %v5922_v0  ;;  %v5752_v53 = vpack.c.bf16 %v512_v49, %v511_v48  ;;  %v545_v48 = vld [vmem:[%s8244_s1 + $0xf90] sm:$0xff]  ;;  %v546_v49 = vld [vmem:[%s8244_s1 + $0xf98] sm:$0xff] }
 0x1a2   :  { %5703 = vmatprep.subr.bf16.mxu1 %v5922_v0 }
 0x1a3   :  { %4668 = vmatmul.mubr.f32.vlgmr.msra.gmra.mrb[24].mxu0 %v35_v58  ;;  %v5731_v58 = vpack.c.bf16 %v498_v55, %v497_v54  ;;  %v547_v54 = vld [vmem:[%s8244_s1 + $0xfa0] sm:$0xff]  ;;  %v548_v55 = vld [vmem:[%s8244_s1 + $0xfa8] sm:$0xff] }
 0x1a4   :  { %4703 = vmatmul.mubr.f32.vlgmr.msra.gmra.mrb[24].mxu1 %v36_v60  ;;  %5681 = vmatpush3.bf16.msra.mxu0 %v5680_v59  ;;  %v5755_v59 = vpack.c.bf16 %v514_v57, %v513_v56  ;;  %v499_v60 = vld [vmem:[%s8244_s1 + $0xe20] sm:$0xff]  ;;  %v5806_v57 = vpack.c.bf16 %v548_v55, %v547_v54 }
 0x1a5   :  { %5705 = vmatpush3.bf16.msra.mxu1 %v5704_v61  ;;  %5682 = vmatprep.subr.bf16.mxu0 %v5922_v0  ;;  %v500_v61 = vld [vmem:[%s8244_s1 + $0xe28] sm:$0xff] }
 0x1a6   :  { %5706 = vmatprep.subr.bf16.mxu1 %v5922_v0  ;;  %4737 = vmatprep.mubr.msk.f32.mxu0 %vm5923_vm0, %v5924_v8  ;;  %v5734_v1 = vpack.c.bf16 %v500_v61, %v499_v60  ;;  %v549_v60 = vld [vmem:[%s8244_s1 + $0xfb0] sm:$0xff]  ;;  %v550_v61 = vld [vmem:[%s8244_s1 + $0xfb8] sm:$0xff] }
 0x1a7   :  { %4772 = vmatprep.mubr.msk.f32.mxu1 %vm5923_vm0, %v5924_v8  ;;  %v5809_v63 = vpack.c.bf16 %v550_v61, %v549_v60 }
 0x1a8   :  { %5684 = vmatpush3.bf16.msra.mxu0 %v5683_v3  ;;  %v501_v3 = vld [vmem:[%s8244_s1 + $0xe30] sm:$0xff] }
 0x1a9   :  { %5708 = vmatpush3.bf16.msra.mxu1 %v5707_v4  ;;  %5685 = vmatprep.subr.bf16.mxu0 %v5922_v0  ;;  %v502_v4 = vld [vmem:[%s8244_s1 + $0xe38] sm:$0xff] }
 0x1aa   :  { %5709 = vmatprep.subr.bf16.mxu1 %v5922_v0  ;;  %v5737_v7 = vpack.c.bf16 %v502_v4, %v501_v3  ;;  %v551_v3 = vld [vmem:[%s8244_s1 + $0xfc0] sm:$0xff]  ;;  %v552_v4 = vld [vmem:[%s8244_s1 + $0xfc8] sm:$0xff] }
 0x1ab   :  { %v5812_v6 = vpack.c.bf16 %v552_v4, %v551_v3 }
 0x1ac   :  { %5687 = vmatpush3.bf16.msra.mxu0 %v5686_v10  ;;  %v503_v10 = vld [vmem:[%s8244_s1 + $0xe40] sm:$0xff] }
 0x1ad   :  { %5711 = vmatpush3.bf16.msra.mxu1 %v5710_v11  ;;  %5688 = vmatprep.subr.bf16.mxu0 %v5922_v0  ;;  %v504_v11 = vld [vmem:[%s8244_s1 + $0xe48] sm:$0xff] }
 0x1ae   :  { %5712 = vmatprep.subr.bf16.mxu1 %v5922_v0  ;;  %v5740_v14 = vpack.c.bf16 %v504_v11, %v503_v10  ;;  %v553_v10 = vld [vmem:[%s8244_s1 + $0xfd0] sm:$0xff]  ;;  %v554_v11 = vld [vmem:[%s8244_s1 + $0xfd8] sm:$0xff] }
 0x1af   :  { %v5815_v13 = vpack.c.bf16 %v554_v11, %v553_v10  ;;  %v588_v10 = vld [vmem:[%s8244_s1 + $0x10e8] sm:$0xff] }
 0x1b0   :  { %5690 = vmatpush3.bf16.msra.mxu0 %v5689_v16  ;;  %v505_v16 = vld [vmem:[%s8244_s1 + $0xe50] sm:$0xff] }
 0x1b1   :  { %5714 = vmatpush3.bf16.msra.mxu1 %v5713_v17  ;;  %5691 = vmatprep.subr.bf16.mxu0 %v5922_v0  ;;  %v506_v17 = vld [vmem:[%s8244_s1 + $0xe58] sm:$0xff] }
 0x1b2   :  { %5715 = vmatprep.subr.bf16.mxu1 %v5922_v0  ;;  %v5743_v20 = vpack.c.bf16 %v506_v17, %v505_v16  ;;  %v555_v17 = vld [vmem:[%s8244_s1 + $0xfe0] sm:$0xff] }
 0x1b4   :  { %5693 = vmatpush3.bf16.msra.mxu0 %v5692_v22  ;;  %v507_v22 = vld [vmem:[%s8244_s1 + $0xe60] sm:$0xff] }
 0x1b5   :  { %5717 = vmatpush3.bf16.msra.mxu1 %v5716_v23  ;;  %5694 = vmatprep.subr.bf16.mxu0 %v5922_v0  ;;  %v508_v23 = vld [vmem:[%s8244_s1 + $0xe68] sm:$0xff] }
 0x1b6   :  { %v1529_v32 = vpop.f32.mrb[12].mxu0  ;;  %5718 = vmatprep.subr.bf16.mxu1 %v5922_v0  ;;  %v5746_v30 = vpack.c.bf16 %v508_v23, %v507_v22  ;;  %v5818_v23 = vpack.c.bf16 %v556_v18, %v555_v17  ;;  %v574_v17 = vld [vmem:[%s8244_s1 + $0x1078] sm:$0xff]  ;;  %v589_v18 = vld [vmem:[%s8244_s1 + $0x10f0] sm:$0xff] }
 0x1b7   :  { %3155 = vst [vmem:[%s8246_s2 + $0x18] sm:$0x3] %v1529_v32  ;;  %v1599_v35 = vpop.f32.mrb[12].mxu1  ;;  %v4249_v36 = vpop.f32.mrb[13].mxu0  ;;  %v509_v32 = vld [vmem:[%s8244_s1 + $0xe70] sm:$0xff] }
 0x1b8   :  { %3156 = vst [vmem:[%s8246_s2 + $0x1a] sm:$0x3] %v1599_v35  ;;  %v4284_v37 = vpop.f32.mrb[13].mxu1  ;;  %5696 = vmatpush3.bf16.msra.mxu0 %v5695_v28  ;;  %v526_v35 = vld [vmem:[%s8244_s1 + $0xef8] sm:$0xff]  ;;  %v5749_v36 = vpack.c.bf16 %v510_v33, %v509_v32  ;;  %v575_v32 = vld [vmem:[%s8244_s1 + $0x1080] sm:$0xff]  ;;  %v576_v33 = vld [vmem:[%s8244_s1 + $0x1088] sm:$0xff] }
 0x1b9   :  { %5720 = vmatpush3.bf16.msra.mxu1 %v5719_v29  ;;  %5697 = vmatprep.subr.bf16.mxu0 %v5922_v0  ;;  %v5773_v37 = vpack.c.bf16 %v526_v35, %v525_v34  ;;  %v41_v34 = vld [vmem:[%s8245_s0 + $0x3c] sm:$0x3] }
 0x1ba   :  { %5721 = vmatprep.subr.bf16.mxu1 %v5922_v0 }
 0x1bc   :  { %5699 = vmatpush3.bf16.msra.mxu0 %v5698_v38  ;;  %v527_v38 = vld [vmem:[%s8244_s1 + $0xf00] sm:$0xff] }
 0x1bd   :  { %5723 = vmatpush3.bf16.msra.mxu1 %v5722_v39  ;;  %5700 = vmatprep.subr.bf16.mxu0 %v5922_v0  ;;  %v528_v39 = vld [vmem:[%s8244_s1 + $0xf08] sm:$0xff] }
 0x1be   :  { %5724 = vmatprep.subr.bf16.mxu1 %v5922_v0  ;;  %v5776_v43 = vpack.c.bf16 %v528_v39, %v527_v38  ;;  %v561_v38 = vld [vmem:[%s8244_s1 + $0x1010] sm:$0xff]  ;;  %v562_v39 = vld [vmem:[%s8244_s1 + $0x1018] sm:$0xff] }
 0x1c0   :  { %5702 = vmatpush3.bf16.msra.mxu0 %v5701_v44  ;;  %v40_v44 = vld [vmem:[%s8245_s0 + $0x3a] sm:$0x3] }
 0x1c1   :  { %5726 = vmatpush3.bf16.msra.mxu1 %v5725_v45  ;;  %5727 = vmatprep.subr.bf16.mxu0 %v5922_v0  ;;  %v5800_v45 = vpack.c.bf16 %v544_v41, %v543_v40  ;;  %v577_v40 = vld [vmem:[%s8244_s1 + $0x1090] sm:$0xff]  ;;  %v578_v41 = vld [vmem:[%s8244_s1 + $0x1098] sm:$0xff] }
 0x1c2   :  { %5751 = vmatprep.subr.bf16.mxu1 %v5922_v0 }
 0x1c3   :  { %4738 = vmatmul.mubr.f32.vlgmr.msra.gmra.mrb[26].mxu0 %v37_v50  ;;  %v5779_v50 = vpack.c.bf16 %v530_v47, %v529_v46  ;;  %v579_v46 = vld [vmem:[%s8244_s1 + $0x10a0] sm:$0xff]  ;;  %v580_v47 = vld [vmem:[%s8244_s1 + $0x10a8] sm:$0xff] }
 0x1c4   :  { %4773 = vmatmul.mubr.f32.vlgmr.msra.gmra.mrb[26].mxu1 %v38_v52  ;;  %5729 = vmatpush3.bf16.msra.mxu0 %v5728_v51  ;;  %v5803_v51 = vpack.c.bf16 %v546_v49, %v545_v48  ;;  %v531_v52 = vld [vmem:[%s8244_s1 + $0xf20] sm:$0xff]  ;;  %v5854_v49 = vpack.c.bf16 %v580_v47, %v579_v46 }
 0x1c5   :  { %5753 = vmatpush3.bf16.msra.mxu1 %v5752_v53  ;;  %5730 = vmatprep.subr.bf16.mxu0 %v5922_v0  ;;  %v532_v53 = vld [vmem:[%s8244_s1 + $0xf28] sm:$0xff]  ;;  %v599_v47 = vld [vmem:[%s8244_s1 + $0x1140] sm:$0xff] }
 0x1c6   :  { %5754 = vmatprep.subr.bf16.mxu1 %v5922_v0  ;;  %4807 = vmatprep.mubr.msk.f32.mxu0 %vm5923_vm0, %v5924_v8  ;;  %v5782_v56 = vpack.c.bf16 %v532_v53, %v531_v52  ;;  %v581_v52 = vld [vmem:[%s8244_s1 + $0x10b0] sm:$0xff]  ;;  %v582_v53 = vld [vmem:[%s8244_s1 + $0x10b8] sm:$0xff] }
 0x1c7   :  { %4842 = vmatprep.mubr.msk.f32.mxu1 %vm5923_vm0, %v5924_v8  ;;  %v5857_v55 = vpack.c.bf16 %v582_v53, %v581_v52  ;;  %v601_v53 = vld [vmem:[%s8244_s1 + $0x1150] sm:$0xff] }
 0x1c8   :  { %5732 = vmatpush3.bf16.msra.mxu0 %v5731_v58  ;;  %v533_v58 = vld [vmem:[%s8244_s1 + $0xf30] sm:$0xff] }
 0x1c9   :  { %5756 = vmatpush3.bf16.msra.mxu1 %v5755_v59  ;;  %5733 = vmatprep.subr.bf16.mxu0 %v5922_v0  ;;  %v534_v59 = vld [vmem:[%s8244_s1 + $0xf38] sm:$0xff] }
 0x1ca   :  { %5757 = vmatprep.subr.bf16.mxu1 %v5922_v0  ;;  %v5785_v62 = vpack.c.bf16 %v534_v59, %v533_v58  ;;  %v583_v58 = vld [vmem:[%s8244_s1 + $0x10c0] sm:$0xff]  ;;  %v584_v59 = vld [vmem:[%s8244_s1 + $0x10c8] sm:$0xff] }
 0x1cb   :  { %v5860_v61 = vpack.c.bf16 %v584_v59, %v583_v58  ;;  %v603_v59 = vld [vmem:[%s8244_s1 + $0x1160] sm:$0xff] }
 0x1cc   :  { %5735 = vmatpush3.bf16.msra.mxu0 %v5734_v1  ;;  %v535_v1 = vld [vmem:[%s8244_s1 + $0xf40] sm:$0xff] }
 0x1cd   :  { %5759 = vmatpush3.bf16.msra.mxu1 %v5758_v2  ;;  %5736 = vmatprep.subr.bf16.mxu0 %v5922_v0  ;;  %v536_v2 = vld [vmem:[%s8244_s1 + $0xf48] sm:$0xff] }
 0x1ce   :  { %5760 = vmatprep.subr.bf16.mxu1 %v5922_v0  ;;  %v5788_v5 = vpack.c.bf16 %v536_v2, %v535_v1  ;;  %v585_v1 = vld [vmem:[%s8244_s1 + $0x10d0] sm:$0xff]  ;;  %v586_v2 = vld [vmem:[%s8244_s1 + $0x10d8] sm:$0xff] }
 0x1cf   :  { %v5863_v4 = vpack.c.bf16 %v586_v2, %v585_v1 }
 0x1d0   :  { %5738 = vmatpush3.bf16.msra.mxu0 %v5737_v7  ;;  %v537_v7 = vld [vmem:[%s8244_s1 + $0xf50] sm:$0xff] }
 0x1d1   :  { %5762 = vmatpush3.bf16.msra.mxu1 %v5761_v9  ;;  %5739 = vmatprep.subr.bf16.mxu0 %v5922_v0  ;;  %v538_v9 = vld [vmem:[%s8244_s1 + $0xf58] sm:$0xff] }
 0x1d2   :  { %5763 = vmatprep.subr.bf16.mxu1 %v5922_v0  ;;  %v5791_v12 = vpack.c.bf16 %v538_v9, %v537_v7  ;;  %v587_v9 = vld [vmem:[%s8244_s1 + $0x10e0] sm:$0xff] }
 0x1d4   :  { %5741 = vmatpush3.bf16.msra.mxu0 %v5740_v14  ;;  %v539_v14 = vld [vmem:[%s8244_s1 + $0xf60] sm:$0xff] }
 0x1d5   :  { %5765 = vmatpush3.bf16.msra.mxu1 %v5764_v15  ;;  %5742 = vmatprep.subr.bf16.mxu0 %v5922_v0  ;;  %v540_v15 = vld [vmem:[%s8244_s1 + $0xf68] sm:$0xff] }
 0x1d6   :  { %v1669_v24 = vpop.f32.mrb[14].mxu0  ;;  %5766 = vmatprep.subr.bf16.mxu1 %v5922_v0  ;;  %v5794_v22 = vpack.c.bf16 %v540_v15, %v539_v14  ;;  %v5866_v15 = vpack.c.bf16 %v588_v10, %v587_v9  ;;  %v621_v9 = vld [vmem:[%s8244_s1 + $0x11f0] sm:$0xff]  ;;  %v622_v10 = vld [vmem:[%s8244_s1 + $0x11f8] sm:$0xff] }
 0x1d7   :  { %3157 = vst [vmem:[%s8246_s2 + $0x1c] sm:$0x3] %v1669_v24  ;;  %v1739_v27 = vpop.f32.mrb[14].mxu1  ;;  %v4319_v28 = vpop.f32.mrb[15].mxu0  ;;  %v541_v24 = vld [vmem:[%s8244_s1 + $0xf70] sm:$0xff] }
 0x1d8   :  { %3158 = vst [vmem:[%s8246_s2 + $0x1e] sm:$0x3] %v1739_v27  ;;  %v4354_v29 = vpop.f32.mrb[15].mxu1  ;;  %5744 = vmatpush3.bf16.msra.mxu0 %v5743_v20  ;;  %v558_v27 = vld [vmem:[%s8244_s1 + $0xff8] sm:$0xff]  ;;  %v5797_v28 = vpack.c.bf16 %v542_v25, %v541_v24  ;;  %v607_v24 = vld [vmem:[%s8244_s1 + $0x1180] sm:$0xff]  ;;  %v608_v25 = vld [vmem:[%s8244_s1 + $0x1188] sm:$0xff] }
 0x1d9   :  { %5768 = vmatpush3.bf16.msra.mxu1 %v5767_v21  ;;  %5745 = vmatprep.subr.bf16.mxu0 %v5922_v0  ;;  %v5821_v29 = vpack.c.bf16 %v558_v27, %v557_v26  ;;  %v43_v26 = vld [vmem:[%s8245_s0 + $0x40] sm:$0x3] }
 0x1da   :  { %5769 = vmatprep.subr.bf16.mxu1 %v5922_v0 }
 0x1dc   :  { %5747 = vmatpush3.bf16.msra.mxu0 %v5746_v30  ;;  %v559_v30 = vld [vmem:[%s8244_s1 + $0x1000] sm:$0xff] }
 0x1dd   :  { %5771 = vmatpush3.bf16.msra.mxu1 %v5770_v31  ;;  %5748 = vmatprep.subr.bf16.mxu0 %v5922_v0  ;;  %v560_v31 = vld [vmem:[%s8244_s1 + $0x1008] sm:$0xff] }
 0x1de   :  { %5772 = vmatprep.subr.bf16.mxu1 %v5922_v0  ;;  %v5824_v35 = vpack.c.bf16 %v560_v31, %v559_v30  ;;  %v593_v30 = vld [vmem:[%s8244_s1 + $0x1110] sm:$0xff]  ;;  %v594_v31 = vld [vmem:[%s8244_s1 + $0x1118] sm:$0xff] }
 0x1e0   :  { %5750 = vmatpush3.bf16.msra.mxu0 %v5749_v36  ;;  %v42_v36 = vld [vmem:[%s8245_s0 + $0x3e] sm:$0x3] }
 0x1e1   :  { %5774 = vmatpush3.bf16.msra.mxu1 %v5773_v37  ;;  %5775 = vmatprep.subr.bf16.mxu0 %v5922_v0  ;;  %v5848_v37 = vpack.c.bf16 %v576_v33, %v575_v32  ;;  %v609_v32 = vld [vmem:[%s8244_s1 + $0x1190] sm:$0xff]  ;;  %v610_v33 = vld [vmem:[%s8244_s1 + $0x1198] sm:$0xff] }
 0x1e2   :  { %5799 = vmatprep.subr.bf16.mxu1 %v5922_v0 }
 0x1e3   :  { %4808 = vmatmul.mubr.f32.vlgmr.msra.gmra.mrb[28].mxu0 %v39_v42  ;;  %v5827_v42 = vpack.c.bf16 %v562_v39, %v561_v38  ;;  %v611_v38 = vld [vmem:[%s8244_s1 + $0x11a0] sm:$0xff]  ;;  %v612_v39 = vld [vmem:[%s8244_s1 + $0x11a8] sm:$0xff] }
 0x1e4   :  { %4843 = vmatmul.mubr.f32.vlgmr.msra.gmra.mrb[28].mxu1 %v40_v44  ;;  %5777 = vmatpush3.bf16.msra.mxu0 %v5776_v43  ;;  %v5851_v43 = vpack.c.bf16 %v578_v41, %v577_v40  ;;  %v563_v44 = vld [vmem:[%s8244_s1 + $0x1020] sm:$0xff]  ;;  %v5902_v41 = vpack.c.bf16 %v612_v39, %v611_v38 }
 0x1e5   :  { %5801 = vmatpush3.bf16.msra.mxu1 %v5800_v45  ;;  %5778 = vmatprep.subr.bf16.mxu0 %v5922_v0  ;;  %v564_v45 = vld [vmem:[%s8244_s1 + $0x1028] sm:$0xff] }
 0x1e6   :  { %5802 = vmatprep.subr.bf16.mxu1 %v5922_v0  ;;  %4877 = vmatprep.mubr.msk.f32.mxu0 %vm5923_vm0, %v5924_v8  ;;  %v5830_v48 = vpack.c.bf16 %v564_v45, %v563_v44  ;;  %v614_v44 = vld [vmem:[%s8244_s1 + $0x11b8] sm:$0xff] }
 0x1e7   :  { %4912 = vmatprep.mubr.msk.f32.mxu1 %vm5923_vm0, %v5924_v8 }
 0x1e8   :  { %5780 = vmatpush3.bf16.msra.mxu0 %v5779_v50  ;;  %v565_v50 = vld [vmem:[%s8244_s1 + $0x1030] sm:$0xff] }
 0x1e9   :  { %5804 = vmatpush3.bf16.msra.mxu1 %v5803_v51  ;;  %5781 = vmatprep.subr.bf16.mxu0 %v5922_v0  ;;  %v566_v51 = vld [vmem:[%s8244_s1 + $0x1038] sm:$0xff] }
 0x1ea   :  { %5805 = vmatprep.subr.bf16.mxu1 %v5922_v0  ;;  %v5833_v54 = vpack.c.bf16 %v566_v51, %v565_v50  ;;  %v616_v50 = vld [vmem:[%s8244_s1 + $0x11c8] sm:$0xff] }
 0x1ec   :  { %5783 = vmatpush3.bf16.msra.mxu0 %v5782_v56  ;;  %v567_v56 = vld [vmem:[%s8244_s1 + $0x1040] sm:$0xff] }
 0x1ed   :  { %5807 = vmatpush3.bf16.msra.mxu1 %v5806_v57  ;;  %5784 = vmatprep.subr.bf16.mxu0 %v5922_v0  ;;  %v568_v57 = vld [vmem:[%s8244_s1 + $0x1048] sm:$0xff] }
 0x1ee   :  { %5808 = vmatprep.subr.bf16.mxu1 %v5922_v0  ;;  %v5836_v60 = vpack.c.bf16 %v568_v57, %v567_v56  ;;  %v618_v56 = vld [vmem:[%s8244_s1 + $0x11d8] sm:$0xff] }
 0x1f0   :  { %5786 = vmatpush3.bf16.msra.mxu0 %v5785_v62  ;;  %v569_v62 = vld [vmem:[%s8244_s1 + $0x1050] sm:$0xff] }
 0x1f1   :  { %5810 = vmatpush3.bf16.msra.mxu1 %v5809_v63  ;;  %5787 = vmatprep.subr.bf16.mxu0 %v5922_v0  ;;  %v570_v63 = vld [vmem:[%s8244_s1 + $0x1058] sm:$0xff] }
 0x1f2   :  { %5811 = vmatprep.subr.bf16.mxu1 %v5922_v0  ;;  %v5839_v3 = vpack.c.bf16 %v570_v63, %v569_v62  ;;  %v619_v62 = vld [vmem:[%s8244_s1 + $0x11e0] sm:$0xff]  ;;  %v620_v63 = vld [vmem:[%s8244_s1 + $0x11e8] sm:$0xff] }
 0x1f4   :  { %5789 = vmatpush3.bf16.msra.mxu0 %v5788_v5  ;;  %v571_v5 = vld [vmem:[%s8244_s1 + $0x1060] sm:$0xff] }
 0x1f5   :  { %5813 = vmatpush3.bf16.msra.mxu1 %v5812_v6  ;;  %5790 = vmatprep.subr.bf16.mxu0 %v5922_v0  ;;  %v572_v6 = vld [vmem:[%s8244_s1 + $0x1068] sm:$0xff] }
 0x1f6   :  { %v1809_v16 = vpop.f32.mrb[16].mxu0  ;;  %5814 = vmatprep.subr.bf16.mxu1 %v5922_v0  ;;  %v5842_v14 = vpack.c.bf16 %v572_v6, %v571_v5  ;;  %v5914_v5 = vpack.c.bf16 %v620_v63, %v619_v62  ;;  %v605_v6 = vld [vmem:[%s8244_s1 + $0x1170] sm:$0xff] }
 0x1f7   :  { %3159 = vst [vmem:[%s8246_s2 + $0x20] sm:$0x3] %v1809_v16  ;;  %v1879_v19 = vpop.f32.mrb[16].mxu1  ;;  %v4389_v20 = vpop.f32.mrb[17].mxu0  ;;  %v573_v16 = vld [vmem:[%s8244_s1 + $0x1070] sm:$0xff] }
 0x1f8   :  { %3160 = vst [vmem:[%s8246_s2 + $0x22] sm:$0x3] %v1879_v19  ;;  %v4424_v21 = vpop.f32.mrb[17].mxu1  ;;  %5792 = vmatpush3.bf16.msra.mxu0 %v5791_v12  ;;  %v590_v19 = vld [vmem:[%s8244_s1 + $0x10f8] sm:$0xff]  ;;  %v5845_v20 = vpack.c.bf16 %v574_v17, %v573_v16 }
 0x1f9   :  { %5816 = vmatpush3.bf16.msra.mxu1 %v5815_v13  ;;  %5793 = vmatprep.subr.bf16.mxu0 %v5922_v0  ;;  %v5869_v21 = vpack.c.bf16 %v590_v19, %v589_v18 }
 0x1fa   :  { %5817 = vmatprep.subr.bf16.mxu1 %v5922_v0 }
 0x1fc   :  { %5795 = vmatpush3.bf16.msra.mxu0 %v5794_v22  ;;  %v591_v22 = vld [vmem:[%s8244_s1 + $0x1100] sm:$0xff] }
 0x1fd   :  { %5819 = vmatpush3.bf16.msra.mxu1 %v5818_v23  ;;  %5796 = vmatprep.subr.bf16.mxu0 %v5922_v0  ;;  %v592_v23 = vld [vmem:[%s8244_s1 + $0x1108] sm:$0xff] }
 0x1fe   :  { %5820 = vmatprep.subr.bf16.mxu1 %v5922_v0  ;;  %v5872_v27 = vpack.c.bf16 %v592_v23, %v591_v22 }
 0x200   :  { %5798 = vmatpush3.bf16.msra.mxu0 %v5797_v28  ;;  %v44_v28 = vld [vmem:[%s8245_s0 + $0x42] sm:$0x3] }
 0x201   :  { %5822 = vmatpush3.bf16.msra.mxu1 %v5821_v29  ;;  %5823 = vmatprep.subr.bf16.mxu0 %v5922_v0  ;;  %v5896_v29 = vpack.c.bf16 %v608_v25, %v607_v24 }
 0x202   :  { %5847 = vmatprep.subr.bf16.mxu1 %v5922_v0 }
 0x203   :  { %4878 = vmatmul.mubr.f32.vlgmr.msra.gmra.mrb[30].mxu0 %v41_v34  ;;  %v5875_v34 = vpack.c.bf16 %v594_v31, %v593_v30 }
 0x204   :  { %4913 = vmatmul.mubr.f32.vlgmr.msra.gmra.mrb[30].mxu1 %v42_v36  ;;  %5825 = vmatpush3.bf16.msra.mxu0 %v5824_v35  ;;  %v5899_v35 = vpack.c.bf16 %v610_v33, %v609_v32  ;;  %v595_v36 = vld [vmem:[%s8244_s1 + $0x1120] sm:$0xff] }
 0x205   :  { %5849 = vmatpush3.bf16.msra.mxu1 %v5848_v37  ;;  %5826 = vmatprep.subr.bf16.mxu0 %v5922_v0  ;;  %v596_v37 = vld [vmem:[%s8244_s1 + $0x1128] sm:$0xff] }
 0x206   :  { %5850 = vmatprep.subr.bf16.mxu1 %v5922_v0  ;;  %4947 = vmatprep.mubr.msk.f32.mxu0 %vm5923_vm0, %v5924_v8  ;;  %v5878_v40 = vpack.c.bf16 %v596_v37, %v595_v36 }
 0x207   :  { %4982 = vmatprep.mubr.msk.f32.mxu1 %vm5923_vm0, %v5924_v8 }
 0x208   :  { %5828 = vmatpush3.bf16.msra.mxu0 %v5827_v42  ;;  %v597_v42 = vld [vmem:[%s8244_s1 + $0x1130] sm:$0xff] }
 0x209   :  { %5852 = vmatpush3.bf16.msra.mxu1 %v5851_v43  ;;  %5829 = vmatprep.subr.bf16.mxu0 %v5922_v0  ;;  %v598_v43 = vld [vmem:[%s8244_s1 + $0x1138] sm:$0xff] }
 0x20a   :  { %5853 = vmatprep.subr.bf16.mxu1 %v5922_v0  ;;  %v5881_v45 = vpack.c.bf16 %v598_v43, %v597_v42 }
 0x20c   :  { %5831 = vmatpush3.bf16.msra.mxu0 %v5830_v48  ;;  %v600_v48 = vld [vmem:[%s8244_s1 + $0x1148] sm:$0xff] }
 0x20d   :  { %5855 = vmatpush3.bf16.msra.mxu1 %v5854_v49  ;;  %5832 = vmatprep.subr.bf16.mxu0 %v5922_v0  ;;  %v615_v49 = vld [vmem:[%s8244_s1 + $0x11c0] sm:$0xff]  ;;  %v5884_v51 = vpack.c.bf16 %v600_v48, %v599_v47 }
 0x20e   :  { %5856 = vmatprep.subr.bf16.mxu1 %v5922_v0  ;;  %v5908_v52 = vpack.c.bf16 %v616_v50, %v615_v49 }
 0x210   :  { %5834 = vmatpush3.bf16.msra.mxu0 %v5833_v54  ;;  %v602_v54 = vld [vmem:[%s8244_s1 + $0x1158] sm:$0xff] }
 0x211   :  { %5858 = vmatpush3.bf16.msra.mxu1 %v5857_v55  ;;  %5835 = vmatprep.subr.bf16.mxu0 %v5922_v0  ;;  %v617_v55 = vld [vmem:[%s8244_s1 + $0x11d0] sm:$0xff]  ;;  %v5887_v57 = vpack.c.bf16 %v602_v54, %v601_v53 }
 0x212   :  { %5859 = vmatprep.subr.bf16.mxu1 %v5922_v0  ;;  %v5911_v58 = vpack.c.bf16 %v618_v56, %v617_v55 }
 0x214   :  { %5837 = vmatpush3.bf16.msra.mxu0 %v5836_v60  ;;  %v604_v60 = vld [vmem:[%s8244_s1 + $0x1168] sm:$0xff] }
 0x215   :  { %5861 = vmatpush3.bf16.msra.mxu1 %v5860_v61  ;;  %5838 = vmatprep.subr.bf16.mxu0 %v5922_v0 }
 0x216   :  { %v1949_v7 = vpop.f32.mrb[18].mxu0  ;;  %5862 = vmatprep.subr.bf16.mxu1 %v5922_v0 }
 0x217   :  { %3161 = vst [vmem:[%s8246_s2 + $0x24] sm:$0x3] %v1949_v7  ;;  %v2019_v11 = vpop.f32.mrb[18].mxu1  ;;  %v4459_v12 = vpop.f32.mrb[19].mxu0  ;;  %v606_v7 = vld [vmem:[%s8244_s1 + $0x1178] sm:$0xff] }
 0x218   :  { %3162 = vst [vmem:[%s8246_s2 + $0x26] sm:$0x3] %v2019_v11  ;;  %v4494_v13 = vpop.f32.mrb[19].mxu1  ;;  %5840 = vmatpush3.bf16.msra.mxu0 %v5839_v3  ;;  %v5893_v11 = vpack.c.bf16 %v606_v7, %v605_v6  ;;  %v5917_v12 = vpack.c.bf16 %v622_v10, %v621_v9 }
 0x219   :  { %5864 = vmatpush3.bf16.msra.mxu1 %v5863_v4  ;;  %5841 = vmatprep.subr.bf16.mxu0 %v5922_v0  ;;  %v5890_v4 = vpack.c.bf16 %v604_v60, %v603_v59  ;;  %v45_v13 = vld [vmem:[%s8245_s0 + $0x44] sm:$0x3] }
 0x21a   :  { %5865 = vmatprep.subr.bf16.mxu1 %v5922_v0 }
 0x21c   :  { %5843 = vmatpush3.bf16.msra.mxu0 %v5842_v14  ;;  %v46_v14 = vld [vmem:[%s8245_s0 + $0x46] sm:$0x3] }
 0x21d   :  { %5867 = vmatpush3.bf16.msra.mxu1 %v5866_v15  ;;  %5844 = vmatprep.subr.bf16.mxu0 %v5922_v0 }
 0x21e   :  { %5868 = vmatprep.subr.bf16.mxu1 %v5922_v0 }
 0x220   :  { %5846 = vmatpush3.bf16.msra.mxu0 %v5845_v20 }
 0x221   :  { %5870 = vmatpush3.bf16.msra.mxu1 %v5869_v21  ;;  %5871 = vmatprep.subr.bf16.mxu0 %v5922_v0 }
 0x222   :  { %5895 = vmatprep.subr.bf16.mxu1 %v5922_v0 }
 0x223   :  { %4948 = vmatmul.mubr.f32.vlgmr.msra.gmra.mrb[32].mxu0 %v43_v26 }
 0x224   :  { %4983 = vmatmul.mubr.f32.vlgmr.msra.gmra.mrb[32].mxu1 %v44_v28  ;;  %5873 = vmatpush3.bf16.msra.mxu0 %v5872_v27 }
 0x225   :  { %5897 = vmatpush3.bf16.msra.mxu1 %v5896_v29  ;;  %5874 = vmatprep.subr.bf16.mxu0 %v5922_v0 }
 0x226   :  { %5898 = vmatprep.subr.bf16.mxu1 %v5922_v0  ;;  %5017 = vmatprep.mubr.msk.f32.mxu0 %vm5923_vm0, %v5924_v8 }
 0x227   :  { %5052 = vmatprep.mubr.msk.f32.mxu1 %vm5923_vm0, %v5924_v8  ;;  %v613_v8 = vld [vmem:[%s8244_s1 + $0x11b0] sm:$0xff] }
 0x228   :  { %5876 = vmatpush3.bf16.msra.mxu0 %v5875_v34  ;;  %v5905_v46 = vpack.c.bf16 %v614_v44, %v613_v8 }
 0x229   :  { %5900 = vmatpush3.bf16.msra.mxu1 %v5899_v35  ;;  %5877 = vmatprep.subr.bf16.mxu0 %v5922_v0 }
 0x22a   :  { %5901 = vmatprep.subr.bf16.mxu1 %v5922_v0 }
 0x22c   :  { %5879 = vmatpush3.bf16.msra.mxu0 %v5878_v40 }
 0x22d   :  { %5903 = vmatpush3.bf16.msra.mxu1 %v5902_v41  ;;  %5880 = vmatprep.subr.bf16.mxu0 %v5922_v0 }
 0x22e   :  { %5904 = vmatprep.subr.bf16.mxu1 %v5922_v0 }
 0x230   :  { %5882 = vmatpush3.bf16.msra.mxu0 %v5881_v45 }
 0x231   :  { %5906 = vmatpush3.bf16.msra.mxu1 %v5905_v46  ;;  %5883 = vmatprep.subr.bf16.mxu0 %v5922_v0 }
 0x232   :  { %5907 = vmatprep.subr.bf16.mxu1 %v5922_v0 }
 0x234   :  { %5885 = vmatpush3.bf16.msra.mxu0 %v5884_v51 }
 0x235   :  { %5909 = vmatpush3.bf16.msra.mxu1 %v5908_v52  ;;  %5886 = vmatprep.subr.bf16.mxu0 %v5922_v0 }
 0x236   :  { %v2089_v61 = vpop.f32.mrb[20].mxu0  ;;  %5910 = vmatprep.subr.bf16.mxu1 %v5922_v0 }
 0x237   :  { %3163 = vst [vmem:[%s8246_s2 + $0x28] sm:$0x3] %v2089_v61  ;;  %v2159_v1 = vpop.f32.mrb[20].mxu1  ;;  %v4529_v2 = vpop.f32.mrb[21].mxu0 }
 0x238   :  { %3164 = vst [vmem:[%s8246_s2 + $0x2a] sm:$0x3] %v2159_v1  ;;  %v4564_v3 = vpop.f32.mrb[21].mxu1  ;;  %5888 = vmatpush3.bf16.msra.mxu0 %v5887_v57 }
 0x239   :  { %5912 = vmatpush3.bf16.msra.mxu1 %v5911_v58  ;;  %5889 = vmatprep.subr.bf16.mxu0 %v5922_v0 }
 0x23a   :  { %5913 = vmatprep.subr.bf16.mxu1 %v5922_v0 }
 0x23c   :  { %5891 = vmatpush3.bf16.msra.mxu0 %v5890_v4 }
 0x23d   :  { %5915 = vmatpush3.bf16.msra.mxu1 %v5914_v5  ;;  %5892 = vmatprep.subr.bf16.mxu0 %v5922_v0 }
 0x23e   :  { %5916 = vmatprep.subr.bf16.mxu1 %v5922_v0 }
 0x240   :  { %5894 = vmatpush3.bf16.msra.mxu0 %v5893_v11 }
 0x241   :  { %5918 = vmatpush3.bf16.msra.mxu1 %v5917_v12 }
 0x243   :  { %5018 = vmatmul.mubr.f32.vlgmr.msra.gmra.mrb[34].mxu0 %v45_v13 }
 0x244   :  { %5053 = vmatmul.mubr.f32.vlgmr.msra.gmra.mrb[34].mxu1 %v46_v14 }
 0x256   :  { %v2229_v15 = vpop.f32.mrb[22].mxu0 }
 0x257   :  { %3165 = vst [vmem:[%s8246_s2 + $0x2c] sm:$0x3] %v2229_v15  ;;  %v2299_v16 = vpop.f32.mrb[22].mxu1  ;;  %v4599_v17 = vpop.f32.mrb[23].mxu0 }
 0x258   :  { %3166 = vst [vmem:[%s8246_s2 + $0x2e] sm:$0x3] %v2299_v16  ;;  %v4634_v0 = vpop.f32.mrb[23].mxu1 }
 0x276   :  { %v2369_v18 = vpop.f32.mrb[24].mxu0 }
 0x277   :  { %3167 = vst [vmem:[%s8246_s2 + $0x30] sm:$0x3] %v2369_v18  ;;  %v2439_v19 = vpop.f32.mrb[24].mxu1  ;;  %v4669_v20 = vpop.f32.mrb[25].mxu0 }
 0x278   :  { %3168 = vst [vmem:[%s8246_s2 + $0x32] sm:$0x3] %v2439_v19  ;;  %v4704_v21 = vpop.f32.mrb[25].mxu1 }
 0x296   :  { %v2509_v22 = vpop.f32.mrb[26].mxu0 }
 0x297   :  { %3169 = vst [vmem:[%s8246_s2 + $0x34] sm:$0x3] %v2509_v22  ;;  %v2579_v23 = vpop.f32.mrb[26].mxu1  ;;  %v4739_v24 = vpop.f32.mrb[27].mxu0 }
 0x298   :  { %3170 = vst [vmem:[%s8246_s2 + $0x36] sm:$0x3] %v2579_v23  ;;  %v4774_v25 = vpop.f32.mrb[27].mxu1 }
 0x2b6   :  { %v2649_v26 = vpop.f32.mrb[28].mxu0 }
 0x2b7   :  { %3171 = vst [vmem:[%s8246_s2 + $0x38] sm:$0x3] %v2649_v26  ;;  %v2719_v27 = vpop.f32.mrb[28].mxu1  ;;  %v4809_v28 = vpop.f32.mrb[29].mxu0 }
 0x2b8   :  { %3172 = vst [vmem:[%s8246_s2 + $0x3a] sm:$0x3] %v2719_v27  ;;  %v4844_v29 = vpop.f32.mrb[29].mxu1 }
 0x2d6   :  { %v2789_v30 = vpop.f32.mrb[30].mxu0 }
 0x2d7   :  { %3173 = vst [vmem:[%s8246_s2 + $0x3c] sm:$0x3] %v2789_v30  ;;  %v2859_v31 = vpop.f32.mrb[30].mxu1  ;;  %v4879_v32 = vpop.f32.mrb[31].mxu0 }
 0x2d8   :  { %3174 = vst [vmem:[%s8246_s2 + $0x3e] sm:$0x3] %v2859_v31  ;;  %v4914_v33 = vpop.f32.mrb[31].mxu1 }
 0x2f6   :  { %v2929_v34 = vpop.f32.mrb[32].mxu0 }
 0x2f7   :  { %3175 = vst [vmem:[%s8246_s2 + $0x40] sm:$0x3] %v2929_v34  ;;  %v2999_v35 = vpop.f32.mrb[32].mxu1  ;;  %v4949_v36 = vpop.f32.mrb[33].mxu0 }
 0x2f8   :  { %3176 = vst [vmem:[%s8246_s2 + $0x42] sm:$0x3] %v2999_v35  ;;  %v4984_v37 = vpop.f32.mrb[33].mxu1 }
 0x316   :  { %v3069_v38 = vpop.f32.mrb[34].mxu0 }
 0x317   :  { %3177 = vst [vmem:[%s8246_s2 + $0x44] sm:$0x3] %v3069_v38  ;;  %v3139_v39 = vpop.f32.mrb[34].mxu1  ;;  %v5019_v40 = vpop.f32.mrb[35].mxu0 }
 0x318   :  { %3178 = vst [vmem:[%s8246_s2 + $0x46] sm:$0x3] %v3139_v39  ;;  %v5054_v41 = vpop.f32.mrb[35].mxu1 }

// kernel: reverse.4
= control target key start
LH: loop header
LB: loop body
LE: loop exit
PB: predicated region body
PF: predicated region fallthrough
CT: control target
= control target key end

     0   :  { %s800_s0 = inlined_call_operand.vmem [shape: f32[2,32,24,11], index: 0, kind: input, shape index: {}]   ;;  %s801_s1 = inlined_call_operand.vmem [shape: f32[2,32,24,11], index: 1, kind: output, shape index: {}]  }
   0x1   :  { %v264_v0 = vld [vmem:[%s800_s0 + $0xf0] sm:$0xff]  ;;  %v265_v1 = vld [vmem:[%s800_s0 + $0x1f8] sm:$0xff]  ;;  %v269_v3 = vld [vmem:[%s800_s0 + $0x1e0] sm:$0xff] }
   0x2   :  { %v267_v2 = vld [vmem:[%s800_s0 + $0xd8] sm:$0xff]  ;;  %4 = vst [vmem:[%s801_s1] sm:$0xff] %v264_v0  ;;  %266 = vst [vmem:[%s801_s1 + $0x108] sm:$0xff] %v265_v1  ;;  %v271_v4 = vld [vmem:[%s800_s0 + $0xc0] sm:$0xff] }
   0x3   :  { %268 = vst [vmem:[%s801_s1 + $0x18] sm:$0xff] %v267_v2  ;;  %v273_v5 = vld [vmem:[%s800_s0 + $0x1c8] sm:$0xff]  ;;  %270 = vst [vmem:[%s801_s1 + $0x120] sm:$0xff] %v269_v3  ;;  %v277_v7 = vld [vmem:[%s800_s0 + $0x1b0] sm:$0xff] }
   0x4   :  { %272 = vst [vmem:[%s801_s1 + $0x30] sm:$0xff] %v271_v4  ;;  %274 = vst [vmem:[%s801_s1 + $0x138] sm:$0xff] %v273_v5  ;;  %v275_v6 = vld [vmem:[%s800_s0 + $0xa8] sm:$0xff]  ;;  %v279_v8 = vld [vmem:[%s800_s0 + $0x90] sm:$0xff] }
   0x5   :  { %276 = vst [vmem:[%s801_s1 + $0x48] sm:$0xff] %v275_v6  ;;  %278 = vst [vmem:[%s801_s1 + $0x150] sm:$0xff] %v277_v7  ;;  %v281_v9 = vld [vmem:[%s800_s0 + $0x198] sm:$0xff]  ;;  %v285_v11 = vld [vmem:[%s800_s0 + $0x180] sm:$0xff] }
   0x6   :  { %280 = vst [vmem:[%s801_s1 + $0x60] sm:$0xff] %v279_v8  ;;  %v283_v10 = vld [vmem:[%s800_s0 + $0x78] sm:$0xff]  ;;  %282 = vst [vmem:[%s801_s1 + $0x168] sm:$0xff] %v281_v9  ;;  %v287_v12 = vld [vmem:[%s800_s0 + $0x60] sm:$0xff] }
   0x7   :  { %284 = vst [vmem:[%s801_s1 + $0x78] sm:$0xff] %v283_v10  ;;  %286 = vst [vmem:[%s801_s1 + $0x180] sm:$0xff] %v285_v11  ;;  %v289_v13 = vld [vmem:[%s800_s0 + $0x168] sm:$0xff]  ;;  %v293_v15 = vld [vmem:[%s800_s0 + $0x150] sm:$0xff] }
   0x8   :  { %v291_v14 = vld [vmem:[%s800_s0 + $0x48] sm:$0xff]  ;;  %288 = vst [vmem:[%s801_s1 + $0x90] sm:$0xff] %v287_v12  ;;  %290 = vst [vmem:[%s801_s1 + $0x198] sm:$0xff] %v289_v13  ;;  %v295_v16 = vld [vmem:[%s800_s0 + $0x30] sm:$0xff] }
   0x9   :  { %292 = vst [vmem:[%s801_s1 + $0xa8] sm:$0xff] %v291_v14  ;;  %v297_v17 = vld [vmem:[%s800_s0 + $0x138] sm:$0xff]  ;;  %294 = vst [vmem:[%s801_s1 + $0x1b0] sm:$0xff] %v293_v15  ;;  %v301_v19 = vld [vmem:[%s800_s0 + $0x120] sm:$0xff] }
   0xa   :  { %296 = vst [vmem:[%s801_s1 + $0xc0] sm:$0xff] %v295_v16  ;;  %298 = vst [vmem:[%s801_s1 + $0x1c8] sm:$0xff] %v297_v17  ;;  %v299_v18 = vld [vmem:[%s800_s0 + $0x18] sm:$0xff]  ;;  %v81_v20 = vld [vmem:[%s800_s0] sm:$0xff] }
   0xb   :  { %300 = vst [vmem:[%s801_s1 + $0xd8] sm:$0xff] %v299_v18  ;;  %302 = vst [vmem:[%s801_s1 + $0x1e0] sm:$0xff] %v301_v19  ;;  %v304_v21 = vld [vmem:[%s800_s0 + $0x108] sm:$0xff]  ;;  %v306_v22 = vld [vmem:[%s800_s0 + $0xf8] sm:$0xff] }
   0xc   :  { %303 = vst [vmem:[%s801_s1 + $0xf0] sm:$0xff] %v81_v20  ;;  %v308_v23 = vld [vmem:[%s800_s0 + $0x200] sm:$0xff]  ;;  %305 = vst [vmem:[%s801_s1 + $0x1f8] sm:$0xff] %v304_v21  ;;  %v312_v25 = vld [vmem:[%s800_s0 + $0x1e8] sm:$0xff] }
   0xd   :  { %307 = vst [vmem:[%s801_s1 + $0x8] sm:$0xff] %v306_v22  ;;  %309 = vst [vmem:[%s801_s1 + $0x110] sm:$0xff] %v308_v23  ;;  %v310_v24 = vld [vmem:[%s800_s0 + $0xe0] sm:$0xff]  ;;  %v314_v26 = vld [vmem:[%s800_s0 + $0xc8] sm:$0xff] }
   0xe   :  { %311 = vst [vmem:[%s801_s1 + $0x20] sm:$0xff] %v310_v24  ;;  %313 = vst [vmem:[%s801_s1 + $0x128] sm:$0xff] %v312_v25  ;;  %v316_v27 = vld [vmem:[%s800_s0 + $0x1d0] sm:$0xff]  ;;  %v320_v29 = vld [vmem:[%s800_s0 + $0x1b8] sm:$0xff] }
   0xf   :  { %315 = vst [vmem:[%s801_s1 + $0x38] sm:$0xff] %v314_v26  ;;  %v318_v28 = vld [vmem:[%s800_s0 + $0xb0] sm:$0xff]  ;;  %317 = vst [vmem:[%s801_s1 + $0x140] sm:$0xff] %v316_v27  ;;  %v322_v30 = vld [vmem:[%s800_s0 + $0x98] sm:$0xff] }
  0x10   :  { %319 = vst [vmem:[%s801_s1 + $0x50] sm:$0xff] %v318_v28  ;;  %321 = vst [vmem:[%s801_s1 + $0x158] sm:$0xff] %v320_v29  ;;  %v324_v31 = vld [vmem:[%s800_s0 + $0x1a0] sm:$0xff]  ;;  %v328_v33 = vld [vmem:[%s800_s0 + $0x188] sm:$0xff] }
  0x11   :  { %v326_v32 = vld [vmem:[%s800_s0 + $0x80] sm:$0xff]  ;;  %323 = vst [vmem:[%s801_s1 + $0x68] sm:$0xff] %v322_v30  ;;  %325 = vst [vmem:[%s801_s1 + $0x170] sm:$0xff] %v324_v31  ;;  %v330_v34 = vld [vmem:[%s800_s0 + $0x68] sm:$0xff] }
  0x12   :  { %327 = vst [vmem:[%s801_s1 + $0x80] sm:$0xff] %v326_v32  ;;  %v332_v35 = vld [vmem:[%s800_s0 + $0x170] sm:$0xff]  ;;  %329 = vst [vmem:[%s801_s1 + $0x188] sm:$0xff] %v328_v33  ;;  %v336_v37 = vld [vmem:[%s800_s0 + $0x158] sm:$0xff] }
  0x13   :  { %331 = vst [vmem:[%s801_s1 + $0x98] sm:$0xff] %v330_v34  ;;  %333 = vst [vmem:[%s801_s1 + $0x1a0] sm:$0xff] %v332_v35  ;;  %v334_v36 = vld [vmem:[%s800_s0 + $0x50] sm:$0xff]  ;;  %v338_v38 = vld [vmem:[%s800_s0 + $0x38] sm:$0xff] }
  0x14   :  { %335 = vst [vmem:[%s801_s1 + $0xb0] sm:$0xff] %v334_v36  ;;  %337 = vst [vmem:[%s801_s1 + $0x1b8] sm:$0xff] %v336_v37  ;;  %v340_v39 = vld [vmem:[%s800_s0 + $0x140] sm:$0xff]  ;;  %v344_v41 = vld [vmem:[%s800_s0 + $0x128] sm:$0xff] }
  0x15   :  { %339 = vst [vmem:[%s801_s1 + $0xc8] sm:$0xff] %v338_v38  ;;  %v342_v40 = vld [vmem:[%s800_s0 + $0x20] sm:$0xff]  ;;  %341 = vst [vmem:[%s801_s1 + $0x1d0] sm:$0xff] %v340_v39  ;;  %v346_v42 = vld [vmem:[%s800_s0 + $0x8] sm:$0xff] }
  0x16   :  { %343 = vst [vmem:[%s801_s1 + $0xe0] sm:$0xff] %v342_v40  ;;  %345 = vst [vmem:[%s801_s1 + $0x1e8] sm:$0xff] %v344_v41  ;;  %v348_v43 = vld [vmem:[%s800_s0 + $0x110] sm:$0xff]  ;;  %v350_v44 = vld [vmem:[%s800_s0 + $0x100] sm:$0xff] }
  0x17   :  { %347 = vst [vmem:[%s801_s1 + $0xf8] sm:$0xff] %v346_v42  ;;  %349 = vst [vmem:[%s801_s1 + $0x200] sm:$0xff] %v348_v43  ;;  %v352_v45 = vld [vmem:[%s800_s0 + $0x208] sm:$0xff]  ;;  %v356_v47 = vld [vmem:[%s800_s0 + $0x1f0] sm:$0xff] }
  0x18   :  { %351 = vst [vmem:[%s801_s1 + $0x10] sm:$0xff] %v350_v44  ;;  %v354_v46 = vld [vmem:[%s800_s0 + $0xe8] sm:$0xff]  ;;  %353 = vst [vmem:[%s801_s1 + $0x118] sm:$0xff] %v352_v45  ;;  %v358_v48 = vld [vmem:[%s800_s0 + $0xd0] sm:$0xff] }
  0x19   :  { %355 = vst [vmem:[%s801_s1 + $0x28] sm:$0xff] %v354_v46  ;;  %357 = vst [vmem:[%s801_s1 + $0x130] sm:$0xff] %v356_v47  ;;  %v360_v49 = vld [vmem:[%s800_s0 + $0x1d8] sm:$0xff]  ;;  %v364_v51 = vld [vmem:[%s800_s0 + $0x1c0] sm:$0xff] }
  0x1a   :  { %v362_v50 = vld [vmem:[%s800_s0 + $0xb8] sm:$0xff]  ;;  %359 = vst [vmem:[%s801_s1 + $0x40] sm:$0xff] %v358_v48  ;;  %361 = vst [vmem:[%s801_s1 + $0x148] sm:$0xff] %v360_v49  ;;  %v366_v52 = vld [vmem:[%s800_s0 + $0xa0] sm:$0xff] }
  0x1b   :  { %363 = vst [vmem:[%s801_s1 + $0x58] sm:$0xff] %v362_v50  ;;  %v368_v53 = vld [vmem:[%s800_s0 + $0x1a8] sm:$0xff]  ;;  %365 = vst [vmem:[%s801_s1 + $0x160] sm:$0xff] %v364_v51  ;;  %v372_v55 = vld [vmem:[%s800_s0 + $0x190] sm:$0xff] }
  0x1c   :  { %367 = vst [vmem:[%s801_s1 + $0x70] sm:$0xff] %v366_v52  ;;  %369 = vst [vmem:[%s801_s1 + $0x178] sm:$0xff] %v368_v53  ;;  %v370_v54 = vld [vmem:[%s800_s0 + $0x88] sm:$0xff]  ;;  %v374_v56 = vld [vmem:[%s800_s0 + $0x70] sm:$0xff] }
  0x1d   :  { %371 = vst [vmem:[%s801_s1 + $0x88] sm:$0xff] %v370_v54  ;;  %373 = vst [vmem:[%s801_s1 + $0x190] sm:$0xff] %v372_v55  ;;  %v376_v57 = vld [vmem:[%s800_s0 + $0x178] sm:$0xff]  ;;  %v380_v59 = vld [vmem:[%s800_s0 + $0x160] sm:$0xff] }
  0x1e   :  { %375 = vst [vmem:[%s801_s1 + $0xa0] sm:$0xff] %v374_v56  ;;  %v378_v58 = vld [vmem:[%s800_s0 + $0x58] sm:$0xff]  ;;  %377 = vst [vmem:[%s801_s1 + $0x1a8] sm:$0xff] %v376_v57  ;;  %v382_v60 = vld [vmem:[%s800_s0 + $0x40] sm:$0xff] }
  0x1f   :  { %379 = vst [vmem:[%s801_s1 + $0xb8] sm:$0xff] %v378_v58  ;;  %381 = vst [vmem:[%s801_s1 + $0x1c0] sm:$0xff] %v380_v59  ;;  %v384_v61 = vld [vmem:[%s800_s0 + $0x148] sm:$0xff]  ;;  %v388_v63 = vld [vmem:[%s800_s0 + $0x130] sm:$0xff] }
  0x20   :  { %v386_v62 = vld [vmem:[%s800_s0 + $0x28] sm:$0xff]  ;;  %383 = vst [vmem:[%s801_s1 + $0xd0] sm:$0xff] %v382_v60  ;;  %385 = vst [vmem:[%s801_s1 + $0x1d8] sm:$0xff] %v384_v61  ;;  %v390_v0 = vld [vmem:[%s800_s0 + $0x10] sm:$0xff] }
  0x21   :  { %387 = vst [vmem:[%s801_s1 + $0xe8] sm:$0xff] %v386_v62  ;;  %v392_v1 = vld [vmem:[%s800_s0 + $0x118] sm:$0xff]  ;;  %389 = vst [vmem:[%s801_s1 + $0x1f0] sm:$0xff] %v388_v63 }
  0x22   :  { %391 = vst [vmem:[%s801_s1 + $0x100] sm:$0xff] %v390_v0  ;;  %393 = vst [vmem:[%s801_s1 + $0x208] sm:$0xff] %v392_v1 }

// kernel: fno_forward.8
= control target key start
LH: loop header
LB: loop body
LE: loop exit
PB: predicated region body
PF: predicated region fallthrough
CT: control target
= control target key end

     0   :  { %s1805_s2 = inlined_call_operand.vmem [shape: f32[128,128], index: 2, kind: input, shape index: {}]   ;;  %s1806_s0 = inlined_call_operand.vmem [shape: f32[288,128], index: 0, kind: input, shape index: {}]   ;;  %s1807_s1 = inlined_call_operand.vmem [shape: f32[288,128], index: 1, kind: input, shape index: {}]   ;;  %s1808_s3 = inlined_call_operand.vmem [shape: f32[1,128], index: 3, kind: input, shape index: {}]   ;;  %s1809_s4 = inlined_call_operand.vmem [shape: f32[288,128], index: 4, kind: output, shape index: {}]  }
   0x1   :  { %v89_v0 = vld [vmem:[%s1805_s2] sm:$0xff]  ;;  %v90_v1 = vld [vmem:[%s1805_s2 + $0x8] sm:$0xff]  ;;  %v91_v2 = vld [vmem:[%s1805_s2 + $0x10] sm:$0xff] }
   0x2   :  { %v932_v3 = vpack.c.bf16 %v90_v1, %v89_v0  ;;  %v92_v4 = vld [vmem:[%s1805_s2 + $0x18] sm:$0xff]  ;;  %v93_v6 = vld [vmem:[%s1805_s2 + $0x20] sm:$0xff]  ;;  %v94_v7 = vld [vmem:[%s1805_s2 + $0x28] sm:$0xff] }
   0x3   :  { %v936_v5 = vpack.c.bf16 %v92_v4, %v91_v2  ;;  %v940_v8 = vpack.c.bf16 %v94_v7, %v93_v6  ;;  %v53_v9 = vld [vmem:[%s1806_s0] sm:$0xff]  ;;  %v71_v10 = vld [vmem:[%s1806_s0 + $0x90] sm:$0xff]  ;;  %v96_v12 = vld [vmem:[%s1805_s2 + $0x38] sm:$0xff] }
   0x4   :  { %933 = vmatprep.subr.bf16.mxu0 %v932_v3  ;;  %964 = vmatprep.subr.bf16.mxu1 %v932_v3  ;;  %v95_v11 = vld [vmem:[%s1805_s2 + $0x30] sm:$0xff]  ;;  %v97_v14 = vld [vmem:[%s1805_s2 + $0x40] sm:$0xff]  ;;  %v98_v15 = vld [vmem:[%s1805_s2 + $0x48] sm:$0xff] }
   0x5   :  { %935 = vmatpush3.bf16.msra.mxu0 %v932_v3  ;;  %972 = vmatpush3.bf16.msra.mxu1 %v932_v3  ;;  %v944_v13 = vpack.c.bf16 %v96_v12, %v95_v11  ;;  %v948_v16 = vpack.c.bf16 %v98_v15, %v97_v14  ;;  %v99_v17 = vld [vmem:[%s1805_s2 + $0x50] sm:$0xff]  ;;  %v100_v18 = vld [vmem:[%s1805_s2 + $0x58] sm:$0xff]  ;;  %v101_v20 = vld [vmem:[%s1805_s2 + $0x60] sm:$0xff] }
   0x6   :  { %937 = vmatprep.subr.bf16.mxu0 %v936_v5  ;;  %965 = vmatprep.subr.bf16.mxu1 %v936_v5  ;;  %v952_v19 = vpack.c.bf16 %v100_v18, %v99_v17  ;;  %v102_v21 = vld [vmem:[%s1805_s2 + $0x68] sm:$0xff]  ;;  %v103_v23 = vld [vmem:[%s1805_s2 + $0x70] sm:$0xff]  ;;  %v104_v24 = vld [vmem:[%s1805_s2 + $0x78] sm:$0xff] }
   0x7   :  { %878 = vmatprep.mubr.f32.mxu0 %v53_v9  ;;  %905 = vmatprep.mubr.f32.mxu1 %v71_v10  ;;  %v956_v22 = vpack.c.bf16 %v102_v21, %v101_v20  ;;  %v960_v25 = vpack.c.bf16 %v104_v24, %v103_v23  ;;  %v54_v26 = vld [vmem:[%s1806_s0 + $0x8] sm:$0xff]  ;;  %v72_v27 = vld [vmem:[%s1806_s0 + $0x98] sm:$0xff]  ;;  %v55_v28 = vld [vmem:[%s1806_s0 + $0x10] sm:$0xff] }
   0x8   :  { %v73_v29 = vld [vmem:[%s1806_s0 + $0xa0] sm:$0xff]  ;;  %v56_v30 = vld [vmem:[%s1806_s0 + $0x18] sm:$0xff]  ;;  %v74_v31 = vld [vmem:[%s1806_s0 + $0xa8] sm:$0xff] }
   0x9   :  { %939 = vmatpush3.bf16.msra.mxu0 %v936_v5  ;;  %973 = vmatpush3.bf16.msra.mxu1 %v936_v5  ;;  %v57_v32 = vld [vmem:[%s1806_s0 + $0x20] sm:$0xff]  ;;  %v75_v33 = vld [vmem:[%s1806_s0 + $0xb0] sm:$0xff]  ;;  %v58_v34 = vld [vmem:[%s1806_s0 + $0x28] sm:$0xff] }
   0xa   :  { %941 = vmatprep.subr.bf16.mxu0 %v940_v8  ;;  %966 = vmatprep.subr.bf16.mxu1 %v940_v8  ;;  %v76_v35 = vld [vmem:[%s1806_s0 + $0xb8] sm:$0xff]  ;;  %v59_v36 = vld [vmem:[%s1806_s0 + $0x30] sm:$0xff]  ;;  %v77_v37 = vld [vmem:[%s1806_s0 + $0xc0] sm:$0xff] }
   0xb   :  { %v60_v38 = vld [vmem:[%s1806_s0 + $0x38] sm:$0xff]  ;;  %v78_v39 = vld [vmem:[%s1806_s0 + $0xc8] sm:$0xff]  ;;  %v61_v40 = vld [vmem:[%s1806_s0 + $0x40] sm:$0xff] }
   0xc   :  { %v79_v41 = vld [vmem:[%s1806_s0 + $0xd0] sm:$0xff]  ;;  %v62_v42 = vld [vmem:[%s1806_s0 + $0x48] sm:$0xff]  ;;  %v80_v43 = vld [vmem:[%s1806_s0 + $0xd8] sm:$0xff] }
   0xd   :  { %943 = vmatpush3.bf16.msra.mxu0 %v940_v8  ;;  %974 = vmatpush3.bf16.msra.mxu1 %v940_v8  ;;  %v63_v44 = vld [vmem:[%s1806_s0 + $0x50] sm:$0xff]  ;;  %v81_v45 = vld [vmem:[%s1806_s0 + $0xe0] sm:$0xff]  ;;  %v64_v46 = vld [vmem:[%s1806_s0 + $0x58] sm:$0xff] }
   0xe   :  { %945 = vmatprep.subr.bf16.mxu0 %v944_v13  ;;  %967 = vmatprep.subr.bf16.mxu1 %v944_v13  ;;  %v82_v47 = vld [vmem:[%s1806_s0 + $0xe8] sm:$0xff]  ;;  %v65_v48 = vld [vmem:[%s1806_s0 + $0x60] sm:$0xff]  ;;  %v83_v49 = vld [vmem:[%s1806_s0 + $0xf0] sm:$0xff] }
   0xf   :  { %v66_v50 = vld [vmem:[%s1806_s0 + $0x68] sm:$0xff]  ;;  %v84_v51 = vld [vmem:[%s1806_s0 + $0xf8] sm:$0xff]  ;;  %v67_v52 = vld [vmem:[%s1806_s0 + $0x70] sm:$0xff] }
  0x10   :  { %v85_v53 = vld [vmem:[%s1806_s0 + $0x100] sm:$0xff]  ;;  %v68_v54 = vld [vmem:[%s1806_s0 + $0x78] sm:$0xff]  ;;  %v86_v55 = vld [vmem:[%s1806_s0 + $0x108] sm:$0xff] }
  0x11   :  { %947 = vmatpush3.bf16.msra.mxu0 %v944_v13  ;;  %975 = vmatpush3.bf16.msra.mxu1 %v944_v13  ;;  %v69_v56 = vld [vmem:[%s1806_s0 + $0x80] sm:$0xff]  ;;  %v87_v57 = vld [vmem:[%s1806_s0 + $0x110] sm:$0xff]  ;;  %v70_v58 = vld [vmem:[%s1806_s0 + $0x88] sm:$0xff] }
  0x12   :  { %949 = vmatprep.subr.bf16.mxu0 %v948_v16  ;;  %968 = vmatprep.subr.bf16.mxu1 %v948_v16  ;;  %v88_v59 = vld [vmem:[%s1806_s0 + $0x118] sm:$0xff]  ;;  %v18_v60 = vld [vmem:[%s1807_s1 + $0x8] sm:$0xff]  ;;  %v17_v62 = vld [vmem:[%s1807_s1] sm:$0xff] }
  0x13   :  { %v36_v61 = vld [vmem:[%s1807_s1 + $0x98] sm:$0xff]  ;;  %v35_v63 = vld [vmem:[%s1807_s1 + $0x90] sm:$0xff]  ;;  %v1248_v1 = vld [vmem:[%s1808_s3] ss:$0 sm:$0xff] }
  0x14   :  { %v20_v13 = vld [vmem:[%s1807_s1 + $0x18] sm:$0xff]  ;;  %v38_v15 = vld [vmem:[%s1807_s1 + $0xa8] sm:$0xff]  ;;  %v37_v20 = vld [vmem:[%s1807_s1 + $0xa0] sm:$0xff] }
  0x15   :  { %951 = vmatpush3.bf16.msra.mxu0 %v948_v16  ;;  %976 = vmatpush3.bf16.msra.mxu1 %v948_v16 }
  0x16   :  { %953 = vmatprep.subr.bf16.mxu0 %v952_v19  ;;  %969 = vmatprep.subr.bf16.mxu1 %v952_v19 }
  0x19   :  { %955 = vmatpush3.bf16.msra.mxu0 %v952_v19  ;;  %977 = vmatpush3.bf16.msra.mxu1 %v952_v19  ;;  %v19_v19 = vld [vmem:[%s1807_s1 + $0x10] sm:$0xff] }
  0x1a   :  { %957 = vmatprep.subr.bf16.mxu0 %v956_v22  ;;  %970 = vmatprep.subr.bf16.mxu1 %v956_v22 }
  0x1d   :  { %959 = vmatpush3.bf16.msra.mxu0 %v956_v22  ;;  %978 = vmatpush3.bf16.msra.mxu1 %v956_v22 }
  0x1e   :  { %961 = vmatprep.subr.bf16.mxu0 %v960_v25  ;;  %971 = vmatprep.subr.bf16.mxu1 %v960_v25 }
  0x21   :  { %963 = vmatpush3.bf16.msra.mxu0 %v960_v25  ;;  %979 = vmatpush3.bf16.msra.mxu1 %v960_v25 }
  0x24   :  { %879 = vmatmul.mubr.f32.vlgmr.msra.gmra.mrb[0].mxu0 %v54_v26  ;;  %906 = vmatmul.mubr.f32.vlgmr.msra.gmra.mrb[0].mxu1 %v72_v27 }
  0x25   :  { %881 = vmatprep.mubr.f32.mxu0 %v55_v28  ;;  %908 = vmatprep.mubr.f32.mxu1 %v73_v29 }
  0x28   :  { %882 = vmatmul.mubr.f32.gmra.mrb[2].mxu0 %v56_v30  ;;  %909 = vmatmul.mubr.f32.gmra.mrb[2].mxu1 %v74_v31 }
  0x29   :  { %884 = vmatprep.mubr.f32.mxu0 %v57_v32  ;;  %911 = vmatprep.mubr.f32.mxu1 %v75_v33 }
  0x2c   :  { %885 = vmatmul.mubr.f32.gmra.mrb[4].mxu0 %v58_v34  ;;  %912 = vmatmul.mubr.f32.gmra.mrb[4].mxu1 %v76_v35 }
  0x2d   :  { %887 = vmatprep.mubr.f32.mxu0 %v59_v36  ;;  %914 = vmatprep.mubr.f32.mxu1 %v77_v37 }
  0x30   :  { %888 = vmatmul.mubr.f32.gmra.mrb[6].mxu0 %v60_v38  ;;  %915 = vmatmul.mubr.f32.gmra.mrb[6].mxu1 %v78_v39 }
  0x31   :  { %890 = vmatprep.mubr.f32.mxu0 %v61_v40  ;;  %917 = vmatprep.mubr.f32.mxu1 %v79_v41 }
  0x34   :  { %891 = vmatmul.mubr.f32.gmra.mrb[8].mxu0 %v62_v42  ;;  %918 = vmatmul.mubr.f32.gmra.mrb[8].mxu1 %v80_v43 }
  0x35   :  { %893 = vmatprep.mubr.f32.mxu0 %v63_v44  ;;  %920 = vmatprep.mubr.f32.mxu1 %v81_v45 }
  0x38   :  { %894 = vmatmul.mubr.f32.gmra.mrb[10].mxu0 %v64_v46  ;;  %921 = vmatmul.mubr.f32.gmra.mrb[10].mxu1 %v82_v47 }
  0x39   :  { %896 = vmatprep.mubr.f32.mxu0 %v65_v48  ;;  %923 = vmatprep.mubr.f32.mxu1 %v83_v49 }
  0x3c   :  { %897 = vmatmul.mubr.f32.gmra.mrb[12].mxu0 %v66_v50  ;;  %924 = vmatmul.mubr.f32.gmra.mrb[12].mxu1 %v84_v51  ;;  %v22_v51 = vld [vmem:[%s1807_s1 + $0x28] sm:$0xff] }
  0x3d   :  { %899 = vmatprep.mubr.f32.mxu0 %v67_v52  ;;  %926 = vmatprep.mubr.f32.mxu1 %v85_v53  ;;  %v40_v52 = vld [vmem:[%s1807_s1 + $0xb8] sm:$0xff] }
  0x40   :  { %900 = vmatmul.mubr.f32.gmra.mrb[14].mxu0 %v68_v54  ;;  %927 = vmatmul.mubr.f32.gmra.mrb[14].mxu1 %v86_v55 }
  0x41   :  { %902 = vmatprep.mubr.f32.mxu0 %v69_v56  ;;  %929 = vmatprep.mubr.f32.mxu1 %v87_v57 }
  0x44   :  { %903 = vmatmul.mubr.f32.gmra.mrb[16].mxu0 %v70_v58  ;;  %930 = vmatmul.mubr.f32.gmra.mrb[16].mxu1 %v88_v59 }
  0xf7   :  { %v880_v0 = vpop.f32.mrb[0].mxu0  ;;  %v907_v2 = vpop.f32.mrb[0].mxu1 }
  0xf8   :  { %v351_v3 = vadd.f32 %v880_v0, %v18_v60  ;;  %v369_v4 = vadd.f32 %v907_v2, %v36_v61  ;;  %v171_v5 = vpop.f32.mrb[1].mxu0  ;;  %v261_v6 = vpop.f32.mrb[1].mxu1 }
  0xf9   :  { %v350_v7 = vadd.f32 %v171_v5, %v17_v62  ;;  %v368_v8 = vadd.f32 %v261_v6, %v35_v63 }
  0xfa   :  { %v394_v9 = vadd.f32 %v1248_v1, %v351_v3  ;;  %v412_v10 = vadd.f32 %v1248_v1, %v369_v4 }
  0xfb   :  { %v1253_v11 = vadd.f32 %v1248_v1, %v350_v7  ;;  %v1256_v12 = vadd.f32 %v1248_v1, %v368_v8  ;;  %v883_v14 = vpop.f32.mrb[2].mxu0  ;;  %v910_v16 = vpop.f32.mrb[2].mxu1  ;;  %v21_v8 = vld [vmem:[%s1807_s1 + $0x20] sm:$0xff] }
  0xfc   :  { %v466_v17 = vmul.f32 0.044715, %v394_v9  ;;  %v484_v18 = vmul.f32 0.044715, %v412_v10  ;;  %v353_v25 = vadd.f32 %v883_v14, %v20_v13  ;;  %v371_v26 = vadd.f32 %v910_v16, %v38_v15  ;;  %v181_v27 = vpop.f32.mrb[3].mxu0  ;;  %v271_v28 = vpop.f32.mrb[3].mxu1 }
  0xfd   :  { %v465_v21 = vmul.f32 0.044715, %v1253_v11  ;;  %v483_v22 = vmul.f32 0.044715, %v1256_v12  ;;  %v352_v31 = vadd.f32 %v181_v27, %v19_v19  ;;  %v370_v32 = vadd.f32 %v271_v28, %v37_v20 }
  0xfe   :  { %v502_v23 = vmul.f32 %v466_v17, %v394_v9  ;;  %v520_v24 = vmul.f32 %v484_v18, %v412_v10  ;;  %v1275_v37 = vadd.f32 %v1248_v1, %v353_v25  ;;  %v1278_v38 = vadd.f32 %v1248_v1, %v371_v26  ;;  %v39_v25 = vld [vmem:[%s1807_s1 + $0xb0] sm:$0xff]  ;;  %v24_v26 = vld [vmem:[%s1807_s1 + $0x38] sm:$0xff] }
  0xff   :  { %v501_v29 = vmul.f32 %v465_v21, %v1253_v11  ;;  %v519_v30 = vmul.f32 %v483_v22, %v1256_v12  ;;  %v886_v33 = vpop.f32.mrb[4].mxu0  ;;  %v913_v34 = vpop.f32.mrb[4].mxu1  ;;  %v1285_v43 = vadd.f32 %v1248_v1, %v352_v31  ;;  %v1289_v47 = vadd.f32 %v1248_v1, %v370_v32 }
 0x100   :  { %v538_v35 = vmul.f32 %v502_v23, %v394_v9  ;;  %v556_v36 = vmul.f32 %v520_v24, %v412_v10  ;;  %v191_v39 = vpop.f32.mrb[5].mxu0  ;;  %v1280_v40 = vpop.f32.mrb[5].mxu1  ;;  %v468_v46 = vmul.f32 0.044715, %v1275_v37  ;;  %v486_v50 = vmul.f32 0.044715, %v1278_v38 }
 0x101   :  { %v537_v41 = vmul.f32 %v501_v29, %v1253_v11  ;;  %v555_v42 = vmul.f32 %v519_v30, %v1256_v12  ;;  %v1302_v55 = vmul.f32 0.5, %v394_v9  ;;  %v467_v63 = vmul.f32 0.044715, %v1285_v43 }
 0x102   :  { %v574_v44 = vadd.f32 %v538_v35, %v394_v9  ;;  %v592_v45 = vadd.f32 %v556_v36, %v412_v10  ;;  %v504_v58 = vmul.f32 %v468_v46, %v1275_v37  ;;  %v522_v62 = vmul.f32 %v486_v50, %v1278_v38 }
 0x103   :  { %v573_v48 = vadd.f32 %v537_v41, %v1253_v11  ;;  %v591_v49 = vadd.f32 %v555_v42, %v1256_v12  ;;  %v889_v53 = vpop.f32.mrb[6].mxu0  ;;  %v1300_v54 = vpop.f32.mrb[6].mxu1  ;;  %v1309_v0 = vmul.f32 0.5, %v412_v10  ;;  %v485_v3 = vmul.f32 0.044715, %v1289_v47 }
 0x104   :  { %v610_v56 = vmul.f32 0.7978846, %v574_v44  ;;  %v628_v57 = vmul.f32 0.7978846, %v592_v45  ;;  %v1305_v59 = vpop.f32.mrb[7].mxu0  ;;  %v540_v2 = vmul.f32 %v504_v58, %v1275_v37  ;;  %v1313_v4 = vpop.f32.mrb[7].mxu1  ;;  %v558_v5 = vmul.f32 %v522_v62, %v1278_v38 }
 0x105   :  { %v609_v60 = vmul.f32 0.7978846, %v573_v48  ;;  %v627_v61 = vmul.f32 0.7978846, %v591_v49  ;;  %v503_v6 = vmul.f32 %v467_v63, %v1285_v43  ;;  %v355_v7 = vadd.f32 %v886_v33, %v22_v51  ;;  %v42_v51 = vld [vmem:[%s1807_s1 + $0xc8] sm:$0xff] }
 0x106   :  { %980 = vtanh.f32 %v610_v56  ;;  %v576_v13 = vadd.f32 %v540_v2, %v1275_v37  ;;  %v521_v14 = vmul.f32 %v485_v3, %v1289_v47  ;;  %v373_v15 = vadd.f32 %v913_v34, %v40_v52 }
 0x107   :  { %982 = vtanh.f32 %v628_v57  ;;  %v1320_v9 = vpop.f32.mrb[8].mxu0  ;;  %v1322_v10 = vpop.f32.mrb[8].mxu1  ;;  %v594_v18 = vadd.f32 %v558_v5, %v1278_v38  ;;  %v539_v19 = vmul.f32 %v503_v6, %v1285_v43  ;;  %v1333_v20 = vadd.f32 %v1248_v1, %v355_v7 }
 0x108   :  { %984 = vtanh.f32 %v609_v60  ;;  %v1326_v16 = vpop.f32.mrb[9].mxu0  ;;  %v1328_v17 = vpop.f32.mrb[9].mxu1  ;;  %v612_v21 = vmul.f32 0.7978846, %v576_v13  ;;  %v557_v22 = vmul.f32 %v521_v14, %v1289_v47  ;;  %v1337_v23 = vadd.f32 %v1248_v1, %v373_v15 }
 0x109   :  { %986 = vtanh.f32 %v627_v61  ;;  %v354_v24 = vadd.f32 %v191_v39, %v21_v8  ;;  %v429_v27 = vmul.f32 0.5, %v1253_v11  ;;  %v630_v28 = vmul.f32 0.7978846, %v594_v18 }
 0x10a   :  { %v575_v29 = vadd.f32 %v539_v19, %v1285_v43  ;;  %v470_v30 = vmul.f32 0.044715, %v1333_v20  ;;  %v447_v32 = vmul.f32 0.5, %v1256_v12  ;;  %988 = vtanh.f32 %v612_v21 }
 0x10b   :  { %v1348_v31 = vpop.f32.mrb[10].mxu0  ;;  %v593_v33 = vadd.f32 %v557_v22, %v1289_v47  ;;  %v488_v34 = vmul.f32 0.044715, %v1337_v23  ;;  %v1353_v35 = vpop.f32.mrb[10].mxu1  ;;  %990 = vtanh.f32 %v630_v28  ;;  %v1359_v41 = vadd.f32 %v1248_v1, %v354_v24 }
 0x10c   :  { %v1355_v36 = vpop.f32.mrb[11].mxu0  ;;  %v611_v11 = vmul.f32 0.7978846, %v575_v29  ;;  %v506_v39 = vmul.f32 %v470_v30, %v1333_v20  ;;  %v1361_v42 = vpop.f32.mrb[11].mxu1  ;;  %v372_v45 = vadd.f32 %v1280_v40, %v39_v25  ;;  %v357_v46 = vadd.f32 %v889_v53, %v24_v26 }
 0x10d   :  { %v629_v44 = vmul.f32 0.7978846, %v593_v33  ;;  %v524_v12 = vmul.f32 %v488_v34, %v1337_v23  ;;  %v1366_v48 = vmul.f32 0.5, %v1275_v37  ;;  %v469_v50 = vmul.f32 0.044715, %v1359_v41  ;;  %v41_v34 = vld [vmem:[%s1807_s1 + $0xc0] sm:$0xff] }
 0x10e   :  { %992 = vtanh.f32 %v611_v11  ;;  %v542_v49 = vmul.f32 %v506_v39, %v1333_v20  ;;  %v1378_v40 = vmul.f32 0.5, %v1278_v38  ;;  %v1382_v53 = vadd.f32 %v1248_v1, %v372_v45 }
 0x10f   :  { %v1373_v52 = vpop.f32.mrb[12].mxu0  ;;  %v1375_v56 = vpop.f32.mrb[12].mxu1  ;;  %994 = vtanh.f32 %v629_v44  ;;  %v560_v37 = vmul.f32 %v524_v12, %v1337_v23  ;;  %v505_v2 = vmul.f32 %v469_v50, %v1359_v41  ;;  %v1391_v3 = vadd.f32 %v1248_v1, %v357_v46 }
 0x110   :  { %v981_v57 = vpop.eup %980  ;;  %v1384_v58 = vpop.f32.mrb[13].mxu0  ;;  %v578_v63 = vadd.f32 %v542_v49, %v1333_v20  ;;  %v487_v7 = vmul.f32 0.044715, %v1382_v53  ;;  %v375_v8 = vadd.f32 %v1300_v54, %v42_v51  ;;  %v23_v54 = vld [vmem:[%s1807_s1 + $0x30] sm:$0xff]  ;;  %v431_v33 = vmul.f32 0.5, %v1285_v43 }
 0x111   :  { %v1386_v60 = vpop.f32.mrb[13].mxu1  ;;  %v983_v61 = vpop.eup %982  ;;  %v682_v62 = vadd.f32 1.0, %v981_v57  ;;  %v596_v6 = vadd.f32 %v560_v37, %v1337_v23  ;;  %v541_v19 = vmul.f32 %v505_v2, %v1359_v41  ;;  %v356_v49 = vadd.f32 %v1305_v59, %v23_v54 }
 0x112   :  { %v985_v38 = vpop.eup %984  ;;  %v700_v5 = vadd.f32 1.0, %v983_v61  ;;  %v614_v18 = vmul.f32 0.7978846, %v578_v63  ;;  %v523_v28 = vmul.f32 %v487_v7, %v1382_v53  ;;  %v1428_v46 = vadd.f32 %v1248_v1, %v375_v8 }
 0x113   :  { %v987_v13 = vpop.eup %986  ;;  %v718_v14 = vmul.f32 %v682_v62, %v1302_v55  ;;  %v681_v15 = vadd.f32 1.0, %v985_v38  ;;  %v1398_v21 = vpop.f32.mrb[14].mxu0  ;;  %v632_v26 = vmul.f32 0.7978846, %v596_v6  ;;  %v374_v61 = vadd.f32 %v1313_v4, %v41_v34  ;;  %v26_v6 = vld [vmem:[%s1807_s1 + $0x48] sm:$0xff] }
 0x114   :  { %v1400_v22 = vpop.f32.mrb[14].mxu1  ;;  %v736_v24 = vmul.f32 %v700_v5, %v1309_v0  ;;  %v699_v25 = vadd.f32 1.0, %v987_v13  ;;  %v1407_v29 = vpop.f32.mrb[15].mxu0  ;;  %996 = vtanh.f32 %v614_v18  ;;  %v577_v0 = vadd.f32 %v541_v19, %v1359_v41 }
 0x115   :  { %v1409_v55 = vpop.f32.mrb[15].mxu1  ;;  %754 = vst [vmem:[%s1809_s4 + $0x8] sm:$0xff] %v718_v14  ;;  %v717_v30 = vmul.f32 %v681_v15, %v429_v27  ;;  %v989_v11 = vpop.eup %988  ;;  %998 = vtanh.f32 %v632_v26  ;;  %v559_v44 = vmul.f32 %v523_v28, %v1382_v53  ;;  %v472_v27 = vmul.f32 0.044715, %v1391_v3  ;;  %v25_v26 = vld [vmem:[%s1807_s1 + $0x40] sm:$0xff] }
 0x116   :  { %772 = vst [vmem:[%s1809_s4 + $0x98] sm:$0xff] %v736_v24  ;;  %v735_v39 = vmul.f32 %v699_v25, %v447_v32  ;;  %v991_v12 = vpop.eup %990  ;;  %v684_v43 = vadd.f32 1.0, %v989_v11  ;;  %v613_v45 = vmul.f32 0.7978846, %v577_v0  ;;  %v449_v38 = vmul.f32 0.5, %v1289_v47  ;;  %v44_v25 = vld [vmem:[%s1807_s1 + $0xd8] sm:$0xff] }
 0x117   :  { %753 = vst [vmem:[%s1809_s4] sm:$0xff] %v717_v30  ;;  %v1431_v50 = vpop.f32.mrb[16].mxu0  ;;  %v1433_v32 = vpop.f32.mrb[16].mxu1  ;;  %v702_v51 = vadd.f32 1.0, %v991_v12  ;;  %v595_v57 = vadd.f32 %v559_v44, %v1382_v53  ;;  %v508_v37 = vmul.f32 %v472_v27, %v1391_v3  ;;  %v490_v5 = vmul.f32 0.044715, %v1428_v46 }
 0x118   :  { %771 = vst [vmem:[%s1809_s4 + $0x90] sm:$0xff] %v735_v39  ;;  %v1441_v62 = vpop.f32.mrb[17].mxu0  ;;  %v1443_v63 = vpop.f32.mrb[17].mxu1  ;;  %v720_v2 = vmul.f32 %v684_v43, %v1366_v48  ;;  %1000 = vtanh.f32 %v613_v45  ;;  %v1458_v15 = vadd.f32 %v1248_v1, %v356_v49  ;;  %v1461_v18 = vadd.f32 %v1248_v1, %v374_v61 }
 0x119   :  { %v993_v59 = vpop.eup %992  ;;  %v738_v8 = vmul.f32 %v702_v51, %v1378_v40  ;;  %v631_v13 = vmul.f32 0.7978846, %v595_v57  ;;  %v544_v14 = vmul.f32 %v508_v37, %v1391_v3  ;;  %v526_v47 = vmul.f32 %v490_v5, %v1428_v46 }
 0x11a   :  { %v995_v7 = vpop.eup %994  ;;  %v683_v4 = vadd.f32 1.0, %v993_v59  ;;  %756 = vst [vmem:[%s1809_s4 + $0x18] sm:$0xff] %v720_v2  ;;  %v359_v24 = vadd.f32 %v1320_v9, %v26_v6  ;;  %v471_v30 = vmul.f32 0.044715, %v1458_v15  ;;  %v489_v0 = vmul.f32 0.044715, %v1461_v18 }
 0x11b   :  { %v701_v48 = vadd.f32 1.0, %v995_v7  ;;  %774 = vst [vmem:[%s1809_s4 + $0xa8] sm:$0xff] %v738_v8  ;;  %1002 = vtanh.f32 %v631_v13  ;;  %v580_v19 = vadd.f32 %v544_v14, %v1391_v3  ;;  %v562_v54 = vmul.f32 %v526_v47, %v1428_v46  ;;  %v43_v7 = vld [vmem:[%s1807_s1 + $0xd0] sm:$0xff] }
 0x11c   :  { %v719_v40 = vmul.f32 %v683_v4, %v431_v33  ;;  %v434_v33 = vmul.f32 0.5, %v1333_v20  ;;  %v1482_v34 = vadd.f32 %v1248_v1, %v359_v24  ;;  %v507_v44 = vmul.f32 %v471_v30, %v1458_v15 }
 0x11d   :  { %v737_v28 = vmul.f32 %v701_v48, %v449_v38  ;;  %v616_v9 = vmul.f32 0.7978846, %v580_v19  ;;  %v598_v39 = vadd.f32 %v562_v54, %v1428_v46  ;;  %v377_v27 = vadd.f32 %v1322_v10, %v44_v25 }
 0x11e   :  { %755 = vst [vmem:[%s1809_s4 + $0x10] sm:$0xff] %v719_v40  ;;  %v997_v11 = vpop.eup %996  ;;  %v358_v12 = vadd.f32 %v1326_v16, %v25_v26  ;;  %v452_v45 = vmul.f32 0.5, %v1337_v23  ;;  %v525_v49 = vmul.f32 %v489_v0, %v1461_v18  ;;  %v543_v37 = vmul.f32 %v507_v44, %v1458_v15 }
 0x11f   :  { %773 = vst [vmem:[%s1809_s4 + $0xa0] sm:$0xff] %v737_v28  ;;  %v999_v20 = vpop.eup %998  ;;  %v686_v43 = vadd.f32 1.0, %v997_v11  ;;  %1004 = vtanh.f32 %v616_v9  ;;  %v634_v57 = vmul.f32 0.7978846, %v598_v39  ;;  %v474_v61 = vmul.f32 0.044715, %v1482_v34 }
 0x120   :  { %v704_v51 = vadd.f32 1.0, %v999_v20  ;;  %v561_v2 = vmul.f32 %v525_v49, %v1461_v18  ;;  %v1497_v10 = vadd.f32 %v1248_v1, %v377_v27  ;;  %v1500_v16 = vadd.f32 %v1248_v1, %v358_v12 }
 0x121   :  { %v722_v59 = vmul.f32 %v686_v43, %v434_v33  ;;  %1006 = vtanh.f32 %v634_v57  ;;  %v579_v5 = vadd.f32 %v543_v37, %v1458_v15  ;;  %v510_v6 = vmul.f32 %v474_v61, %v1482_v34 }
 0x122   :  { %v1001_v38 = vpop.eup %1000  ;;  %v740_v23 = vmul.f32 %v704_v51, %v452_v45  ;;  %v433_v8 = vmul.f32 0.5, %v1359_v41  ;;  %v597_v13 = vadd.f32 %v561_v2, %v1461_v18  ;;  %v492_v14 = vmul.f32 0.044715, %v1497_v10  ;;  %v28_v41 = vld [vmem:[%s1807_s1 + $0x58] sm:$0xff] }
 0x123   :  { %758 = vst [vmem:[%s1809_s4 + $0x28] sm:$0xff] %v722_v59  ;;  %v685_v4 = vadd.f32 1.0, %v1001_v38  ;;  %v451_v48 = vmul.f32 0.5, %v1382_v53  ;;  %v615_v47 = vmul.f32 0.7978846, %v579_v5  ;;  %v546_v40 = vmul.f32 %v510_v6, %v1482_v34  ;;  %v46_v53 = vld [vmem:[%s1807_s1 + $0xe8] sm:$0xff] }
 0x124   :  { %776 = vst [vmem:[%s1809_s4 + $0xb8] sm:$0xff] %v740_v23  ;;  %v473_v19 = vmul.f32 0.044715, %v1500_v16  ;;  %v633_v26 = vmul.f32 0.7978846, %v597_v13  ;;  %v528_v28 = vmul.f32 %v492_v14, %v1497_v10  ;;  %v376_v54 = vadd.f32 %v1328_v17, %v43_v7  ;;  %v45_v38 = vld [vmem:[%s1807_s1 + $0xe0] sm:$0xff] }
 0x125   :  { %v1003_v24 = vpop.eup %1002  ;;  %v721_v25 = vmul.f32 %v685_v4, %v433_v8  ;;  %1008 = vtanh.f32 %v615_v47  ;;  %v582_v33 = vadd.f32 %v546_v40, %v1482_v34  ;;  %v361_v17 = vadd.f32 %v1348_v31, %v28_v41 }
 0x126   :  { %v703_v30 = vadd.f32 1.0, %v1003_v24  ;;  %v509_v9 = vmul.f32 %v473_v19, %v1500_v16  ;;  %1010 = vtanh.f32 %v633_v26  ;;  %v564_v0 = vmul.f32 %v528_v28, %v1497_v10 }
 0x127   :  { %757 = vst [vmem:[%s1809_s4 + $0x20] sm:$0xff] %v721_v25  ;;  %v1534_v11 = vadd.f32 %v1248_v1, %v376_v54  ;;  %v618_v44 = vmul.f32 0.7978846, %v582_v33  ;;  %v379_v12 = vadd.f32 %v1353_v35, %v46_v53  ;;  %v436_v43 = vmul.f32 0.5, %v1391_v3  ;;  %v27_v3 = vld [vmem:[%s1807_s1 + $0x50] sm:$0xff]  ;;  %v48_v25 = vld [vmem:[%s1807_s1 + $0xf8] sm:$0xff] }
 0x128   :  { %v739_v39 = vmul.f32 %v703_v30, %v451_v48  ;;  %v545_v27 = vmul.f32 %v509_v9, %v1500_v16  ;;  %v600_v45 = vadd.f32 %v564_v0, %v1497_v10  ;;  %v1543_v51 = vadd.f32 %v1248_v1, %v361_v17 }
 0x129   :  { %v1005_v20 = vpop.eup %1004  ;;  %v491_v49 = vmul.f32 0.044715, %v1534_v11  ;;  %1012 = vtanh.f32 %v618_v44  ;;  %v1550_v35 = vadd.f32 %v1248_v1, %v379_v12  ;;  %v454_v37 = vmul.f32 0.5, %v1428_v46  ;;  %v30_v46 = vld [vmem:[%s1807_s1 + $0x68] sm:$0xff] }
 0x12a   :  { %775 = vst [vmem:[%s1809_s4 + $0xb0] sm:$0xff] %v739_v39  ;;  %v688_v31 = vadd.f32 1.0, %v1005_v20  ;;  %v581_v57 = vadd.f32 %v545_v27, %v1500_v16  ;;  %v636_v61 = vmul.f32 0.7978846, %v600_v45  ;;  %v476_v2 = vmul.f32 0.044715, %v1543_v51 }
 0x12b   :  { %v527_v59 = vmul.f32 %v491_v49, %v1534_v11  ;;  %v1007_v23 = vpop.eup %1006  ;;  %v435_v6 = vmul.f32 0.5, %v1458_v15  ;;  %v494_v8 = vmul.f32 0.044715, %v1550_v35  ;;  %v360_v48 = vadd.f32 %v1355_v36, %v27_v3 }
 0x12c   :  { %v724_v5 = vmul.f32 %v688_v31, %v436_v43  ;;  %v617_v7 = vmul.f32 0.7978846, %v581_v57  ;;  %v706_v4 = vadd.f32 1.0, %v1007_v23  ;;  %1014 = vtanh.f32 %v636_v61  ;;  %v29_v57 = vld [vmem:[%s1807_s1 + $0x60] sm:$0xff] }
 0x12d   :  { %v563_v13 = vmul.f32 %v527_v59, %v1534_v11  ;;  %v512_v14 = vmul.f32 %v476_v2, %v1543_v51  ;;  %v530_v15 = vmul.f32 %v494_v8, %v1550_v35  ;;  %v378_v47 = vadd.f32 %v1361_v42, %v45_v38 }
 0x12e   :  { %760 = vst [vmem:[%s1809_s4 + $0x38] sm:$0xff] %v724_v5  ;;  %1016 = vtanh.f32 %v617_v7  ;;  %v742_v40 = vmul.f32 %v706_v4, %v454_v37  ;;  %v363_v24 = vadd.f32 %v1373_v52, %v30_v46  ;;  %v453_v28 = vmul.f32 0.5, %v1461_v18 }
 0x12f   :  { %v599_v19 = vadd.f32 %v563_v13, %v1534_v11  ;;  %v548_v41 = vmul.f32 %v512_v14, %v1543_v51  ;;  %v1009_v26 = vpop.eup %1008  ;;  %v566_v54 = vmul.f32 %v530_v15, %v1550_v35  ;;  %v1583_v36 = vadd.f32 %v1248_v1, %v360_v48 }
 0x130   :  { %v1586_v42 = vadd.f32 %v1248_v1, %v378_v47  ;;  %v1011_v53 = vpop.eup %1010  ;;  %778 = vst [vmem:[%s1809_s4 + $0xc8] sm:$0xff] %v742_v40  ;;  %v687_v52 = vadd.f32 1.0, %v1009_v26  ;;  %v1593_v9 = vadd.f32 %v1248_v1, %v363_v24  ;;  %v381_v39 = vadd.f32 %v1375_v56, %v48_v25  ;;  %v47_v56 = vld [vmem:[%s1807_s1 + $0xf0] sm:$0xff] }
 0x131   :  { %v635_v30 = vmul.f32 0.7978846, %v599_v19  ;;  %v584_v33 = vadd.f32 %v548_v41, %v1543_v51  ;;  %v705_v18 = vadd.f32 1.0, %v1011_v53  ;;  %v602_v0 = vadd.f32 %v566_v54, %v1550_v35  ;;  %v32_v19 = vld [vmem:[%s1807_s1 + $0x78] sm:$0xff] }
 0x132   :  { %v475_v17 = vmul.f32 0.044715, %v1583_v36  ;;  %v723_v44 = vmul.f32 %v687_v52, %v435_v6  ;;  %v438_v27 = vmul.f32 0.5, %v1482_v34  ;;  %v493_v31 = vmul.f32 0.044715, %v1586_v42 }
 0x133   :  { %1018 = vtanh.f32 %v635_v30  ;;  %v620_v12 = vmul.f32 0.7978846, %v584_v33  ;;  %v1013_v20 = vpop.eup %1012  ;;  %v741_v43 = vmul.f32 %v705_v18, %v453_v28  ;;  %v638_v45 = vmul.f32 0.7978846, %v602_v0  ;;  %v50_v28 = vld [vmem:[%s1807_s1 + $0x108] sm:$0xff] }
 0x134   :  { %v511_v49 = vmul.f32 %v475_v17, %v1583_v36  ;;  %759 = vst [vmem:[%s1809_s4 + $0x30] sm:$0xff] %v723_v44  ;;  %v690_v34 = vadd.f32 1.0, %v1013_v20  ;;  %v456_v3 = vmul.f32 0.5, %v1497_v10  ;;  %v478_v37 = vmul.f32 0.044715, %v1593_v9 }
 0x135   :  { %1020 = vtanh.f32 %v620_v12  ;;  %777 = vst [vmem:[%s1809_s4 + $0xc0] sm:$0xff] %v741_v43  ;;  %v529_v59 = vmul.f32 %v493_v31, %v1586_v42  ;;  %v1618_v2 = vadd.f32 %v1248_v1, %v381_v39  ;;  %v362_v10 = vadd.f32 %v1384_v58, %v29_v57 }
 0x136   :  { %1022 = vtanh.f32 %v638_v45  ;;  %v547_v61 = vmul.f32 %v511_v49, %v1583_v36  ;;  %v1015_v38 = vpop.eup %1014  ;;  %v726_v23 = vmul.f32 %v690_v34, %v438_v27  ;;  %v514_v5 = vmul.f32 %v478_v37, %v1593_v9  ;;  %v49_v37 = vld [vmem:[%s1807_s1 + $0x100] sm:$0xff] }
 0x137   :  { %v380_v6 = vadd.f32 %v1386_v60, %v47_v56  ;;  %v708_v8 = vadd.f32 1.0, %v1015_v38  ;;  %v437_v46 = vmul.f32 0.5, %v1500_v16  ;;  %v565_v13 = vmul.f32 %v529_v59, %v1586_v42  ;;  %v34_v38 = vld [vmem:[%s1807_s1 + $0x88] sm:$0xff] }
 0x138   :  { %v1017_v7 = vpop.eup %1016  ;;  %v583_v4 = vadd.f32 %v547_v61, %v1583_v36  ;;  %762 = vst [vmem:[%s1809_s4 + $0x48] sm:$0xff] %v726_v23  ;;  %v550_v15 = vmul.f32 %v514_v5, %v1593_v9  ;;  %v496_v48 = vmul.f32 0.044715, %v1618_v2  ;;  %v1632_v58 = vadd.f32 %v1248_v1, %v362_v10 }
 0x139   :  { %v689_v14 = vadd.f32 1.0, %v1017_v7  ;;  %v744_v60 = vmul.f32 %v708_v8, %v456_v3  ;;  %v601_v16 = vadd.f32 %v565_v13, %v1586_v42  ;;  %v1636_v40 = vadd.f32 %v1248_v1, %v380_v6  ;;  %v31_v3 = vld [vmem:[%s1807_s1 + $0x70] sm:$0xff] }
 0x13a   :  { %v619_v47 = vmul.f32 0.7978846, %v583_v4  ;;  %v455_v24 = vmul.f32 0.5, %v1534_v11  ;;  %v586_v25 = vadd.f32 %v550_v15, %v1593_v9  ;;  %v532_v26 = vmul.f32 %v496_v48, %v1618_v2  ;;  %v52_v48 = vld [vmem:[%s1807_s1 + $0x118] sm:$0xff] }
 0x13b   :  { %v725_v41 = vmul.f32 %v689_v14, %v437_v46  ;;  %780 = vst [vmem:[%s1809_s4 + $0xd8] sm:$0xff] %v744_v60  ;;  %v440_v54 = vmul.f32 0.5, %v1543_v51  ;;  %v637_v53 = vmul.f32 0.7978846, %v601_v16  ;;  %v477_v52 = vmul.f32 0.044715, %v1632_v58 }
 0x13c   :  { %1024 = vtanh.f32 %v619_v47  ;;  %v622_v11 = vmul.f32 0.7978846, %v586_v25  ;;  %v568_v33 = vmul.f32 %v532_v26, %v1618_v2  ;;  %v495_v18 = vmul.f32 0.044715, %v1636_v40 }
 0x13d   :  { %v1019_v30 = vpop.eup %1018  ;;  %761 = vst [vmem:[%s1809_s4 + $0x40] sm:$0xff] %v725_v41  ;;  %v365_v0 = vadd.f32 %v1398_v21, %v32_v19  ;;  %1026 = vtanh.f32 %v637_v53  ;;  %v513_v51 = vmul.f32 %v477_v52, %v1632_v58  ;;  %v383_v39 = vadd.f32 %v1400_v22, %v50_v28 }
 0x13e   :  { %v707_v17 = vadd.f32 1.0, %v1019_v30  ;;  %1028 = vtanh.f32 %v622_v11  ;;  %v604_v27 = vadd.f32 %v568_v33, %v1618_v2  ;;  %v531_v12 = vmul.f32 %v495_v18, %v1636_v40 }
 0x13f   :  { %v1021_v44 = vpop.eup %1020  ;;  %v1663_v20 = vadd.f32 %v1248_v1, %v365_v0  ;;  %v549_v21 = vmul.f32 %v513_v51, %v1632_v58  ;;  %v1667_v31 = vadd.f32 %v1248_v1, %v383_v39  ;;  %v458_v57 = vmul.f32 0.5, %v1550_v35 }
 0x140   :  { %v1023_v43 = vpop.eup %1022  ;;  %v743_v45 = vmul.f32 %v707_v17, %v455_v24  ;;  %v692_v49 = vadd.f32 1.0, %v1021_v44  ;;  %v640_v56 = vmul.f32 0.7978846, %v604_v27  ;;  %v567_v34 = vmul.f32 %v531_v12, %v1636_v40  ;;  %v51_v12 = vld [vmem:[%s1807_s1 + $0x110] sm:$0xff] }
 0x141   :  { %v710_v22 = vadd.f32 1.0, %v1023_v43  ;;  %v585_v59 = vadd.f32 %v549_v21, %v1632_v58  ;;  %v480_v35 = vmul.f32 0.044715, %v1663_v20  ;;  %v498_v10 = vmul.f32 0.044715, %v1667_v31 }
 0x142   :  { %779 = vst [vmem:[%s1809_s4 + $0xd0] sm:$0xff] %v743_v45  ;;  %v728_v61 = vmul.f32 %v692_v49, %v440_v54  ;;  %1030 = vtanh.f32 %v640_v56  ;;  %v603_v5 = vadd.f32 %v567_v34, %v1636_v40  ;;  %v364_v8 = vadd.f32 %v1407_v29, %v31_v3 }
 0x143   :  { %v746_v23 = vmul.f32 %v710_v22, %v458_v57  ;;  %v621_v6 = vmul.f32 0.7978846, %v585_v59  ;;  %v516_v7 = vmul.f32 %v480_v35, %v1663_v20  ;;  %v382_v46 = vadd.f32 %v1409_v55, %v49_v37 }
 0x144   :  { %764 = vst [vmem:[%s1809_s4 + $0x58] sm:$0xff] %v728_v61  ;;  %v439_v4 = vmul.f32 0.5, %v1583_v36  ;;  %v639_v13 = vmul.f32 0.7978846, %v603_v5  ;;  %v534_v14 = vmul.f32 %v498_v10, %v1667_v31  ;;  %v367_v15 = vadd.f32 %v1431_v50, %v34_v38 }
 0x145   :  { %782 = vst [vmem:[%s1809_s4 + $0xe8] sm:$0xff] %v746_v23  ;;  %1032 = vtanh.f32 %v621_v6  ;;  %v552_v29 = vmul.f32 %v516_v7, %v1663_v20  ;;  %v1704_v55 = vadd.f32 %v1248_v1, %v364_v8  ;;  %v1707_v47 = vadd.f32 %v1248_v1, %v382_v46 }
 0x146   :  { %v1025_v60 = vpop.eup %1024  ;;  %1034 = vtanh.f32 %v639_v13  ;;  %v570_v16 = vmul.f32 %v534_v14, %v1667_v31  ;;  %v1711_v50 = vadd.f32 %v1248_v1, %v367_v15  ;;  %v457_v41 = vmul.f32 0.5, %v1586_v42  ;;  %v33_v42 = vld [vmem:[%s1807_s1 + $0x80] sm:$0xff] }
 0x147   :  { %v691_v36 = vadd.f32 1.0, %v1025_v60  ;;  %v1027_v19 = vpop.eup %1026  ;;  %v588_v24 = vadd.f32 %v552_v29, %v1663_v20  ;;  %v479_v25 = vmul.f32 0.044715, %v1704_v55  ;;  %v385_v26 = vadd.f32 %v1433_v32, %v52_v48 }
 0x148   :  { %v1029_v28 = vpop.eup %1028  ;;  %v709_v53 = vadd.f32 1.0, %v1027_v19  ;;  %v606_v52 = vadd.f32 %v570_v16, %v1667_v31  ;;  %v497_v30 = vmul.f32 0.044715, %v1707_v47  ;;  %v442_v11 = vmul.f32 0.5, %v1593_v9 }
 0x149   :  { %v727_v54 = vmul.f32 %v691_v36, %v439_v4  ;;  %v694_v33 = vadd.f32 1.0, %v1029_v28  ;;  %v624_v18 = vmul.f32 0.7978846, %v588_v24  ;;  %v515_v0 = vmul.f32 %v479_v25, %v1704_v55 }
 0x14a   :  { %v745_v32 = vmul.f32 %v709_v53, %v457_v41  ;;  %v642_v17 = vmul.f32 0.7978846, %v606_v52  ;;  %v533_v51 = vmul.f32 %v497_v30, %v1707_v47  ;;  %v482_v39 = vmul.f32 0.044715, %v1711_v50 }
 0x14b   :  { %763 = vst [vmem:[%s1809_s4 + $0x50] sm:$0xff] %v727_v54  ;;  %v730_v44 = vmul.f32 %v694_v33, %v442_v11  ;;  %1036 = vtanh.f32 %v624_v18  ;;  %v551_v9 = vmul.f32 %v515_v0, %v1704_v55  ;;  %v1731_v27 = vadd.f32 %v1248_v1, %v385_v26 }
 0x14c   :  { %v1031_v43 = vpop.eup %1030  ;;  %781 = vst [vmem:[%s1809_s4 + $0xe0] sm:$0xff] %v745_v32  ;;  %1038 = vtanh.f32 %v642_v17  ;;  %v569_v45 = vmul.f32 %v533_v51, %v1707_v47  ;;  %v518_v49 = vmul.f32 %v482_v39, %v1711_v50  ;;  %v366_v21 = vadd.f32 %v1441_v62, %v33_v42 }
 0x14d   :  { %766 = vst [vmem:[%s1809_s4 + $0x68] sm:$0xff] %v730_v44  ;;  %v460_v57 = vmul.f32 0.5, %v1618_v2  ;;  %v712_v22 = vadd.f32 1.0, %v1031_v43  ;;  %v587_v56 = vadd.f32 %v551_v9, %v1704_v55  ;;  %v500_v34 = vmul.f32 0.044715, %v1731_v27 }
 0x14e   :  { %v605_v3 = vadd.f32 %v569_v45, %v1707_v47  ;;  %v554_v37 = vmul.f32 %v518_v49, %v1711_v50  ;;  %v1751_v61 = vadd.f32 %v1248_v1, %v366_v21  ;;  %v384_v62 = vadd.f32 %v1443_v63, %v51_v12 }
 0x14f   :  { %v1033_v59 = vpop.eup %1032  ;;  %v748_v35 = vmul.f32 %v712_v22, %v460_v57  ;;  %v441_v38 = vmul.f32 0.5, %v1632_v58  ;;  %v623_v23 = vmul.f32 0.7978846, %v587_v56  ;;  %v536_v2 = vmul.f32 %v500_v34, %v1731_v27 }
 0x150   :  { %v1035_v5 = vpop.eup %1034  ;;  %v693_v10 = vadd.f32 1.0, %v1033_v59  ;;  %v459_v6 = vmul.f32 0.5, %v1636_v40  ;;  %v641_v7 = vmul.f32 0.7978846, %v605_v3  ;;  %v590_v8 = vadd.f32 %v554_v37, %v1711_v50 }
 0x151   :  { %784 = vst [vmem:[%s1809_s4 + $0xf8] sm:$0xff] %v748_v35  ;;  %v711_v46 = vadd.f32 1.0, %v1035_v5  ;;  %1040 = vtanh.f32 %v623_v23  ;;  %v572_v63 = vmul.f32 %v536_v2, %v1731_v27  ;;  %v481_v58 = vmul.f32 0.044715, %v1751_v61 }
 0x152   :  { %v729_v4 = vmul.f32 %v693_v10, %v441_v38  ;;  %1042 = vtanh.f32 %v641_v7  ;;  %v626_v13 = vmul.f32 0.7978846, %v590_v8  ;;  %v427_v14 = vadd.f32 %v1248_v1, %v384_v62 }
 0x153   :  { %v747_v15 = vmul.f32 %v711_v46, %v459_v6  ;;  %v608_v40 = vadd.f32 %v572_v63, %v1731_v27  ;;  %v517_v48 = vmul.f32 %v481_v58, %v1751_v61  ;;  %v444_v19 = vmul.f32 0.5, %v1663_v20 }
 0x154   :  { %765 = vst [vmem:[%s1809_s4 + $0x60] sm:$0xff] %v729_v4  ;;  %1044 = vtanh.f32 %v626_v13  ;;  %v499_v60 = vmul.f32 0.044715, %v427_v14  ;;  %v462_v25 = vmul.f32 0.5, %v1667_v31  ;;  %v443_v31 = vmul.f32 0.5, %v1704_v55 }
 0x155   :  { %v1037_v29 = vpop.eup %1036  ;;  %783 = vst [vmem:[%s1809_s4 + $0xf0] sm:$0xff] %v747_v15  ;;  %v644_v36 = vmul.f32 0.7978846, %v608_v40  ;;  %v553_v16 = vmul.f32 %v517_v48, %v1751_v61  ;;  %v461_v42 = vmul.f32 0.5, %v1707_v47  ;;  %v446_v44 = vmul.f32 0.5, %v1711_v50 }
 0x156   :  { %v1039_v1 = vpop.eup %1038  ;;  %v696_v41 = vadd.f32 1.0, %v1037_v29  ;;  %v535_v24 = vmul.f32 %v499_v60, %v427_v14  ;;  %v464_v47 = vmul.f32 0.5, %v1731_v27  ;;  %v445_v49 = vmul.f32 0.5, %v1751_v61 }
 0x157   :  { %v714_v26 = vadd.f32 1.0, %v1039_v1  ;;  %1046 = vtanh.f32 %v644_v36  ;;  %v589_v28 = vadd.f32 %v553_v16, %v1751_v61  ;;  %v463_v56 = vmul.f32 0.5, %v427_v14 }
 0x158   :  { %v732_v54 = vmul.f32 %v696_v41, %v444_v19  ;;  %v571_v53 = vmul.f32 %v535_v24, %v427_v14 }
 0x159   :  { %v750_v52 = vmul.f32 %v714_v26, %v462_v25  ;;  %v625_v30 = vmul.f32 0.7978846, %v589_v28 }
 0x15a   :  { %768 = vst [vmem:[%s1809_s4 + $0x78] sm:$0xff] %v732_v54  ;;  %v607_v11 = vadd.f32 %v571_v53, %v427_v14 }
 0x15b   :  { %v1041_v33 = vpop.eup %1040  ;;  %786 = vst [vmem:[%s1809_s4 + $0x108] sm:$0xff] %v750_v52  ;;  %1048 = vtanh.f32 %v625_v30 }
 0x15c   :  { %v1043_v20 = vpop.eup %1042  ;;  %v695_v18 = vadd.f32 1.0, %v1041_v33  ;;  %v643_v0 = vmul.f32 0.7978846, %v607_v11 }
 0x15d   :  { %v713_v32 = vadd.f32 1.0, %v1043_v20 }
 0x15e   :  { %v1045_v17 = vpop.eup %1044  ;;  %v731_v51 = vmul.f32 %v695_v18, %v443_v31  ;;  %1050 = vtanh.f32 %v643_v0 }
 0x15f   :  { %v749_v39 = vmul.f32 %v713_v32, %v461_v42  ;;  %v698_v9 = vadd.f32 1.0, %v1045_v17 }
 0x160   :  { %767 = vst [vmem:[%s1809_s4 + $0x70] sm:$0xff] %v731_v51 }
 0x161   :  { %v1047_v12 = vpop.eup %1046  ;;  %785 = vst [vmem:[%s1809_s4 + $0x100] sm:$0xff] %v749_v39  ;;  %v734_v55 = vmul.f32 %v698_v9, %v446_v44 }
 0x162   :  { %v716_v43 = vadd.f32 1.0, %v1047_v12 }
 0x163   :  { %770 = vst [vmem:[%s1809_s4 + $0x88] sm:$0xff] %v734_v55 }
 0x164   :  { %v752_v45 = vmul.f32 %v716_v43, %v464_v47 }
 0x165   :  { %v1049_v50 = vpop.eup %1048 }
 0x166   :  { %788 = vst [vmem:[%s1809_s4 + $0x118] sm:$0xff] %v752_v45  ;;  %v697_v21 = vadd.f32 1.0, %v1049_v50 }
 0x168   :  { %v1051_v57 = vpop.eup %1050  ;;  %v733_v22 = vmul.f32 %v697_v21, %v445_v49 }
 0x169   :  { %v715_v34 = vadd.f32 1.0, %v1051_v57 }
 0x16a   :  { %769 = vst [vmem:[%s1809_s4 + $0x80] sm:$0xff] %v733_v22 }
 0x16b   :  { %v751_v27 = vmul.f32 %v715_v34, %v463_v56 }
 0x16d   :  { %787 = vst [vmem:[%s1809_s4 + $0x110] sm:$0xff] %v751_v27 }

// kernel: fno_forward.11
= control target key start
LH: loop header
LB: loop body
LE: loop exit
PB: predicated region body
PF: predicated region fallthrough
CT: control target
= control target key end

     0   :  { %vm198_vm0 = vcmask 64512   ;;  %s539_s1 = inlined_call_operand.vmem [shape: f32[128,8], index: 1, kind: input, shape index: {}]   ;;  %s540_s0 = inlined_call_operand.vmem [shape: f32[128,128], index: 0, kind: input, shape index: {}]   ;;  %s541_s2 = inlined_call_operand.vmem [shape: f32[1,8], index: 2, kind: input, shape index: {}]   ;;  %s542_s3 = inlined_call_operand.vmem [shape: f32[128,8], index: 3, kind: output, shape index: {}]  }
   0x1   :  { %v30_v0 = vld [vmem:[%s539_s1] sm:$0xff]  ;;  %v31_v1 = vld [vmem:[%s539_s1 + $0x8] sm:$0xff]  ;;  %v32_v2 = vld [vmem:[%s539_s1 + $0x10] sm:$0xff] }
   0x2   :  { %v308_v3 = vpack.c.bf16 %v31_v1, %v30_v0  ;;  %v33_v4 = vld [vmem:[%s539_s1 + $0x18] sm:$0xff]  ;;  %v34_v6 = vld [vmem:[%s539_s1 + $0x20] sm:$0xff]  ;;  %v35_v7 = vld [vmem:[%s539_s1 + $0x28] sm:$0xff] }
   0x3   :  { %v312_v5 = vpack.c.bf16 %v33_v4, %v32_v2  ;;  %v316_v8 = vpack.c.bf16 %v35_v7, %v34_v6  ;;  %v14_v9 = vld [vmem:[%s540_s0] sm:$0xff]  ;;  %v36_v11 = vld [vmem:[%s539_s1 + $0x30] sm:$0xff]  ;;  %v37_v12 = vld [vmem:[%s539_s1 + $0x38] sm:$0xff] }
   0x4   :  { %309 = vmatprep.subr.bf16.mxu0 %v308_v3  ;;  %340 = vmatprep.subr.bf16.mxu1 %v308_v3  ;;  %v22_v10 = vld [vmem:[%s540_s0 + $0x40] sm:$0xff]  ;;  %v320_v13 = vpack.c.bf16 %v37_v12, %v36_v11  ;;  %v39_v15 = vld [vmem:[%s539_s1 + $0x48] sm:$0xff]  ;;  %v40_v17 = vld [vmem:[%s539_s1 + $0x50] sm:$0xff] }
   0x5   :  { %311 = vmatpush3.bf16.msra.mxu0 %v308_v3  ;;  %348 = vmatpush3.bf16.msra.mxu1 %v308_v3  ;;  %v38_v14 = vld [vmem:[%s539_s1 + $0x40] sm:$0xff]  ;;  %v41_v18 = vld [vmem:[%s539_s1 + $0x58] sm:$0xff]  ;;  %v43_v21 = vld [vmem:[%s539_s1 + $0x68] sm:$0xff] }
   0x6   :  { %313 = vmatprep.subr.bf16.mxu0 %v312_v5  ;;  %341 = vmatprep.subr.bf16.mxu1 %v312_v5  ;;  %v324_v16 = vpack.c.bf16 %v39_v15, %v38_v14  ;;  %v328_v19 = vpack.c.bf16 %v41_v18, %v40_v17  ;;  %v42_v20 = vld [vmem:[%s539_s1 + $0x60] sm:$0xff]  ;;  %v44_v23 = vld [vmem:[%s539_s1 + $0x70] sm:$0xff]  ;;  %v45_v24 = vld [vmem:[%s539_s1 + $0x78] sm:$0xff] }
   0x7   :  { %284 = vmatprep.mubr.f32.mxu0 %v14_v9  ;;  %296 = vmatprep.mubr.f32.mxu1 %v22_v10  ;;  %v332_v22 = vpack.c.bf16 %v43_v21, %v42_v20  ;;  %v336_v25 = vpack.c.bf16 %v45_v24, %v44_v23  ;;  %v15_v26 = vld [vmem:[%s540_s0 + $0x8] sm:$0xff]  ;;  %v16_v28 = vld [vmem:[%s540_s0 + $0x10] sm:$0xff]  ;;  %v17_v30 = vld [vmem:[%s540_s0 + $0x18] sm:$0xff] }
   0x8   :  { %v23_v27 = vld [vmem:[%s540_s0 + $0x48] sm:$0xff]  ;;  %v24_v29 = vld [vmem:[%s540_s0 + $0x50] sm:$0xff]  ;;  %v25_v31 = vld [vmem:[%s540_s0 + $0x58] sm:$0xff] }
   0x9   :  { %315 = vmatpush3.bf16.msra.mxu0 %v312_v5  ;;  %349 = vmatpush3.bf16.msra.mxu1 %v312_v5  ;;  %v18_v32 = vld [vmem:[%s540_s0 + $0x20] sm:$0xff]  ;;  %v19_v34 = vld [vmem:[%s540_s0 + $0x28] sm:$0xff]  ;;  %v20_v36 = vld [vmem:[%s540_s0 + $0x30] sm:$0xff] }
   0xa   :  { %317 = vmatprep.subr.bf16.mxu0 %v316_v8  ;;  %342 = vmatprep.subr.bf16.mxu1 %v316_v8  ;;  %v26_v33 = vld [vmem:[%s540_s0 + $0x60] sm:$0xff]  ;;  %v27_v35 = vld [vmem:[%s540_s0 + $0x68] sm:$0xff]  ;;  %v28_v37 = vld [vmem:[%s540_s0 + $0x70] sm:$0xff] }
   0xb   :  { %v21_v38 = vld [vmem:[%s540_s0 + $0x38] sm:$0xff]  ;;  %v219_v40 = vld [vmem:[%s541_s2] ss:$0 sm:$0xff] }
   0xc   :  { %v29_v39 = vld [vmem:[%s540_s0 + $0x78] sm:$0xff] }
   0xd   :  { %319 = vmatpush3.bf16.msra.mxu0 %v316_v8  ;;  %350 = vmatpush3.bf16.msra.mxu1 %v316_v8 }
   0xe   :  { %321 = vmatprep.subr.bf16.mxu0 %v320_v13  ;;  %343 = vmatprep.subr.bf16.mxu1 %v320_v13 }
  0x11   :  { %323 = vmatpush3.bf16.msra.mxu0 %v320_v13  ;;  %351 = vmatpush3.bf16.msra.mxu1 %v320_v13 }
  0x12   :  { %325 = vmatprep.subr.bf16.mxu0 %v324_v16  ;;  %344 = vmatprep.subr.bf16.mxu1 %v324_v16 }
  0x15   :  { %327 = vmatpush3.bf16.msra.mxu0 %v324_v16  ;;  %352 = vmatpush3.bf16.msra.mxu1 %v324_v16 }
  0x16   :  { %329 = vmatprep.subr.bf16.mxu0 %v328_v19  ;;  %345 = vmatprep.subr.bf16.mxu1 %v328_v19 }
  0x19   :  { %331 = vmatpush3.bf16.msra.mxu0 %v328_v19  ;;  %353 = vmatpush3.bf16.msra.mxu1 %v328_v19 }
  0x1a   :  { %333 = vmatprep.subr.bf16.mxu0 %v332_v22  ;;  %346 = vmatprep.subr.bf16.mxu1 %v332_v22 }
  0x1d   :  { %335 = vmatpush3.bf16.msra.mxu0 %v332_v22  ;;  %354 = vmatpush3.bf16.msra.mxu1 %v332_v22 }
  0x1e   :  { %337 = vmatprep.subr.bf16.mxu0 %v336_v25  ;;  %347 = vmatprep.subr.bf16.mxu1 %v336_v25 }
  0x21   :  { %339 = vmatpush3.bf16.msra.mxu0 %v336_v25  ;;  %355 = vmatpush3.bf16.msra.mxu1 %v336_v25 }
  0x24   :  { %285 = vmatmul.mubr.f32.vlgmr.msra.gmra.mrb[0].mxu0 %v15_v26  ;;  %297 = vmatmul.mubr.f32.vlgmr.msra.gmra.mrb[0].mxu1 %v23_v27 }
  0x25   :  { %287 = vmatprep.mubr.f32.mxu0 %v16_v28  ;;  %299 = vmatprep.mubr.f32.mxu1 %v24_v29 }
  0x28   :  { %288 = vmatmul.mubr.f32.gmra.mrb[2].mxu0 %v17_v30  ;;  %300 = vmatmul.mubr.f32.gmra.mrb[2].mxu1 %v25_v31 }
  0x29   :  { %290 = vmatprep.mubr.f32.mxu0 %v18_v32  ;;  %302 = vmatprep.mubr.f32.mxu1 %v26_v33 }
  0x2c   :  { %291 = vmatmul.mubr.f32.gmra.mrb[4].mxu0 %v19_v34  ;;  %303 = vmatmul.mubr.f32.gmra.mrb[4].mxu1 %v27_v35 }
  0x2d   :  { %293 = vmatprep.mubr.f32.mxu0 %v20_v36  ;;  %305 = vmatprep.mubr.f32.mxu1 %v28_v37 }
  0x30   :  { %294 = vmatmul.mubr.f32.gmra.mrb[6].mxu0 %v21_v38  ;;  %306 = vmatmul.mubr.f32.gmra.mrb[6].mxu1 %v29_v39 }
  0xf7   :  { %v286_v41 = vpop.f32.mrb[0].mxu0  ;;  %v298_v42 = vpop.f32.mrb[0].mxu1 }
  0xf8   :  { %v125_v43 = vadd.f32 %v286_v41, %v219_v40  ;;  %v165_v44 = vadd.f32 %v298_v42, %v219_v40  ;;  %v119_v45 = vpop.f32.mrb[1].mxu0  ;;  %v159_v46 = vpop.f32.mrb[1].mxu1 }
  0xf9   :  { %v120_v47 = vadd.f32 %v219_v40, %v119_v45  ;;  %v160_v48 = vadd.f32 %v219_v40, %v159_v46 }
  0xfa   :  { %200 = vst.msk [vmem:[%s542_s3 + $0x8] sm:$0xff] %vm198_vm0, %v125_v43  ;;  %208 = vst.msk [vmem:[%s542_s3 + $0x48] sm:$0xff] %vm198_vm0, %v165_v44 }
  0xfb   :  { %199 = vst.msk [vmem:[%s542_s3] sm:$0xff] %vm198_vm0, %v120_v47  ;;  %207 = vst.msk [vmem:[%s542_s3 + $0x40] sm:$0xff] %vm198_vm0, %v160_v48  ;;  %v289_v49 = vpop.f32.mrb[2].mxu0  ;;  %v301_v50 = vpop.f32.mrb[2].mxu1 }
  0xfc   :  { %v135_v51 = vadd.f32 %v289_v49, %v219_v40  ;;  %v175_v52 = vadd.f32 %v301_v50, %v219_v40  ;;  %v129_v53 = vpop.f32.mrb[3].mxu0  ;;  %v169_v54 = vpop.f32.mrb[3].mxu1 }
  0xfd   :  { %v130_v55 = vadd.f32 %v219_v40, %v129_v53  ;;  %v170_v56 = vadd.f32 %v219_v40, %v169_v54 }
  0xfe   :  { %202 = vst.msk [vmem:[%s542_s3 + $0x18] sm:$0xff] %vm198_vm0, %v135_v51  ;;  %210 = vst.msk [vmem:[%s542_s3 + $0x58] sm:$0xff] %vm198_vm0, %v175_v52 }
  0xff   :  { %201 = vst.msk [vmem:[%s542_s3 + $0x10] sm:$0xff] %vm198_vm0, %v130_v55  ;;  %209 = vst.msk [vmem:[%s542_s3 + $0x50] sm:$0xff] %vm198_vm0, %v170_v56  ;;  %v292_v57 = vpop.f32.mrb[4].mxu0  ;;  %v304_v58 = vpop.f32.mrb[4].mxu1 }
 0x100   :  { %v145_v59 = vadd.f32 %v292_v57, %v219_v40  ;;  %v185_v60 = vadd.f32 %v304_v58, %v219_v40  ;;  %v139_v61 = vpop.f32.mrb[5].mxu0  ;;  %v179_v62 = vpop.f32.mrb[5].mxu1 }
 0x101   :  { %v140_v63 = vadd.f32 %v219_v40, %v139_v61  ;;  %v180_v0 = vadd.f32 %v219_v40, %v179_v62 }
 0x102   :  { %204 = vst.msk [vmem:[%s542_s3 + $0x28] sm:$0xff] %vm198_vm0, %v145_v59  ;;  %212 = vst.msk [vmem:[%s542_s3 + $0x68] sm:$0xff] %vm198_vm0, %v185_v60 }
 0x103   :  { %203 = vst.msk [vmem:[%s542_s3 + $0x20] sm:$0xff] %vm198_vm0, %v140_v63  ;;  %211 = vst.msk [vmem:[%s542_s3 + $0x60] sm:$0xff] %vm198_vm0, %v180_v0  ;;  %v295_v1 = vpop.f32.mrb[6].mxu0  ;;  %v307_v2 = vpop.f32.mrb[6].mxu1 }
 0x104   :  { %v155_v3 = vadd.f32 %v295_v1, %v219_v40  ;;  %v195_v4 = vadd.f32 %v307_v2, %v219_v40  ;;  %v149_v5 = vpop.f32.mrb[7].mxu0  ;;  %v189_v6 = vpop.f32.mrb[7].mxu1 }
 0x105   :  { %v150_v7 = vadd.f32 %v219_v40, %v149_v5  ;;  %v190_v8 = vadd.f32 %v219_v40, %v189_v6 }
 0x106   :  { %206 = vst.msk [vmem:[%s542_s3 + $0x38] sm:$0xff] %vm198_vm0, %v155_v3  ;;  %214 = vst.msk [vmem:[%s542_s3 + $0x78] sm:$0xff] %vm198_vm0, %v195_v4 }
 0x107   :  { %205 = vst.msk [vmem:[%s542_s3 + $0x30] sm:$0xff] %vm198_vm0, %v150_v7  ;;  %213 = vst.msk [vmem:[%s542_s3 + $0x70] sm:$0xff] %vm198_vm0, %v190_v8 }

</bundles_post_ra>
